<compile_context>
chip_gen: v7x
topology: tpu7x:2x2x1
jax: 0.10.0
libtpu: 0.0.40
codegen_flags: <defaults>
</compile_context>

<pallas_src>
import jax
import jax.numpy as jnp
from jax import lax
from jax.experimental import pallas as pl
from jax.experimental.pallas import tpu as pltpu

# ----------------------------- model dimensions -----------------------------
H = W = 28                 # MNIST input
K = 5                      # conv kernel size
OC1, OC2 = 10, 20          # conv output channels
OH1 = H - K + 1            # 24
PH1 = OH1 // 2             # 12  (after first 2x2 pool)
OH2 = PH1 - K + 1          # 8
PH2 = OH2 // 2             # 4   (after second 2x2 pool)
FEAT = OC2 * PH2 * PH2     # 320
FC1_OUT = 50
FC1_PAD = 128              # fc1 output padded to a full lane register
NCLASS = 10

L1 = H * W                 # 784  flattened 28x28 lane axis (stage 1)
L2 = PH1 * PH1             # 144  flattened 12x12 lane axis (stage 2)


# ------------------------------ Pallas kernels ------------------------------

def _shift(a, d):
    """y[:, p] = a[:, p + d] (wrap-around; wrapped lanes are never consumed)."""
    if d == 0:
        return a
    return jnp.concatenate([a[:, d:], a[:, :d]], axis=1)


def _conv_stages_kernel(x_ref, w1_ref, b1_ref, w2_ref, b2_ref, s1_ref, s2_ref,
                        o_ref):
    """conv1+bias+pool+relu+conv2+bias+pool+relu for ONE image, all in VMEM."""
    # ---- stage 1: conv1 (5x5, IC=1) on the flattened 28x28 map -------------
    x = x_ref[0]                                                  # [1, 784]
    r1 = jnp.concatenate(
        [_shift(x, kh * W + kw) for kh in range(K) for kw in range(K)],
        axis=0)                                                   # [25, 784]
    c1 = jnp.dot(w1_ref[...], r1,
                 preferred_element_type=jnp.float32) + b1_ref[...]  # [10, 784]
    # fused 2x2/2 max-pool + ReLU: valid pooled values live at lanes 56*i + 2*j
    p1 = jnp.maximum(jnp.maximum(c1, _shift(c1, 1)),
                     jnp.maximum(_shift(c1, W), _shift(c1, W + 1)))
    a1 = jnp.maximum(p1, 0.0)                                     # [10, 784]
    # compact the dilated pooled map to a dense 12x12 layout (selection matmul)
    a1c = jnp.dot(a1, s1_ref[...],
                  preferred_element_type=jnp.float32)             # [10, 144]

    # ---- stage 2: conv2 (5x5, IC=10) on the flattened 12x12 map ------------
    # TODO(synk): Dropout2d after conv2 is identity (inference mode).
    r2 = jnp.concatenate(
        [_shift(a1c, kh * PH1 + kw) for kh in range(K) for kw in range(K)],
        axis=0)                                                   # [250, 144]
    c2 = jnp.dot(w2_ref[...], r2,
                 preferred_element_type=jnp.float32) + b2_ref[...]  # [20, 144]
    # fused 2x2/2 max-pool + ReLU: valid pooled values at lanes 24*p + 2*q
    p2 = jnp.maximum(jnp.maximum(c2, _shift(c2, 1)),
                     jnp.maximum(_shift(c2, PH1), _shift(c2, PH1 + 1)))
    a2 = jnp.maximum(p2, 0.0)                                     # [20, 144]
    # gather the 4x4 pooled grid into a dense [20, 16] block (selection matmul)
    o_ref[0] = jnp.dot(a2, s2_ref[...],
                       preferred_element_type=jnp.float32).astype(o_ref.dtype)


def _fc_head_kernel(x_ref, w1_ref, b1_ref, w2_ref, b2_ref, o_ref):
    """fc1 + ReLU + fc2 + log_softmax on a block of rows (fc1 padded to 128)."""
    h = jnp.dot(x_ref[...], w1_ref[...],
                preferred_element_type=jnp.float32) + b1_ref[...]   # [Bb, 128]
    h = jnp.maximum(h, 0.0)
    # TODO(synk): F.dropout(training=True) between fc1 and fc2 not modeled
    # (inference / identity).
    y = jnp.dot(h, w2_ref[...],
                preferred_element_type=jnp.float32) + b2_ref[...]   # [Bb, 10]
    m = jnp.max(y, axis=-1, keepdims=True)
    z = y - m
    lse = jnp.log(jnp.sum(jnp.exp(z), axis=-1, keepdims=True))
    o_ref[...] = (z - lse).astype(o_ref.dtype)


# --------------------------- params & weight prep ---------------------------

def init_params(key):
    """Raw parameters in PyTorch layouts."""
    ks = jax.random.split(key, 8)

    def u(k, shape, fan_in):
        bound = 1.0 / jnp.sqrt(fan_in)
        return jax.random.uniform(k, shape, jnp.float32, -bound, bound)

    return {
        "conv1_w": u(ks[0], (OC1, 1, K, K), 1 * K * K),
        "conv1_b": u(ks[1], (OC1,), 1 * K * K),
        "conv2_w": u(ks[2], (OC2, OC1, K, K), OC1 * K * K),
        "conv2_b": u(ks[3], (OC2,), OC1 * K * K),
        "fc1_w": u(ks[4], (FC1_OUT, FEAT), FEAT),   # [out, in]
        "fc1_b": u(ks[5], (FC1_OUT,), FEAT),
        "fc2_w": u(ks[6], (NCLASS, FC1_OUT), FC1_OUT),
        "fc2_b": u(ks[7], (NCLASS,), FC1_OUT),
    }


def _make_s1():
    # S1[2*i*28 + 2*j, 12*i + j] = 1 : picks the 12x12 pooled grid out of the
    # dilated 28x28 stage-1 layout.
    i, j = jnp.meshgrid(jnp.arange(PH1), jnp.arange(PH1), indexing="ij")
    rows = (2 * i * W + 2 * j).reshape(-1)
    cols = (i * PH1 + j).reshape(-1)
    return jnp.zeros((L1, L2), jnp.float32).at[rows, cols].set(1.0)


def _make_s2():
    # S2[2*p*12 + 2*q, 4*p + q] = 1 : picks the 4x4 pooled grid out of the
    # dilated 12x12 stage-2 layout (output feature order = (oc, ph, pw)).
    p, q = jnp.meshgrid(jnp.arange(PH2), jnp.arange(PH2), indexing="ij")
    rows = (2 * p * PH1 + 2 * q).reshape(-1)
    cols = (p * PH2 + q).reshape(-1)
    return jnp.zeros((L2, PH2 * PH2), jnp.float32).at[rows, cols].set(1.0)


def prepare_params(p):
    """One-time conversion of PyTorch-layout weights to kernel layouts."""
    return {
        "w1": p["conv1_w"].reshape(OC1, K * K),               # rows (kh, kw)
        "b1": p["conv1_b"].reshape(OC1, 1),
        # column order (kh, kw, ic) matches the in-kernel im2col row order
        "w2": p["conv2_w"].transpose(0, 2, 3, 1).reshape(OC2, K * K * OC1),
        "b2": p["conv2_b"].reshape(OC2, 1),
        "s1": _make_s1(),                                     # [784, 144]
        "s2": _make_s2(),                                     # [144, 16]
        "fc1_w": jnp.pad(p["fc1_w"].T, ((0, 0), (0, FC1_PAD - FC1_OUT))),
        "fc1_b": jnp.pad(p["fc1_b"], (0, FC1_PAD - FC1_OUT)).reshape(1, FC1_PAD),
        "fc2_w": jnp.pad(p["fc2_w"].T, ((0, FC1_PAD - FC1_OUT), (0, 0))),
        "fc2_b": p["fc2_b"].reshape(1, NCLASS),
    }


# --------------------------------- forward ----------------------------------

def _resident_spec(arr):
    """Full-array block, constant index map -> stays VMEM-resident over grid."""
    zeros = (0,) * arr.ndim
    return pl.BlockSpec(arr.shape, lambda *_: zeros)


def net_mnist_forward(x, kp):
    """x: [B, 1, 28, 28] float32 (NCHW).  kp: output of prepare_params()."""
    B = x.shape[0]
    xf = x.astype(jnp.float32).reshape(B, 1, L1)

    # ---- fused conv stages: one image per grid step, batch axis parallel ----
    feats = pl.pallas_call(
        _conv_stages_kernel,
        out_shape=jax.ShapeDtypeStruct((B, OC2, PH2 * PH2), jnp.float32),
        grid=(B,),
        in_specs=[
            pl.BlockSpec((1, 1, L1), lambda b: (b, 0, 0)),
            _resident_spec(kp["w1"]), _resident_spec(kp["b1"]),
            _resident_spec(kp["w2"]), _resident_spec(kp["b2"]),
            _resident_spec(kp["s1"]), _resident_spec(kp["s2"]),
        ],
        out_specs=pl.BlockSpec((1, OC2, PH2 * PH2), lambda b: (b, 0, 0)),
        compiler_params=pltpu.CompilerParams(
            dimension_semantics=("parallel",)),
    )(xf, kp["w1"], kp["b1"], kp["w2"], kp["b2"], kp["s1"], kp["s2"])

    feats = feats.reshape(B, FEAT)          # == torch .view(-1, 320) order

    # ---- fused fc head, gridded over row blocks (multiple-of-8 sublanes) ---
    bb = min(128, ((B + 7) // 8) * 8)
    bp = ((B + bb - 1) // bb) * bb
    if bp != B:
        feats = jnp.pad(feats, ((0, bp - B), (0, 0)))

    out = pl.pallas_call(
        _fc_head_kernel,
        out_shape=jax.ShapeDtypeStruct((bp, NCLASS), jnp.float32),
        grid=(bp // bb,),
        in_specs=[
            pl.BlockSpec((bb, FEAT), lambda i: (i, 0)),
            _resident_spec(kp["fc1_w"]), _resident_spec(kp["fc1_b"]),
            _resident_spec(kp["fc2_w"]), _resident_spec(kp["fc2_b"]),
        ],
        out_specs=pl.BlockSpec((bb, NCLASS), lambda i: (i, 0)),
        compiler_params=pltpu.CompilerParams(
            dimension_semantics=("parallel",)),
    )(feats, kp["fc1_w"], kp["fc1_b"], kp["fc2_w"], kp["fc2_b"])

    return out[:B]


# ------------------------- pure-JAX reference check -------------------------

def reference_forward(x, p):
    def conv(x, w, b):
        y = lax.conv_general_dilated(
            x, w, (1, 1), "VALID",
            dimension_numbers=("NCHW", "OIHW", "NCHW"))
        return y + b.reshape(1, -1, 1, 1)

    def pool(x):
        return lax.reduce_window(x, -jnp.inf, lax.max,
                                 (1, 1, 2, 2), (1, 1, 2, 2), "VALID")

    x = jax.nn.relu(pool(conv(x, p["conv1_w"], p["conv1_b"])))
    x = jax.nn.relu(pool(conv(x, p["conv2_w"], p["conv2_b"])))
    x = x.reshape(x.shape[0], FEAT)
    x = jax.nn.relu(x @ p["fc1_w"].T + p["fc1_b"])
    x = x @ p["fc2_w"].T + p["fc2_b"]
    return jax.nn.log_softmax(x, axis=1)


# ----------------------------------- main ------------------------------------

if __name__ == "__main__":
    B = 2  # fc1 expects 320 = 20*4*4 features => 28x28 (MNIST-sized) inputs.
    x = jax.random.normal(jax.random.PRNGKey(0), (B, 1, H, W), dtype=jnp.float32)

    raw_params = init_params(jax.random.PRNGKey(42))
    kp = prepare_params(raw_params)          # one-time weight re-layout

    fwd = jax.jit(net_mnist_forward)
    out = jax.block_until_ready(fwd(x, kp))

    assert out.shape == (B, NCLASS)
    # rows of log_softmax must exp-sum to 1
    assert bool(jnp.allclose(jnp.sum(jnp.exp(out), axis=1), 1.0, atol=1e-4))
    # cross-check against a pure-JAX reference of the PyTorch module
    ref = reference_forward(x, raw_params)
    assert bool(jnp.max(jnp.abs(out - ref)) < 5e-2)

    print("KERNEL_OK")
</pallas_src>

<mosaic_0001>
module attributes {stable_mosaic.version = 11 : i64} {
  func.func @_fc_head_kernel(%arg0: i32, %arg1: memref<8x320xf32, #tpu.memory_space<vmem>>, %arg2: memref<320x128xf32, #tpu.memory_space<vmem>>, %arg3: memref<1x128xf32, #tpu.memory_space<vmem>>, %arg4: memref<128x10xf32, #tpu.memory_space<vmem>>, %arg5: memref<1x10xf32, #tpu.memory_space<vmem>>, %arg6: memref<8x10xf32, #tpu.memory_space<vmem>>) attributes {dimension_semantics = [#tpu.dimension_semantics<parallel>], iteration_bounds = array<i64: 1>, scalar_prefetch = 0 : i64, scratch_operands = 0 : i64, tpu.core_type = #tpu.core_type<tc>, window_params = [{transform_indices = @transform_0, window_bounds = array<i64: 8, 320>}, {pipeline_mode = #tpu.pipeline_mode<synchronous>, transform_indices = @transform_1, window_bounds = array<i64: 320, 128>}, {pipeline_mode = #tpu.pipeline_mode<synchronous>, transform_indices = @transform_2, window_bounds = array<i64: 1, 128>}, {pipeline_mode = #tpu.pipeline_mode<synchronous>, transform_indices = @transform_3, window_bounds = array<i64: 128, 10>}, {pipeline_mode = #tpu.pipeline_mode<synchronous>, transform_indices = @transform_4, window_bounds = array<i64: 1, 10>}, {transform_indices = @transform_5, window_bounds = array<i64: 8, 10>}]} {
    %c0 = arith.constant 0 : index
    %c0_0 = arith.constant 0 : index
    %0 = vector.load %arg1[%c0, %c0_0] : memref<8x320xf32, #tpu.memory_space<vmem>>, vector<8x320xf32>
    %c0_1 = arith.constant 0 : index
    %c0_2 = arith.constant 0 : index
    %1 = vector.load %arg2[%c0_1, %c0_2] : memref<320x128xf32, #tpu.memory_space<vmem>>, vector<320x128xf32>
    %cst = arith.constant dense<0.000000e+00> : vector<8x128xf32>
    %2 = tpu.matmul %0, %1, %cst {dimension_numbers = #tpu.dot_dimension_numbers<[1], [0], [0], [1], [0, 0, 1, 1], [], []>} : vector<8x320xf32>, vector<320x128xf32>, vector<8x128xf32> -> vector<8x128xf32>
    %c0_3 = arith.constant 0 : index
    %c0_4 = arith.constant 0 : index
    %3 = vector.load %arg3[%c0_3, %c0_4] : memref<1x128xf32, #tpu.memory_space<vmem>>, vector<1x128xf32>
    %4 = vector.broadcast %3 : vector<1x128xf32> to vector<8x128xf32>
    %5 = arith.addf %2, %4 : vector<8x128xf32>
    %cst_5 = arith.constant 0.000000e+00 : f32
    %6 = vector.broadcast %cst_5 : f32 to vector<8x128xf32>
    %7 = arith.maximumf %5, %6 : vector<8x128xf32>
    %c0_6 = arith.constant 0 : index
    %c0_7 = arith.constant 0 : index
    %8 = vector.load %arg4[%c0_6, %c0_7] : memref<128x10xf32, #tpu.memory_space<vmem>>, vector<128x10xf32>
    %cst_8 = arith.constant dense<0.000000e+00> : vector<8x10xf32>
    %9 = tpu.matmul %7, %8, %cst_8 {dimension_numbers = #tpu.dot_dimension_numbers<[1], [0], [0], [1], [0, 0, 1, 1], [], []>} : vector<8x128xf32>, vector<128x10xf32>, vector<8x10xf32> -> vector<8x10xf32>
    %c0_9 = arith.constant 0 : index
    %c0_10 = arith.constant 0 : index
    %10 = vector.load %arg5[%c0_9, %c0_10] : memref<1x10xf32, #tpu.memory_space<vmem>>, vector<1x10xf32>
    %11 = vector.broadcast %10 : vector<1x10xf32> to vector<8x10xf32>
    %12 = arith.addf %9, %11 : vector<8x10xf32>
    %cst_11 = arith.constant dense<0xFF800000> : vector<8xf32>
    %13 = vector.multi_reduction <maximumf>, %12, %cst_11 [1] : vector<8x10xf32> to vector<8xf32>
    %14 = vector.shape_cast %13 : vector<8xf32> to vector<8x1xf32>
    %15 = vector.broadcast %14 : vector<8x1xf32> to vector<8x10xf32>
    %16 = arith.subf %12, %15 : vector<8x10xf32>
    %17 = math.exp %16 : vector<8x10xf32>
    %cst_12 = arith.constant dense<0.000000e+00> : vector<8xf32>
    %18 = vector.multi_reduction <add>, %17, %cst_12 [1] : vector<8x10xf32> to vector<8xf32>
    %19 = vector.shape_cast %18 : vector<8xf32> to vector<8x1xf32>
    %20 = math.log %19 : vector<8x1xf32>
    %21 = vector.broadcast %20 : vector<8x1xf32> to vector<8x10xf32>
    %22 = arith.subf %16, %21 : vector<8x10xf32>
    %c0_13 = arith.constant 0 : index
    %c0_14 = arith.constant 0 : index
    %23 = vector.load %arg6[%c0_13, %c0_14] : memref<8x10xf32, #tpu.memory_space<vmem>>, vector<8x10xf32>
    tpu.vector_store %arg6[%c0_13, %c0_14], %22 {strides = array<i32>} : memref<8x10xf32, #tpu.memory_space<vmem>>, vector<8x10xf32>,
    return
  }
  func.func @transform_0(%arg0: i32) -> (i32, i32) {
    %c0_i32 = arith.constant 0 : i32
    %c0_i32_0 = arith.constant 0 : i32
    return %arg0, %c0_i32 : i32, i32
  }
  func.func @transform_1(%arg0: i32) -> (i32, i32) {
    %c0_i32 = arith.constant 0 : i32
    %c0_i32_0 = arith.constant 0 : i32
    %c0_i32_1 = arith.constant 0 : i32
    return %c0_i32, %c0_i32_0 : i32, i32
  }
  func.func @transform_2(%arg0: i32) -> (i32, i32) {
    %c0_i32 = arith.constant 0 : i32
    %c0_i32_0 = arith.constant 0 : i32
    %c0_i32_1 = arith.constant 0 : i32
    return %c0_i32, %c0_i32_0 : i32, i32
  }
  func.func @transform_3(%arg0: i32) -> (i32, i32) {
    %c0_i32 = arith.constant 0 : i32
    %c0_i32_0 = arith.constant 0 : i32
    %c0_i32_1 = arith.constant 0 : i32
    return %c0_i32, %c0_i32_0 : i32, i32
  }
  func.func @transform_4(%arg0: i32) -> (i32, i32) {
    %c0_i32 = arith.constant 0 : i32
    %c0_i32_0 = arith.constant 0 : i32
    %c0_i32_1 = arith.constant 0 : i32
    return %c0_i32, %c0_i32_0 : i32, i32
  }
  func.func @transform_5(%arg0: i32) -> (i32, i32) {
    %c0_i32 = arith.constant 0 : i32
    %c0_i32_0 = arith.constant 0 : i32
    return %arg0, %c0_i32 : i32, i32
  }
}

module attributes {stable_mosaic.version = 11 : i64} {
  func.func @_conv_stages_kernel(%arg0: i32, %arg1: memref<1x1x784xf32, #tpu.memory_space<vmem>>, %arg2: memref<10x25xf32, #tpu.memory_space<vmem>>, %arg3: memref<10x1xf32, #tpu.memory_space<vmem>>, %arg4: memref<20x250xf32, #tpu.memory_space<vmem>>, %arg5: memref<20x1xf32, #tpu.memory_space<vmem>>, %arg6: memref<784x144xf32, #tpu.memory_space<vmem>>, %arg7: memref<144x16xf32, #tpu.memory_space<vmem>>, %arg8: memref<1x20x16xf32, #tpu.memory_space<vmem>>) attributes {dimension_semantics = [#tpu.dimension_semantics<parallel>], iteration_bounds = array<i64: 2>, scalar_prefetch = 0 : i64, scratch_operands = 0 : i64, tpu.core_type = #tpu.core_type<tc>, window_params = [{transform_indices = @transform_0, window_bounds = array<i64: 1, 1, 784>}, {pipeline_mode = #tpu.pipeline_mode<synchronous>, transform_indices = @transform_1, window_bounds = array<i64: 10, 25>}, {pipeline_mode = #tpu.pipeline_mode<synchronous>, transform_indices = @transform_2, window_bounds = array<i64: 10, 1>}, {pipeline_mode = #tpu.pipeline_mode<synchronous>, transform_indices = @transform_3, window_bounds = array<i64: 20, 250>}, {pipeline_mode = #tpu.pipeline_mode<synchronous>, transform_indices = @transform_4, window_bounds = array<i64: 20, 1>}, {pipeline_mode = #tpu.pipeline_mode<synchronous>, transform_indices = @transform_5, window_bounds = array<i64: 784, 144>}, {pipeline_mode = #tpu.pipeline_mode<synchronous>, transform_indices = @transform_6, window_bounds = array<i64: 144, 16>}, {transform_indices = @transform_7, window_bounds = array<i64: 1, 20, 16>}]} {
    %c0 = arith.constant 0 : index
    %c0_0 = arith.constant 0 : index
    %c0_1 = arith.constant 0 : index
    %0 = vector.load %arg1[%c0, %c0_0, %c0_1] : memref<1x1x784xf32, #tpu.memory_space<vmem>>, vector<1x1x784xf32>
    %1 = vector.shape_cast %0 : vector<1x1x784xf32> to vector<1x784xf32>
    %2 = vector.extract_strided_slice %1 {offsets = [0, 1], sizes = [1, 783], strides = [1, 1]} : vector<1x784xf32> to vector<1x783xf32>
    %3 = vector.extract_strided_slice %1 {offsets = [0, 0], sizes = [1, 1], strides = [1, 1]} : vector<1x784xf32> to vector<1x1xf32>
    %4 = tpu.concatenate %2, %3 in 1 : vector<1x783xf32>, vector<1x1xf32> -> vector<1x784xf32>
    %5 = vector.extract_strided_slice %1 {offsets = [0, 2], sizes = [1, 782], strides = [1, 1]} : vector<1x784xf32> to vector<1x782xf32>
    %6 = vector.extract_strided_slice %1 {offsets = [0, 0], sizes = [1, 2], strides = [1, 1]} : vector<1x784xf32> to vector<1x2xf32>
    %7 = tpu.concatenate %5, %6 in 1 : vector<1x782xf32>, vector<1x2xf32> -> vector<1x784xf32>
    %8 = vector.extract_strided_slice %1 {offsets = [0, 3], sizes = [1, 781], strides = [1, 1]} : vector<1x784xf32> to vector<1x781xf32>
    %9 = vector.extract_strided_slice %1 {offsets = [0, 0], sizes = [1, 3], strides = [1, 1]} : vector<1x784xf32> to vector<1x3xf32>
    %10 = tpu.concatenate %8, %9 in 1 : vector<1x781xf32>, vector<1x3xf32> -> vector<1x784xf32>
    %11 = vector.extract_strided_slice %1 {offsets = [0, 4], sizes = [1, 780], strides = [1, 1]} : vector<1x784xf32> to vector<1x780xf32>
    %12 = vector.extract_strided_slice %1 {offsets = [0, 0], sizes = [1, 4], strides = [1, 1]} : vector<1x784xf32> to vector<1x4xf32>
    %13 = tpu.concatenate %11, %12 in 1 : vector<1x780xf32>, vector<1x4xf32> -> vector<1x784xf32>
    %14 = vector.extract_strided_slice %1 {offsets = [0, 28], sizes = [1, 756], strides = [1, 1]} : vector<1x784xf32> to vector<1x756xf32>
    %15 = vector.extract_strided_slice %1 {offsets = [0, 0], sizes = [1, 28], strides = [1, 1]} : vector<1x784xf32> to vector<1x28xf32>
    %16 = tpu.concatenate %14, %15 in 1 : vector<1x756xf32>, vector<1x28xf32> -> vector<1x784xf32>
    %17 = vector.extract_strided_slice %1 {offsets = [0, 29], sizes = [1, 755], strides = [1, 1]} : vector<1x784xf32> to vector<1x755xf32>
    %18 = vector.extract_strided_slice %1 {offsets = [0, 0], sizes = [1, 29], strides = [1, 1]} : vector<1x784xf32> to vector<1x29xf32>
    %19 = tpu.concatenate %17, %18 in 1 : vector<1x755xf32>, vector<1x29xf32> -> vector<1x784xf32>
    %20 = vector.extract_strided_slice %1 {offsets = [0, 30], sizes = [1, 754], strides = [1, 1]} : vector<1x784xf32> to vector<1x754xf32>
    %21 = vector.extract_strided_slice %1 {offsets = [0, 0], sizes = [1, 30], strides = [1, 1]} : vector<1x784xf32> to vector<1x30xf32>
    %22 = tpu.concatenate %20, %21 in 1 : vector<1x754xf32>, vector<1x30xf32> -> vector<1x784xf32>
    %23 = vector.extract_strided_slice %1 {offsets = [0, 31], sizes = [1, 753], strides = [1, 1]} : vector<1x784xf32> to vector<1x753xf32>
    %24 = vector.extract_strided_slice %1 {offsets = [0, 0], sizes = [1, 31], strides = [1, 1]} : vector<1x784xf32> to vector<1x31xf32>
    %25 = tpu.concatenate %23, %24 in 1 : vector<1x753xf32>, vector<1x31xf32> -> vector<1x784xf32>
    %26 = vector.extract_strided_slice %1 {offsets = [0, 32], sizes = [1, 752], strides = [1, 1]} : vector<1x784xf32> to vector<1x752xf32>
    %27 = vector.extract_strided_slice %1 {offsets = [0, 0], sizes = [1, 32], strides = [1, 1]} : vector<1x784xf32> to vector<1x32xf32>
    %28 = tpu.concatenate %26, %27 in 1 : vector<1x752xf32>, vector<1x32xf32> -> vector<1x784xf32>
    %29 = vector.extract_strided_slice %1 {offsets = [0, 56], sizes = [1, 728], strides = [1, 1]} : vector<1x784xf32> to vector<1x728xf32>
    %30 = vector.extract_strided_slice %1 {offsets = [0, 0], sizes = [1, 56], strides = [1, 1]} : vector<1x784xf32> to vector<1x56xf32>
    %31 = tpu.concatenate %29, %30 in 1 : vector<1x728xf32>, vector<1x56xf32> -> vector<1x784xf32>
    %32 = vector.extract_strided_slice %1 {offsets = [0, 57], sizes = [1, 727], strides = [1, 1]} : vector<1x784xf32> to vector<1x727xf32>
    %33 = vector.extract_strided_slice %1 {offsets = [0, 0], sizes = [1, 57], strides = [1, 1]} : vector<1x784xf32> to vector<1x57xf32>
    %34 = tpu.concatenate %32, %33 in 1 : vector<1x727xf32>, vector<1x57xf32> -> vector<1x784xf32>
    %35 = vector.extract_strided_slice %1 {offsets = [0, 58], sizes = [1, 726], strides = [1, 1]} : vector<1x784xf32> to vector<1x726xf32>
    %36 = vector.extract_strided_slice %1 {offsets = [0, 0], sizes = [1, 58], strides = [1, 1]} : vector<1x784xf32> to vector<1x58xf32>
    %37 = tpu.concatenate %35, %36 in 1 : vector<1x726xf32>, vector<1x58xf32> -> vector<1x784xf32>
    %38 = vector.extract_strided_slice %1 {offsets = [0, 59], sizes = [1, 725], strides = [1, 1]} : vector<1x784xf32> to vector<1x725xf32>
    %39 = vector.extract_strided_slice %1 {offsets = [0, 0], sizes = [1, 59], strides = [1, 1]} : vector<1x784xf32> to vector<1x59xf32>
    %40 = tpu.concatenate %38, %39 in 1 : vector<1x725xf32>, vector<1x59xf32> -> vector<1x784xf32>
    %41 = vector.extract_strided_slice %1 {offsets = [0, 60], sizes = [1, 724], strides = [1, 1]} : vector<1x784xf32> to vector<1x724xf32>
    %42 = vector.extract_strided_slice %1 {offsets = [0, 0], sizes = [1, 60], strides = [1, 1]} : vector<1x784xf32> to vector<1x60xf32>
    %43 = tpu.concatenate %41, %42 in 1 : vector<1x724xf32>, vector<1x60xf32> -> vector<1x784xf32>
    %44 = vector.extract_strided_slice %1 {offsets = [0, 84], sizes = [1, 700], strides = [1, 1]} : vector<1x784xf32> to vector<1x700xf32>
    %45 = vector.extract_strided_slice %1 {offsets = [0, 0], sizes = [1, 84], strides = [1, 1]} : vector<1x784xf32> to vector<1x84xf32>
    %46 = tpu.concatenate %44, %45 in 1 : vector<1x700xf32>, vector<1x84xf32> -> vector<1x784xf32>
    %47 = vector.extract_strided_slice %1 {offsets = [0, 85], sizes = [1, 699], strides = [1, 1]} : vector<1x784xf32> to vector<1x699xf32>
    %48 = vector.extract_strided_slice %1 {offsets = [0, 0], sizes = [1, 85], strides = [1, 1]} : vector<1x784xf32> to vector<1x85xf32>
    %49 = tpu.concatenate %47, %48 in 1 : vector<1x699xf32>, vector<1x85xf32> -> vector<1x784xf32>
    %50 = vector.extract_strided_slice %1 {offsets = [0, 86], sizes = [1, 698], strides = [1, 1]} : vector<1x784xf32> to vector<1x698xf32>
    %51 = vector.extract_strided_slice %1 {offsets = [0, 0], sizes = [1, 86], strides = [1, 1]} : vector<1x784xf32> to vector<1x86xf32>
    %52 = tpu.concatenate %50, %51 in 1 : vector<1x698xf32>, vector<1x86xf32> -> vector<1x784xf32>
    %53 = vector.extract_strided_slice %1 {offsets = [0, 87], sizes = [1, 697], strides = [1, 1]} : vector<1x784xf32> to vector<1x697xf32>
    %54 = vector.extract_strided_slice %1 {offsets = [0, 0], sizes = [1, 87], strides = [1, 1]} : vector<1x784xf32> to vector<1x87xf32>
    %55 = tpu.concatenate %53, %54 in 1 : vector<1x697xf32>, vector<1x87xf32> -> vector<1x784xf32>
    %56 = vector.extract_strided_slice %1 {offsets = [0, 88], sizes = [1, 696], strides = [1, 1]} : vector<1x784xf32> to vector<1x696xf32>
    %57 = vector.extract_strided_slice %1 {offsets = [0, 0], sizes = [1, 88], strides = [1, 1]} : vector<1x784xf32> to vector<1x88xf32>
    %58 = tpu.concatenate %56, %57 in 1 : vector<1x696xf32>, vector<1x88xf32> -> vector<1x784xf32>
    %59 = vector.extract_strided_slice %1 {offsets = [0, 112], sizes = [1, 672], strides = [1, 1]} : vector<1x784xf32> to vector<1x672xf32>
    %60 = vector.extract_strided_slice %1 {offsets = [0, 0], sizes = [1, 112], strides = [1, 1]} : vector<1x784xf32> to vector<1x112xf32>
    %61 = tpu.concatenate %59, %60 in 1 : vector<1x672xf32>, vector<1x112xf32> -> vector<1x784xf32>
    %62 = vector.extract_strided_slice %1 {offsets = [0, 113], sizes = [1, 671], strides = [1, 1]} : vector<1x784xf32> to vector<1x671xf32>
    %63 = vector.extract_strided_slice %1 {offsets = [0, 0], sizes = [1, 113], strides = [1, 1]} : vector<1x784xf32> to vector<1x113xf32>
    %64 = tpu.concatenate %62, %63 in 1 : vector<1x671xf32>, vector<1x113xf32> -> vector<1x784xf32>
    %65 = vector.extract_strided_slice %1 {offsets = [0, 114], sizes = [1, 670], strides = [1, 1]} : vector<1x784xf32> to vector<1x670xf32>
    %66 = vector.extract_strided_slice %1 {offsets = [0, 0], sizes = [1, 114], strides = [1, 1]} : vector<1x784xf32> to vector<1x114xf32>
    %67 = tpu.concatenate %65, %66 in 1 : vector<1x670xf32>, vector<1x114xf32> -> vector<1x784xf32>
    %68 = vector.extract_strided_slice %1 {offsets = [0, 115], sizes = [1, 669], strides = [1, 1]} : vector<1x784xf32> to vector<1x669xf32>
    %69 = vector.extract_strided_slice %1 {offsets = [0, 0], sizes = [1, 115], strides = [1, 1]} : vector<1x784xf32> to vector<1x115xf32>
    %70 = tpu.concatenate %68, %69 in 1 : vector<1x669xf32>, vector<1x115xf32> -> vector<1x784xf32>
    %71 = vector.extract_strided_slice %1 {offsets = [0, 116], sizes = [1, 668], strides = [1, 1]} : vector<1x784xf32> to vector<1x668xf32>
    %72 = vector.extract_strided_slice %1 {offsets = [0, 0], sizes = [1, 116], strides = [1, 1]} : vector<1x784xf32> to vector<1x116xf32>
    %73 = tpu.concatenate %71, %72 in 1 : vector<1x668xf32>, vector<1x116xf32> -> vector<1x784xf32>
    %74 = tpu.concatenate %1, %4, %7, %10, %13, %16, %19, %22, %25, %28, %31, %34, %37, %40, %43, %46 in 0 : vector<1x784xf32>, vector<1x784xf32>, vector<1x784xf32>, vector<1x784xf32>, vector<1x784xf32>, vector<1x784xf32>, vector<1x784xf32>, vector<1x784xf32>, vector<1x784xf32>, vector<1x784xf32>, vector<1x784xf32>, vector<1x784xf32>, vector<1x784xf32>, vector<1x784xf32>, vector<1x784xf32>, vector<1x784xf32> -> vector<16x784xf32>
    %75 = tpu.concatenate %49, %52, %55, %58, %61, %64, %67, %70, %73 in 0 : vector<1x784xf32>, vector<1x784xf32>, vector<1x784xf32>, vector<1x784xf32>, vector<1x784xf32>, vector<1x784xf32>, vector<1x784xf32>, vector<1x784xf32>, vector<1x784xf32> -> vector<9x784xf32>
    %76 = tpu.concatenate %74, %75 in 0 : vector<16x784xf32>, vector<9x784xf32> -> vector<25x784xf32>
    %c0_2 = arith.constant 0 : index
    %c0_3 = arith.constant 0 : index
    %77 = vector.load %arg2[%c0_2, %c0_3] : memref<10x25xf32, #tpu.memory_space<vmem>>, vector<10x25xf32>
    %cst = arith.constant dense<0.000000e+00> : vector<10x784xf32>
    %78 = tpu.matmul %77, %76, %cst {dimension_numbers = #tpu.dot_dimension_numbers<[1], [0], [0], [1], [0, 0, 1, 1], [], []>} : vector<10x25xf32>, vector<25x784xf32>, vector<10x784xf32> -> vector<10x784xf32>
    %c0_4 = arith.constant 0 : index
    %c0_5 = arith.constant 0 : index
    %79 = vector.load %arg3[%c0_4, %c0_5] : memref<10x1xf32, #tpu.memory_space<vmem>>, vector<10x1xf32>
    %80 = vector.broadcast %79 : vector<10x1xf32> to vector<10x784xf32>
    %81 = arith.addf %78, %80 : vector<10x784xf32>
    %82 = vector.extract_strided_slice %81 {offsets = [0, 1], sizes = [10, 783], strides = [1, 1]} : vector<10x784xf32> to vector<10x783xf32>
    %83 = vector.extract_strided_slice %81 {offsets = [0, 0], sizes = [10, 1], strides = [1, 1]} : vector<10x784xf32> to vector<10x1xf32>
    %84 = tpu.concatenate %82, %83 in 1 : vector<10x783xf32>, vector<10x1xf32> -> vector<10x784xf32>
    %85 = arith.maximumf %81, %84 : vector<10x784xf32>
    %86 = vector.extract_strided_slice %81 {offsets = [0, 28], sizes = [10, 756], strides = [1, 1]} : vector<10x784xf32> to vector<10x756xf32>
    %87 = vector.extract_strided_slice %81 {offsets = [0, 0], sizes = [10, 28], strides = [1, 1]} : vector<10x784xf32> to vector<10x28xf32>
    %88 = tpu.concatenate %86, %87 in 1 : vector<10x756xf32>, vector<10x28xf32> -> vector<10x784xf32>
    %89 = vector.extract_strided_slice %81 {offsets = [0, 29], sizes = [10, 755], strides = [1, 1]} : vector<10x784xf32> to vector<10x755xf32>
    %90 = vector.extract_strided_slice %81 {offsets = [0, 0], sizes = [10, 29], strides = [1, 1]} : vector<10x784xf32> to vector<10x29xf32>
    %91 = tpu.concatenate %89, %90 in 1 : vector<10x755xf32>, vector<10x29xf32> -> vector<10x784xf32>
    %92 = arith.maximumf %88, %91 : vector<10x784xf32>
    %93 = arith.maximumf %85, %92 : vector<10x784xf32>
    %cst_6 = arith.constant 0.000000e+00 : f32
    %94 = vector.broadcast %cst_6 : f32 to vector<10x784xf32>
    %95 = arith.maximumf %93, %94 : vector<10x784xf32>
    %c0_7 = arith.constant 0 : index
    %c0_8 = arith.constant 0 : index
    %96 = vector.load %arg6[%c0_7, %c0_8] : memref<784x144xf32, #tpu.memory_space<vmem>>, vector<784x144xf32>
    %cst_9 = arith.constant dense<0.000000e+00> : vector<10x144xf32>
    %97 = tpu.matmul %95, %96, %cst_9 {dimension_numbers = #tpu.dot_dimension_numbers<[1], [0], [0], [1], [0, 0, 1, 1], [], []>} : vector<10x784xf32>, vector<784x144xf32>, vector<10x144xf32> -> vector<10x144xf32>
    %98 = vector.extract_strided_slice %97 {offsets = [0, 1], sizes = [10, 143], strides = [1, 1]} : vector<10x144xf32> to vector<10x143xf32>
    %99 = vector.extract_strided_slice %97 {offsets = [0, 0], sizes = [10, 1], strides = [1, 1]} : vector<10x144xf32> to vector<10x1xf32>
    %100 = tpu.concatenate %98, %99 in 1 : vector<10x143xf32>, vector<10x1xf32> -> vector<10x144xf32>
    %101 = vector.extract_strided_slice %97 {offsets = [0, 2], sizes = [10, 142], strides = [1, 1]} : vector<10x144xf32> to vector<10x142xf32>
    %102 = vector.extract_strided_slice %97 {offsets = [0, 0], sizes = [10, 2], strides = [1, 1]} : vector<10x144xf32> to vector<10x2xf32>
    %103 = tpu.concatenate %101, %102 in 1 : vector<10x142xf32>, vector<10x2xf32> -> vector<10x144xf32>
    %104 = vector.extract_strided_slice %97 {offsets = [0, 3], sizes = [10, 141], strides = [1, 1]} : vector<10x144xf32> to vector<10x141xf32>
    %105 = vector.extract_strided_slice %97 {offsets = [0, 0], sizes = [10, 3], strides = [1, 1]} : vector<10x144xf32> to vector<10x3xf32>
    %106 = tpu.concatenate %104, %105 in 1 : vector<10x141xf32>, vector<10x3xf32> -> vector<10x144xf32>
    %107 = vector.extract_strided_slice %97 {offsets = [0, 4], sizes = [10, 140], strides = [1, 1]} : vector<10x144xf32> to vector<10x140xf32>
    %108 = vector.extract_strided_slice %97 {offsets = [0, 0], sizes = [10, 4], strides = [1, 1]} : vector<10x144xf32> to vector<10x4xf32>
    %109 = tpu.concatenate %107, %108 in 1 : vector<10x140xf32>, vector<10x4xf32> -> vector<10x144xf32>
    %110 = vector.extract_strided_slice %97 {offsets = [0, 12], sizes = [10, 132], strides = [1, 1]} : vector<10x144xf32> to vector<10x132xf32>
    %111 = vector.extract_strided_slice %97 {offsets = [0, 0], sizes = [10, 12], strides = [1, 1]} : vector<10x144xf32> to vector<10x12xf32>
    %112 = tpu.concatenate %110, %111 in 1 : vector<10x132xf32>, vector<10x12xf32> -> vector<10x144xf32>
    %113 = vector.extract_strided_slice %97 {offsets = [0, 13], sizes = [10, 131], strides = [1, 1]} : vector<10x144xf32> to vector<10x131xf32>
    %114 = vector.extract_strided_slice %97 {offsets = [0, 0], sizes = [10, 13], strides = [1, 1]} : vector<10x144xf32> to vector<10x13xf32>
    %115 = tpu.concatenate %113, %114 in 1 : vector<10x131xf32>, vector<10x13xf32> -> vector<10x144xf32>
    %116 = vector.extract_strided_slice %97 {offsets = [0, 14], sizes = [10, 130], strides = [1, 1]} : vector<10x144xf32> to vector<10x130xf32>
    %117 = vector.extract_strided_slice %97 {offsets = [0, 0], sizes = [10, 14], strides = [1, 1]} : vector<10x144xf32> to vector<10x14xf32>
    %118 = tpu.concatenate %116, %117 in 1 : vector<10x130xf32>, vector<10x14xf32> -> vector<10x144xf32>
    %119 = vector.extract_strided_slice %97 {offsets = [0, 15], sizes = [10, 129], strides = [1, 1]} : vector<10x144xf32> to vector<10x129xf32>
    %120 = vector.extract_strided_slice %97 {offsets = [0, 0], sizes = [10, 15], strides = [1, 1]} : vector<10x144xf32> to vector<10x15xf32>
    %121 = tpu.concatenate %119, %120 in 1 : vector<10x129xf32>, vector<10x15xf32> -> vector<10x144xf32>
    %122 = vector.extract_strided_slice %97 {offsets = [0, 16], sizes = [10, 128], strides = [1, 1]} : vector<10x144xf32> to vector<10x128xf32>
    %123 = vector.extract_strided_slice %97 {offsets = [0, 0], sizes = [10, 16], strides = [1, 1]} : vector<10x144xf32> to vector<10x16xf32>
    %124 = tpu.concatenate %122, %123 in 1 : vector<10x128xf32>, vector<10x16xf32> -> vector<10x144xf32>
    %125 = vector.extract_strided_slice %97 {offsets = [0, 24], sizes = [10, 120], strides = [1, 1]} : vector<10x144xf32> to vector<10x120xf32>
    %126 = vector.extract_strided_slice %97 {offsets = [0, 0], sizes = [10, 24], strides = [1, 1]} : vector<10x144xf32> to vector<10x24xf32>
    %127 = tpu.concatenate %125, %126 in 1 : vector<10x120xf32>, vector<10x24xf32> -> vector<10x144xf32>
    %128 = vector.extract_strided_slice %97 {offsets = [0, 25], sizes = [10, 119], strides = [1, 1]} : vector<10x144xf32> to vector<10x119xf32>
    %129 = vector.extract_strided_slice %97 {offsets = [0, 0], sizes = [10, 25], strides = [1, 1]} : vector<10x144xf32> to vector<10x25xf32>
    %130 = tpu.concatenate %128, %129 in 1 : vector<10x119xf32>, vector<10x25xf32> -> vector<10x144xf32>
    %131 = vector.extract_strided_slice %97 {offsets = [0, 26], sizes = [10, 118], strides = [1, 1]} : vector<10x144xf32> to vector<10x118xf32>
    %132 = vector.extract_strided_slice %97 {offsets = [0, 0], sizes = [10, 26], strides = [1, 1]} : vector<10x144xf32> to vector<10x26xf32>
    %133 = tpu.concatenate %131, %132 in 1 : vector<10x118xf32>, vector<10x26xf32> -> vector<10x144xf32>
    %134 = vector.extract_strided_slice %97 {offsets = [0, 27], sizes = [10, 117], strides = [1, 1]} : vector<10x144xf32> to vector<10x117xf32>
    %135 = vector.extract_strided_slice %97 {offsets = [0, 0], sizes = [10, 27], strides = [1, 1]} : vector<10x144xf32> to vector<10x27xf32>
    %136 = tpu.concatenate %134, %135 in 1 : vector<10x117xf32>, vector<10x27xf32> -> vector<10x144xf32>
    %137 = vector.extract_strided_slice %97 {offsets = [0, 28], sizes = [10, 116], strides = [1, 1]} : vector<10x144xf32> to vector<10x116xf32>
    %138 = vector.extract_strided_slice %97 {offsets = [0, 0], sizes = [10, 28], strides = [1, 1]} : vector<10x144xf32> to vector<10x28xf32>
    %139 = tpu.concatenate %137, %138 in 1 : vector<10x116xf32>, vector<10x28xf32> -> vector<10x144xf32>
    %140 = vector.extract_strided_slice %97 {offsets = [0, 36], sizes = [10, 108], strides = [1, 1]} : vector<10x144xf32> to vector<10x108xf32>
    %141 = vector.extract_strided_slice %97 {offsets = [0, 0], sizes = [10, 36], strides = [1, 1]} : vector<10x144xf32> to vector<10x36xf32>
    %142 = tpu.concatenate %140, %141 in 1 : vector<10x108xf32>, vector<10x36xf32> -> vector<10x144xf32>
    %143 = vector.extract_strided_slice %97 {offsets = [0, 37], sizes = [10, 107], strides = [1, 1]} : vector<10x144xf32> to vector<10x107xf32>
    %144 = vector.extract_strided_slice %97 {offsets = [0, 0], sizes = [10, 37], strides = [1, 1]} : vector<10x144xf32> to vector<10x37xf32>
    %145 = tpu.concatenate %143, %144 in 1 : vector<10x107xf32>, vector<10x37xf32> -> vector<10x144xf32>
    %146 = vector.extract_strided_slice %97 {offsets = [0, 38], sizes = [10, 106], strides = [1, 1]} : vector<10x144xf32> to vector<10x106xf32>
    %147 = vector.extract_strided_slice %97 {offsets = [0, 0], sizes = [10, 38], strides = [1, 1]} : vector<10x144xf32> to vector<10x38xf32>
    %148 = tpu.concatenate %146, %147 in 1 : vector<10x106xf32>, vector<10x38xf32> -> vector<10x144xf32>
    %149 = vector.extract_strided_slice %97 {offsets = [0, 39], sizes = [10, 105], strides = [1, 1]} : vector<10x144xf32> to vector<10x105xf32>
    %150 = vector.extract_strided_slice %97 {offsets = [0, 0], sizes = [10, 39], strides = [1, 1]} : vector<10x144xf32> to vector<10x39xf32>
    %151 = tpu.concatenate %149, %150 in 1 : vector<10x105xf32>, vector<10x39xf32> -> vector<10x144xf32>
    %152 = vector.extract_strided_slice %97 {offsets = [0, 40], sizes = [10, 104], strides = [1, 1]} : vector<10x144xf32> to vector<10x104xf32>
    %153 = vector.extract_strided_slice %97 {offsets = [0, 0], sizes = [10, 40], strides = [1, 1]} : vector<10x144xf32> to vector<10x40xf32>
    %154 = tpu.concatenate %152, %153 in 1 : vector<10x104xf32>, vector<10x40xf32> -> vector<10x144xf32>
    %155 = vector.extract_strided_slice %97 {offsets = [0, 48], sizes = [10, 96], strides = [1, 1]} : vector<10x144xf32> to vector<10x96xf32>
    %156 = vector.extract_strided_slice %97 {offsets = [0, 0], sizes = [10, 48], strides = [1, 1]} : vector<10x144xf32> to vector<10x48xf32>
    %157 = tpu.concatenate %155, %156 in 1 : vector<10x96xf32>, vector<10x48xf32> -> vector<10x144xf32>
    %158 = vector.extract_strided_slice %97 {offsets = [0, 49], sizes = [10, 95], strides = [1, 1]} : vector<10x144xf32> to vector<10x95xf32>
    %159 = vector.extract_strided_slice %97 {offsets = [0, 0], sizes = [10, 49], strides = [1, 1]} : vector<10x144xf32> to vector<10x49xf32>
    %160 = tpu.concatenate %158, %159 in 1 : vector<10x95xf32>, vector<10x49xf32> -> vector<10x144xf32>
    %161 = vector.extract_strided_slice %97 {offsets = [0, 50], sizes = [10, 94], strides = [1, 1]} : vector<10x144xf32> to vector<10x94xf32>
    %162 = vector.extract_strided_slice %97 {offsets = [0, 0], sizes = [10, 50], strides = [1, 1]} : vector<10x144xf32> to vector<10x50xf32>
    %163 = tpu.concatenate %161, %162 in 1 : vector<10x94xf32>, vector<10x50xf32> -> vector<10x144xf32>
    %164 = vector.extract_strided_slice %97 {offsets = [0, 51], sizes = [10, 93], strides = [1, 1]} : vector<10x144xf32> to vector<10x93xf32>
    %165 = vector.extract_strided_slice %97 {offsets = [0, 0], sizes = [10, 51], strides = [1, 1]} : vector<10x144xf32> to vector<10x51xf32>
    %166 = tpu.concatenate %164, %165 in 1 : vector<10x93xf32>, vector<10x51xf32> -> vector<10x144xf32>
    %167 = vector.extract_strided_slice %97 {offsets = [0, 52], sizes = [10, 92], strides = [1, 1]} : vector<10x144xf32> to vector<10x92xf32>
    %168 = vector.extract_strided_slice %97 {offsets = [0, 0], sizes = [10, 52], strides = [1, 1]} : vector<10x144xf32> to vector<10x52xf32>
    %169 = tpu.concatenate %167, %168 in 1 : vector<10x92xf32>, vector<10x52xf32> -> vector<10x144xf32>
    %170 = tpu.concatenate %97, %100, %103, %106, %109, %112, %115, %118, %121, %124, %127, %130, %133, %136, %139, %142 in 0 : vector<10x144xf32>, vector<10x144xf32>, vector<10x144xf32>, vector<10x144xf32>, vector<10x144xf32>, vector<10x144xf32>, vector<10x144xf32>, vector<10x144xf32>, vector<10x144xf32>, vector<10x144xf32>, vector<10x144xf32>, vector<10x144xf32>, vector<10x144xf32>, vector<10x144xf32>, vector<10x144xf32>, vector<10x144xf32> -> vector<160x144xf32>
    %171 = tpu.concatenate %145, %148, %151, %154, %157, %160, %163, %166, %169 in 0 : vector<10x144xf32>, vector<10x144xf32>, vector<10x144xf32>, vector<10x144xf32>, vector<10x144xf32>, vector<10x144xf32>, vector<10x144xf32>, vector<10x144xf32>, vector<10x144xf32> -> vector<90x144xf32>
    %172 = tpu.concatenate %170, %171 in 0 : vector<160x144xf32>, vector<90x144xf32> -> vector<250x144xf32>
    %c0_10 = arith.constant 0 : index
    %c0_11 = arith.constant 0 : index
    %173 = vector.load %arg4[%c0_10, %c0_11] : memref<20x250xf32, #tpu.memory_space<vmem>>, vector<20x250xf32>
    %cst_12 = arith.constant dense<0.000000e+00> : vector<20x144xf32>
    %174 = tpu.matmul %173, %172, %cst_12 {dimension_numbers = #tpu.dot_dimension_numbers<[1], [0], [0], [1], [0, 0, 1, 1], [], []>} : vector<20x250xf32>, vector<250x144xf32>, vector<20x144xf32> -> vector<20x144xf32>
    %c0_13 = arith.constant 0 : index
    %c0_14 = arith.constant 0 : index
    %175 = vector.load %arg5[%c0_13, %c0_14] : memref<20x1xf32, #tpu.memory_space<vmem>>, vector<20x1xf32>
    %176 = vector.broadcast %175 : vector<20x1xf32> to vector<20x144xf32>
    %177 = arith.addf %174, %176 : vector<20x144xf32>
    %178 = vector.extract_strided_slice %177 {offsets = [0, 1], sizes = [20, 143], strides = [1, 1]} : vector<20x144xf32> to vector<20x143xf32>
    %179 = vector.extract_strided_slice %177 {offsets = [0, 0], sizes = [20, 1], strides = [1, 1]} : vector<20x144xf32> to vector<20x1xf32>
    %180 = tpu.concatenate %178, %179 in 1 : vector<20x143xf32>, vector<20x1xf32> -> vector<20x144xf32>
    %181 = arith.maximumf %177, %180 : vector<20x144xf32>
    %182 = vector.extract_strided_slice %177 {offsets = [0, 12], sizes = [20, 132], strides = [1, 1]} : vector<20x144xf32> to vector<20x132xf32>
    %183 = vector.extract_strided_slice %177 {offsets = [0, 0], sizes = [20, 12], strides = [1, 1]} : vector<20x144xf32> to vector<20x12xf32>
    %184 = tpu.concatenate %182, %183 in 1 : vector<20x132xf32>, vector<20x12xf32> -> vector<20x144xf32>
    %185 = vector.extract_strided_slice %177 {offsets = [0, 13], sizes = [20, 131], strides = [1, 1]} : vector<20x144xf32> to vector<20x131xf32>
    %186 = vector.extract_strided_slice %177 {offsets = [0, 0], sizes = [20, 13], strides = [1, 1]} : vector<20x144xf32> to vector<20x13xf32>
    %187 = tpu.concatenate %185, %186 in 1 : vector<20x131xf32>, vector<20x13xf32> -> vector<20x144xf32>
    %188 = arith.maximumf %184, %187 : vector<20x144xf32>
    %189 = arith.maximumf %181, %188 : vector<20x144xf32>
    %cst_15 = arith.constant 0.000000e+00 : f32
    %190 = vector.broadcast %cst_15 : f32 to vector<20x144xf32>
    %191 = arith.maximumf %189, %190 : vector<20x144xf32>
    %c0_16 = arith.constant 0 : index
    %c0_17 = arith.constant 0 : index
    %192 = vector.load %arg7[%c0_16, %c0_17] : memref<144x16xf32, #tpu.memory_space<vmem>>, vector<144x16xf32>
    %cst_18 = arith.constant dense<0.000000e+00> : vector<20x16xf32>
    %193 = tpu.matmul %191, %192, %cst_18 {dimension_numbers = #tpu.dot_dimension_numbers<[1], [0], [0], [1], [0, 0, 1, 1], [], []>} : vector<20x144xf32>, vector<144x16xf32>, vector<20x16xf32> -> vector<20x16xf32>
    %c0_19 = arith.constant 0 : index
    %c0_20 = arith.constant 0 : index
    %c0_21 = arith.constant 0 : index
    %194 = vector.load %arg8[%c0_19, %c0_20, %c0_21] : memref<1x20x16xf32, #tpu.memory_space<vmem>>, vector<1x20x16xf32>
    %195 = vector.shape_cast %194 : vector<1x20x16xf32> to vector<20x16xf32>
    %196 = vector.shape_cast %193 : vector<20x16xf32> to vector<1x20x16xf32>
    tpu.vector_store %arg8[%c0_19, %c0_20, %c0_21], %196 {strides = array<i32>} : memref<1x20x16xf32, #tpu.memory_space<vmem>>, vector<1x20x16xf32>,
    return
  }
  func.func @transform_0(%arg0: i32) -> (i32, i32, i32) {
    %c0_i32 = arith.constant 0 : i32
    %c0_i32_0 = arith.constant 0 : i32
    %c0_i32_1 = arith.constant 0 : i32
    return %arg0, %c0_i32, %c0_i32_0 : i32, i32, i32
  }
  func.func @transform_1(%arg0: i32) -> (i32, i32) {
    %c0_i32 = arith.constant 0 : i32
    %c0_i32_0 = arith.constant 0 : i32
    %c0_i32_1 = arith.constant 0 : i32
    return %c0_i32, %c0_i32_0 : i32, i32
  }
  func.func @transform_2(%arg0: i32) -> (i32, i32) {
    %c0_i32 = arith.constant 0 : i32
    %c0_i32_0 = arith.constant 0 : i32
    %c0_i32_1 = arith.constant 0 : i32
    return %c0_i32, %c0_i32_0 : i32, i32
  }
  func.func @transform_3(%arg0: i32) -> (i32, i32) {
    %c0_i32 = arith.constant 0 : i32
    %c0_i32_0 = arith.constant 0 : i32
    %c0_i32_1 = arith.constant 0 : i32
    return %c0_i32, %c0_i32_0 : i32, i32
  }
  func.func @transform_4(%arg0: i32) -> (i32, i32) {
    %c0_i32 = arith.constant 0 : i32
    %c0_i32_0 = arith.constant 0 : i32
    %c0_i32_1 = arith.constant 0 : i32
    return %c0_i32, %c0_i32_0 : i32, i32
  }
  func.func @transform_5(%arg0: i32) -> (i32, i32) {
    %c0_i32 = arith.constant 0 : i32
    %c0_i32_0 = arith.constant 0 : i32
    %c0_i32_1 = arith.constant 0 : i32
    return %c0_i32, %c0_i32_0 : i32, i32
  }
  func.func @transform_6(%arg0: i32) -> (i32, i32) {
    %c0_i32 = arith.constant 0 : i32
    %c0_i32_0 = arith.constant 0 : i32
    %c0_i32_1 = arith.constant 0 : i32
    return %c0_i32, %c0_i32_0 : i32, i32
  }
  func.func @transform_7(%arg0: i32) -> (i32, i32, i32) {
    %c0_i32 = arith.constant 0 : i32
    %c0_i32_0 = arith.constant 0 : i32
    %c0_i32_1 = arith.constant 0 : i32
    return %arg0, %c0_i32, %c0_i32_0 : i32, i32, i32
  }
}

</mosaic_0001>

<bundles_post_ra>
// kernel: net_mnist_forward.3
= control target key start
LH: loop header
LB: loop body
LE: loop exit
PB: predicated region body
PF: predicated region fallthrough
CT: control target
= control target key end

     0   :  { %v519_v3 = vmov 0.0|0.0   ;;  %vm520_vm0 = vmmov 0   ;;  %v521_v4 = vmov 0.0   ;;  %vm70_vm1 = vcmask 523264   ;;  %s757_s1 = inlined_call_operand.vmem [shape: f32[320,128], index: 1, kind: input, shape index: {}]   ;;  %s758_s0 = inlined_call_operand.vmem [shape: f32[8,320], index: 0, kind: input, shape index: {}]   ;;  %s759_s3 = inlined_call_operand.vmem [shape: f32[128,10], index: 3, kind: input, shape index: {}]   ;;  %s760_s2 = inlined_call_operand.vmem [shape: f32[1,128], index: 2, kind: input, shape index: {}]   ;;  %s761_s4 = inlined_call_operand.vmem [shape: f32[1,10], index: 4, kind: input, shape index: {}]   ;;  %s762_s5 = inlined_call_operand.vmem [shape: f32[8,10], index: 5, kind: output, shape index: {}]  }
   0x1   :  { %v39_v0 = vld [vmem:[%s757_s1 + $0x80] sm:$0xff]  ;;  %v40_v1 = vld [vmem:[%s757_s1 + $0x88] sm:$0xff]  ;;  %476 = vmatprep.subr.bf16.mxu1 %v519_v3  ;;  %406 = vmatprep.mubr.msk.f32.mxu1 %vm520_vm0, %v521_v4  ;;  %v41_v7 = vld [vmem:[%s757_s1 + $0x90] sm:$0xff]  ;;  %vm308_vm2 = vcmask 80896  }
   0x2   :  { %v23_v2 = vld [vmem:[%s757_s1] sm:$0xff]  ;;  %v444_v5 = vpack.c.bf16 %v40_v1, %v39_v0  ;;  %v24_v6 = vld [vmem:[%s757_s1 + $0x8] sm:$0xff]  ;;  %v42_v8 = vld [vmem:[%s757_s1 + $0x98] sm:$0xff] }
   0x3   :  { %v446_v9 = vpack.c.bf16 %v24_v6, %v23_v2  ;;  %v448_v10 = vpack.c.bf16 %v42_v8, %v41_v7  ;;  %v25_v11 = vld [vmem:[%s757_s1 + $0x10] sm:$0xff]  ;;  %v26_v12 = vld [vmem:[%s757_s1 + $0x18] sm:$0xff]  ;;  %v43_v13 = vld [vmem:[%s757_s1 + $0xa0] sm:$0xff] }
   0x4   :  { %445 = vmatprep.subr.bf16.mxu0 %v444_v5  ;;  %v44_v14 = vld [vmem:[%s757_s1 + $0xa8] sm:$0xff]  ;;  %v450_v15 = vpack.c.bf16 %v26_v12, %v25_v11  ;;  %v27_v17 = vld [vmem:[%s757_s1 + $0x20] sm:$0xff]  ;;  %v45_v19 = vld [vmem:[%s757_s1 + $0xb0] sm:$0xff] }
   0x5   :  { %447 = vmatpush3.bf16.msra.mxu0 %v446_v9  ;;  %v452_v16 = vpack.c.bf16 %v44_v14, %v43_v13  ;;  %v28_v18 = vld [vmem:[%s757_s1 + $0x28] sm:$0xff]  ;;  %v46_v20 = vld [vmem:[%s757_s1 + $0xb8] sm:$0xff]  ;;  %v55_v22 = vld [vmem:[%s757_s1 + $0x100] sm:$0xff] }
   0x6   :  { %449 = vmatprep.subr.bf16.mxu0 %v448_v10  ;;  %v454_v21 = vpack.c.bf16 %v28_v18, %v27_v17  ;;  %v56_v23 = vld [vmem:[%s757_s1 + $0x108] sm:$0xff]  ;;  %v456_v24 = vpack.c.bf16 %v46_v20, %v45_v19  ;;  %v29_v25 = vld [vmem:[%s757_s1 + $0x30] sm:$0xff]  ;;  %v30_v26 = vld [vmem:[%s757_s1 + $0x38] sm:$0xff] }
   0x7   :  { %v47_v27 = vld [vmem:[%s757_s1 + $0xc0] sm:$0xff]  ;;  %v477_v28 = vpack.c.bf16 %v56_v23, %v55_v22  ;;  %v48_v29 = vld [vmem:[%s757_s1 + $0xc8] sm:$0xff]  ;;  %v57_v30 = vld [vmem:[%s757_s1 + $0x110] sm:$0xff]  ;;  %v458_v33 = vpack.c.bf16 %v30_v26, %v29_v25 }
   0x8   :  { %v58_v31 = vld [vmem:[%s757_s1 + $0x118] sm:$0xff]  ;;  %v59_v34 = vld [vmem:[%s757_s1 + $0x120] sm:$0xff]  ;;  %v60_v35 = vld [vmem:[%s757_s1 + $0x128] sm:$0xff]  ;;  %v460_v37 = vpack.c.bf16 %v48_v29, %v47_v27 }
   0x9   :  { %451 = vmatpush3.bf16.msra.mxu0 %v450_v15  ;;  %478 = vmatpush3.bf16.msra.mxu1 %v477_v28  ;;  %v480_v32 = vpack.c.bf16 %v58_v31, %v57_v30  ;;  %v21_v36 = vld [vmem:[%s758_s0 + $0x8] sm:$0xff]  ;;  %v31_v38 = vld [vmem:[%s757_s1 + $0x40] sm:$0xff]  ;;  %v49_v40 = vld [vmem:[%s757_s1 + $0xd0] sm:$0xff]  ;;  %v483_v42 = vpack.c.bf16 %v60_v35, %v59_v34 }
   0xa   :  { %453 = vmatprep.subr.bf16.mxu0 %v452_v16  ;;  %479 = vmatprep.subr.bf16.mxu1 %v519_v3  ;;  %v32_v39 = vld [vmem:[%s757_s1 + $0x48] sm:$0xff]  ;;  %v50_v41 = vld [vmem:[%s757_s1 + $0xd8] sm:$0xff]  ;;  %v61_v44 = vld [vmem:[%s757_s1 + $0x130] sm:$0xff] }
   0xb   :  { %138 = vmatprep.mubr.f32.mxu0 %v21_v36  ;;  %v462_v43 = vpack.c.bf16 %v32_v39, %v31_v38  ;;  %v62_v45 = vld [vmem:[%s757_s1 + $0x138] sm:$0xff]  ;;  %v464_v46 = vpack.c.bf16 %v50_v41, %v49_v40  ;;  %v33_v47 = vld [vmem:[%s757_s1 + $0x50] sm:$0xff]  ;;  %v51_v49 = vld [vmem:[%s757_s1 + $0xe0] sm:$0xff] }
   0xc   :  { %v34_v48 = vld [vmem:[%s757_s1 + $0x58] sm:$0xff]  ;;  %v52_v50 = vld [vmem:[%s757_s1 + $0xe8] sm:$0xff]  ;;  %v486_v51 = vpack.c.bf16 %v62_v45, %v61_v44  ;;  %v215_v53 = vld [vmem:[%s759_s3] sm:$0xff] }
   0xd   :  { %455 = vmatpush3.bf16.msra.mxu0 %v454_v21  ;;  %481 = vmatpush3.bf16.msra.mxu1 %v480_v32  ;;  %v466_v52 = vpack.c.bf16 %v34_v48, %v33_v47  ;;  %v216_v54 = vld [vmem:[%s759_s3 + $0x8] sm:$0xff]  ;;  %v468_v55 = vpack.c.bf16 %v52_v50, %v51_v49  ;;  %v35_v56 = vld [vmem:[%s757_s1 + $0x60] sm:$0xff]  ;;  %v53_v58 = vld [vmem:[%s757_s1 + $0xf0] sm:$0xff] }
   0xe   :  { %457 = vmatprep.subr.bf16.mxu0 %v456_v24  ;;  %482 = vmatprep.subr.bf16.mxu1 %v519_v3  ;;  %v36_v57 = vld [vmem:[%s757_s1 + $0x68] sm:$0xff]  ;;  %v54_v59 = vld [vmem:[%s757_s1 + $0xf8] sm:$0xff]  ;;  %v22_v60 = vld [vmem:[%s758_s0 + $0x10] sm:$0xff]  ;;  %v489_v61 = vpack.c.bf16 %v216_v54, %v215_v53 }
   0xf   :  { %v470_v62 = vpack.c.bf16 %v36_v57, %v35_v56  ;;  %v217_v63 = vld [vmem:[%s759_s3 + $0x10] sm:$0xff]  ;;  %v218_v0 = vld [vmem:[%s759_s3 + $0x18] sm:$0xff]  ;;  %v472_v1 = vpack.c.bf16 %v54_v59, %v53_v58  ;;  %v219_v8 = vld [vmem:[%s759_s3 + $0x20] sm:$0xff] }
  0x10   :  { %v37_v2 = vld [vmem:[%s757_s1 + $0x70] sm:$0xff]  ;;  %v38_v5 = vld [vmem:[%s757_s1 + $0x78] sm:$0xff]  ;;  %v492_v6 = vpack.c.bf16 %v218_v0, %v217_v63  ;;  %v220_v9 = vld [vmem:[%s759_s3 + $0x28] sm:$0xff] }
  0x11   :  { %459 = vmatpush3.bf16.msra.mxu0 %v458_v33  ;;  %484 = vmatpush3.bf16.msra.mxu1 %v483_v42  ;;  %v474_v7 = vpack.c.bf16 %v38_v5, %v37_v2  ;;  %v495_v10 = vpack.c.bf16 %v220_v9, %v219_v8  ;;  %v221_v11 = vld [vmem:[%s759_s3 + $0x30] sm:$0xff]  ;;  %v222_v12 = vld [vmem:[%s759_s3 + $0x38] sm:$0xff]  ;;  %v223_v14 = vld [vmem:[%s759_s3 + $0x40] sm:$0xff] }
  0x12   :  { %461 = vmatprep.subr.bf16.mxu0 %v460_v37  ;;  %485 = vmatprep.subr.bf16.mxu1 %v519_v3  ;;  %v498_v13 = vpack.c.bf16 %v222_v12, %v221_v11  ;;  %v224_v15 = vld [vmem:[%s759_s3 + $0x48] sm:$0xff]  ;;  %v225_v17 = vld [vmem:[%s759_s3 + $0x50] sm:$0xff]  ;;  %v226_v18 = vld [vmem:[%s759_s3 + $0x58] sm:$0xff] }
  0x13   :  { %v501_v16 = vpack.c.bf16 %v224_v15, %v223_v14  ;;  %v504_v19 = vpack.c.bf16 %v226_v18, %v225_v17  ;;  %v227_v20 = vld [vmem:[%s759_s3 + $0x60] sm:$0xff]  ;;  %v228_v21 = vld [vmem:[%s759_s3 + $0x68] sm:$0xff]  ;;  %v229_v23 = vld [vmem:[%s759_s3 + $0x70] sm:$0xff] }
  0x14   :  { %v507_v22 = vpack.c.bf16 %v228_v21, %v227_v20  ;;  %v230_v24 = vld [vmem:[%s759_s3 + $0x78] sm:$0xff]  ;;  %v326_v30 = vld [vmem:[%s760_s2] ss:$0 sm:$0xff] }
  0x15   :  { %463 = vmatpush3.bf16.msra.mxu0 %v462_v43  ;;  %487 = vmatpush3.bf16.msra.mxu1 %v486_v51  ;;  %v510_v25 = vpack.c.bf16 %v230_v24, %v229_v23  ;;  %v328_v34 = vld [vmem:[%s761_s4] ss:$0 sm:$0xff] }
  0x16   :  { %465 = vmatprep.subr.bf16.mxu0 %v464_v46  ;;  %488 = vmatprep.subr.bf16.mxu1 %v519_v3 }
  0x18   :  { %407 = vmatmul.mubr.msk.f32.vlgmr.msra.gmra.mrb[0].mxu1 %vm70_vm1, %v22_v60 }
  0x19   :  { %467 = vmatpush3.bf16.msra.mxu0 %v466_v52  ;;  %490 = vmatpush3.bf16.msra.mxu1 %v489_v61 }
  0x1a   :  { %469 = vmatprep.subr.bf16.mxu0 %v468_v55  ;;  %441 = vmatprep.mubr.msk.f32.mxu1 %vm520_vm0, %v521_v4  ;;  %v20_v4 = vld [vmem:[%s758_s0] sm:$0xff] }
  0x1b   :  { %491 = vmatprep.subr.bf16.mxu1 %v519_v3 }
  0x1d   :  { %471 = vmatpush3.bf16.msra.mxu0 %v470_v62  ;;  %493 = vmatpush3.bf16.msra.mxu1 %v492_v6 }
  0x1e   :  { %473 = vmatprep.subr.bf16.mxu0 %v472_v1  ;;  %494 = vmatprep.subr.bf16.mxu1 %v519_v3 }
  0x21   :  { %475 = vmatpush3.bf16.msra.mxu0 %v474_v7  ;;  %496 = vmatpush3.bf16.msra.mxu1 %v495_v10 }
  0x22   :  { %497 = vmatprep.subr.bf16.mxu1 %v519_v3 }
  0x24   :  { %139 = vmatmul.mubr.f32.vlgmr.msra.gmra.mrb[0].mxu0 %v20_v4 }
  0x25   :  { %499 = vmatpush3.bf16.msra.mxu1 %v498_v13 }
  0x26   :  { %500 = vmatprep.subr.bf16.mxu1 %v519_v3 }
  0x29   :  { %502 = vmatpush3.bf16.msra.mxu1 %v501_v16 }
  0x2a   :  { %503 = vmatprep.subr.bf16.mxu1 %v519_v3 }
  0x2d   :  { %505 = vmatpush3.bf16.msra.mxu1 %v504_v19 }
  0x2e   :  { %506 = vmatprep.subr.bf16.mxu1 %v519_v3 }
  0x31   :  { %508 = vmatpush3.bf16.msra.mxu1 %v507_v22 }
  0x32   :  { %509 = vmatprep.subr.bf16.mxu1 %v519_v3 }
  0x35   :  { %511 = vmatpush3.bf16.msra.mxu1 %v510_v25 }
  0xeb   :  { %v210_v26 = vpop.f32.mrb[0].mxu1 }
  0xec   :  { %v408_v27 = vpop.f32.mrb[1].mxu1 }
  0xf7   :  { %v361_v28 = vpop.f32.mrb[0].mxu0 }
  0xf8   :  { %v362_v29 = vpop.f32.mrb[1].mxu0 }
  0xf9   :  { %v363_v31 = vadd.f32 %v362_v29, %v361_v28 }
  0xfb   :  { %v141_v3 = vadd.f32 %v363_v31, %v326_v30 }
  0xfd   :  { %v211_v32 = vadd.f32 %v210_v26, %v141_v3 }
  0xff   :  { %v214_v33 = vmax.f32 %v211_v32, 0.0 }
 0x101   :  { %442 = vmatmul.mubr.f32.vlgmr.msra.gmra.mrb[2].mxu1 %v214_v33 }
 0x1d4   :  { %v304_v35 = vpop.f32.mrb[2].mxu1 }
 0x1d5   :  { %v305_v36 = vadd.f32 %v328_v34, %v304_v35  ;;  %v443_v37 = vpop.f32.mrb[3].mxu1 }
 0x1d7   :  { %v309_v38 = vsel %vm308_vm2, %v305_v36, -inf }
 0x1d8   :  { %310 = vmax.xlane.f32.xlu0 %v309_v38 }
 0x265   :  { %v311_v39 = vpop.xlane.xlu0 %310 }
 0x266   :  { %v312_v40 = vsub.f32 %v305_v36, %v311_v39 }
 0x268   :  { %v313_v41 = vmul.f32 1.442695, %v312_v40 }
 0x26a   :  { %515 = vpow2.f32 %v313_v41 }
 0x274   :  { %v516_v42 = vpop.eup %515 }
 0x275   :  { %v315_v43 = vsel %vm308_vm2, %v516_v42, 0.0 }
 0x276   :  { %316 = vadd.xlane.f32.xlu0 %v315_v43 }
 0x303   :  { %v317_v44 = vpop.xlane.xlu0 %316 }
 0x304   :  { %517 = vlog2.f32 %v317_v44 }
 0x30e   :  { %v518_v45 = vpop.eup %517 }
 0x30f   :  { %v319_v46 = vmul.f32 0.6931472, %v518_v45 }
 0x311   :  { %v320_v47 = vsub.f32 %v312_v40, %v319_v46 }
 0x313   :  { %321 = vst.msk [vmem:[%s762_s5] sm:$0xff] %vm308_vm2, %v320_v47 }

// kernel: net_mnist_forward.2
= control target key start
LH: loop header
LB: loop body
LE: loop exit
PB: predicated region body
PF: predicated region fallthrough
CT: control target
= control target key end

     0   :  { %s5101_s24 = smov 0   ;;  %s8477_s0 = inlined_call_operand.vmem [shape: f32[2,1,784], index: 0, kind: input, shape index: {}]   ;;  %s8478_s1 = inlined_call_operand.vmem [shape: f32[10,25], index: 1, kind: input, shape index: {}]   ;;  %s8479_s2 = inlined_call_operand.vmem [shape: f32[10,1], index: 2, kind: input, shape index: {}]   ;;  %s8480_s3 = inlined_call_operand.vmem [shape: f32[20,250], index: 3, kind: input, shape index: {}]   ;;  %s8481_s4 = inlined_call_operand.vmem [shape: f32[20,1], index: 4, kind: input, shape index: {}]   ;;  %s8482_s5 = inlined_call_operand.vmem [shape: f32[784,144], index: 5, kind: input, shape index: {}]   ;;  %s8483_s6 = inlined_call_operand.vmem [shape: f32[144,16], index: 6, kind: input, shape index: {}]   ;;  %s8484_s7 = inlined_call_operand.vmem [shape: f32[2,20,16], index: 7, kind: output, shape index: {}]  }
   0x1 LB: > { %s3693_s25 = sadd.s32 4294967295, %s4983_s24   ;;  %p3697_p0 = scmp.ge.s32.totalorder %s4983_s24, 1  ;;  %s4983_s24 = sphi %s5101_s24, %s17_s24  }
   0x2   : > { %p236_p1 = scmp.lt.s32.totalorder %s4983_s24, 3 }
   0x4   : > { %p237_p2 = pnand %p3697_p0, %p236_p1 }
   0x6   : > { %240 = sbr.rel (%p237_p2) target bundleno = 1910 (0x776), region = 48 }
   0xd   : > { %p267_p3 = scmp.lt.s32.totalorder %s3693_s25, 1  ;;  %v278_v0 = vlaneseq  ;;  %s8485_s30 = smov 127   ;;  %vm8505_vm0 = vcmask 1039360   ;;  %vm1169_vm1 = vcmask 1040384   ;;  %vm8498_vm2 = vcmask 1031168  }
   0xe   : > { %s8490_s8 = smov 96   ;;  %s8487_s9 = smov 126   ;;  %v8494_v35 = vmov 0.0   ;;  %vm1177_vm3 = vcmask 1041408   ;;  %vm8502_vm4 = vcmask 785408   ;;  %vm8500_vm5 = vcmask 1022976  }
   0xf   : > { %s9093_s25 = smov (!%p267_p3, %s3693_s25), 1  ;;  %v279_v1 = vshrl.u32 %v278_v0, 7  ;;  %s4988_s10 = smov 72   ;;  %1528 = vmatprep.mubr.f32.mxu0 %v8494_v35  ;;  %vm8504_vm6 = vcmask 588800   ;;  %vm8591_vm7 = vcmask 1042432   ;;  %vm8503_vm8 = vcmask 793600  }
  0x10   : > { %s4084_s26 = smul.u32 7, %s9093_s25  ;;  %s4989_s11 = smov 125   ;;  %vm8516_vm9 = vcmask 580608   ;;  %vm8506_vm10 = vcmask 1014784   ;;  %vm8515_vm11 = vcmask 572416   ;;  %vm1193_vm12 = vcmask 1043456  }
  0x11   : > { %v280_v2 = vsub.s32 0, %v279_v1  ;;  %v284_v3 = vsub.s32 1, %v279_v1  ;;  %v288_v4 = vsub.s32 2, %v279_v1  ;;  %v292_v5 = vsub.s32 3, %v279_v1  ;;  %s4990_s12 = smov 97   ;;  %s4991_s13 = smov 71  }
  0x12   : > { %v296_v6 = vsub.s32 4, %v279_v1  ;;  %v300_v7 = vsub.s32 5, %v279_v1  ;;  %s270_s29 = scalar_lea.vmem %s8477_s0, %s4084_s26  ;;  %v304_v17 = vsub.s32 6, %v279_v1  ;;  %s4992_s14 = smov 124   ;;  %vm8513_vm13 = vcmask 818176  }
  0x13   : > { %v276_v8 = vld [vmem:[%s270_s29] sm:$0x7f]  ;;  %s4993_s15 = smov 70   ;;  %s4994_s16 = smov 100   ;;  %vm8582_vm14 = vcmask 1044480   ;;  %vm8558_vm15 = vcmask 564224  }
  0x14   : > { %v5115_v9 = vrot.slane %v276_v8, %v284_v3  ;;  %v5117_v10 = vrot.slane %v276_v8, %v288_v4  ;;  %v5119_v11 = vrot.slane %v276_v8, %v280_v2  ;;  %v5121_v12 = vrot.slane %v276_v8, %v292_v5  ;;  %s4995_s17 = smov 69   ;;  %s8489_s18 = smov 42  }
  0x15   : > { %v5123_v13 = vrot.slane %v276_v8, %v296_v6  ;;  %v5125_v14 = vrot.slane %v276_v8, %v300_v7  ;;  %v5151_v18 = vrot.slane %v276_v8, %v304_v17  ;;  %s4997_s19 = smov 99   ;;  %s4998_s20 = smov 68  }
  0x16   : > { %v5129_v15 = vpack.i.bf16 %v5117_v10, %v5115_v9  ;;  %v5133_v16 = vpack.i.bf16 %v5121_v12, %v5119_v11  ;;  %s4999_s21 = smov 41   ;;  %s5000_s22 = smov 98  }
  0x17   : > { %s5001_s23 = smov 44   ;;  %s5002_s26 = smov 43   ;;  %v5215_v19 = vpack.i.bf16 %v5125_v14, %v5123_v13 }
  0x18   : > { %4171 = vrot.lane.b32.xlu0 %v5129_v15, %s8485_s30  ;;  %4181 = vrot.lane.b32.xlu1 %v5133_v16, %s8485_s30  ;;  %s5003_s27 = smov 40   ;;  %s8491_s28 = smov 16  }
  0x19   : > { %s8604_s29 = smov 15  }
  0x1c   : > { %4176 = vrot.lane.b32.xlu0 %v5129_v15, %s8490_s8  ;;  %4186 = vrot.lane.b32.xlu1 %v5129_v15, %s8487_s9 }
  0x20   : > { %4191 = vrot.lane.b32.xlu0 %v5133_v16, %s8490_s8  ;;  %4196 = vrot.lane.b32.xlu1 %v5129_v15, %s4988_s10 }
  0x24   : > { %4201 = vrot.lane.b32.xlu0 %v5133_v16, %s8487_s9  ;;  %4206 = vrot.lane.b32.xlu1 %v5129_v15, %s4989_s11 }
  0x28   : > { %4211 = vrot.lane.b32.xlu0 %v5129_v15, %s4990_s12  ;;  %4216 = vrot.lane.b32.xlu1 %v5133_v16, %s4988_s10 }
  0x2c   : > { %4221 = vrot.lane.b32.xlu0 %v5129_v15, %s4991_s13  ;;  %4226 = vrot.lane.b32.xlu1 %v5133_v16, %s4989_s11 }
  0x30   : > { %4231 = vrot.lane.b32.xlu0 %v5129_v15, %s4992_s14  ;;  %4236 = vrot.lane.b32.xlu1 %v5133_v16, %s4990_s12 }
  0x34   : > { %4241 = vrot.lane.b32.xlu0 %v5133_v16, %s4991_s13  ;;  %4246 = vrot.lane.b32.xlu1 %v5129_v15, %s4993_s15 }
  0x38   : > { %4251 = vrot.lane.b32.xlu0 %v5133_v16, %s4992_s14  ;;  %4256 = vrot.lane.b32.xlu1 %v5129_v15, %s4994_s16 }
  0x3c   : > { %4261 = vrot.lane.b32.xlu0 %v5133_v16, %s4993_s15  ;;  %4266 = vrot.lane.b32.xlu1 %v5129_v15, %s4995_s17 }
  0x40   : > { %4271 = vrot.lane.b32.xlu0 %v5129_v15, %s8489_s18  ;;  %4276 = vrot.lane.b32.xlu1 %v5133_v16, %s4994_s16 }
  0x44   : > { %4281 = vrot.lane.b32.xlu0 %v5129_v15, %s4997_s19  ;;  %4286 = vrot.lane.b32.xlu1 %v5133_v16, %s4995_s17 }
  0x48   : > { %4291 = vrot.lane.b32.xlu0 %v5129_v15, %s4998_s20  ;;  %4296 = vrot.lane.b32.xlu1 %v5133_v16, %s8489_s18 }
  0x4c   : > { %4301 = vrot.lane.b32.xlu0 %v5129_v15, %s4999_s21  ;;  %4306 = vrot.lane.b32.xlu1 %v5133_v16, %s4997_s19 }
  0x50   : > { %4311 = vrot.lane.b32.xlu0 %v5129_v15, %s5000_s22  ;;  %4316 = vrot.lane.b32.xlu1 %v5133_v16, %s4998_s20 }
  0x54   : > { %4321 = vrot.lane.b32.xlu0 %v5129_v15, %s5001_s23  ;;  %4326 = vrot.lane.b32.xlu1 %v5129_v15, %s5002_s26 }
  0x58   : > { %4331 = vrot.lane.b32.xlu0 %v5133_v16, %s4999_s21  ;;  %4336 = vrot.lane.b32.xlu1 %v5129_v15, %s5003_s27 }
  0x5c   : > { %4341 = vrot.lane.b32.xlu0 %v5133_v16, %s5000_s22  ;;  %4346 = vrot.lane.b32.xlu1 %v5133_v16, %s5001_s23 }
  0x60   : > { %4351 = vrot.lane.b32.xlu0 %v5133_v16, %s5002_s26  ;;  %4356 = vrot.lane.b32.xlu1 %v5133_v16, %s5003_s27 }
  0x64   : > { %4361 = vrot.lane.b32.xlu0 %v5129_v15, %s8491_s28  ;;  %4366 = vrot.lane.b32.xlu1 %v5215_v19, %s8485_s30  ;;  %s8598_s30 = smov 14  }
  0x68   : > { %4371 = vrot.lane.b32.xlu0 %v5215_v19, %s8490_s8  ;;  %4376 = vrot.lane.b32.xlu1 %v5133_v16, %s8491_s28 }
  0x6c   : > { %4381 = vrot.lane.b32.xlu0 %v5129_v15, %s8604_s29  ;;  %4386 = vrot.lane.b32.xlu1 %v5133_v16, %s8604_s29 }
  0x70   : > { %4391 = vrot.lane.b32.xlu0 %v5215_v19, %s8487_s9  ;;  %4396 = vrot.lane.b32.xlu1 %v5215_v19, %s4988_s10  ;;  %s8596_s9 = smov 13  }
  0x74   : > { %4401 = vrot.lane.b32.xlu0 %v5129_v15, %s8598_s30  ;;  %4406 = vrot.lane.b32.xlu1 %v5133_v16, %s8598_s30 }
  0x78   : > { %4411 = vrot.lane.b32.xlu0 %v5215_v19, %s4989_s11  ;;  %4416 = vrot.lane.b32.xlu1 %v5215_v19, %s4990_s12 }
  0x7c   : > { %4421 = vrot.lane.b32.xlu0 %v5215_v19, %s4991_s13  ;;  %4426 = vrot.lane.b32.xlu1 %v5129_v15, %s8596_s9 }
  0x80   : > { %4431 = vrot.lane.b32.xlu0 %v5133_v16, %s8596_s9  ;;  %4436 = vrot.lane.b32.xlu1 %v5215_v19, %s4992_s14 }
  0x84   : > { %4441 = vrot.lane.b32.xlu0 %v5215_v19, %s4993_s15  ;;  %4446 = vrot.lane.b32.xlu1 %v5215_v19, %s4994_s16 }
  0x88   : > { %4451 = vrot.lane.b32.xlu0 %v5215_v19, %s4995_s17  ;;  %4456 = vrot.lane.b32.xlu1 %v5215_v19, %s8489_s18  ;;  %s8597_s18 = smov 12  }
  0x8a   : > { %v5257_v20 = vpop.permute.xlu0 %4171  ;;  %v5259_v21 = vpop.permute.xlu1 %4181 }
  0x8b   : > { %v4174_v24 = vunpack.i.h.bf16 %v5257_v20  ;;  %v4184_v25 = vunpack.i.h.bf16 %v5259_v21  ;;  %v4173_v59 = vunpack.i.l.bf16 %v5257_v20  ;;  %v4183_v1 = vunpack.i.l.bf16 %v5259_v21 }
  0x8c   : > { %4461 = vrot.lane.b32.xlu0 %v5215_v19, %s4997_s19  ;;  %4466 = vrot.lane.b32.xlu1 %v5215_v19, %s4998_s20 }
  0x8d   : > { %v323_v28 = vsel %vm8505_vm0, %v4174_v24, %v4184_v25  ;;  %v322_v5 = vsel %vm8505_vm0, %v4173_v59, %v4174_v24 }
  0x8e   : > { %v5265_v22 = vpop.permute.xlu0 %4176  ;;  %v5267_v23 = vpop.permute.xlu1 %4186  ;;  %v962_v31 = vrot.slane %v323_v28, 7  ;;  %v961_v20 = vrot.slane %v322_v5, 7 }
  0x8f   : > { %v4189_v32 = vunpack.i.h.bf16 %v5267_v23  ;;  %v4179_v45 = vunpack.i.h.bf16 %v5265_v22  ;;  %v4178_v24 = vunpack.i.l.bf16 %v5265_v22 }
  0x90   : > { %4471 = vrot.lane.b32.xlu0 %v5215_v19, %s4999_s21  ;;  %4476 = vrot.lane.b32.xlu1 %v5129_v15, %s8597_s18  ;;  %v1172_v39 = vsel %vm1169_vm1, %v5117_v10, %v962_v31  ;;  %v321_v15 = vsel %vm8505_vm0, %v4183_v1, %v4173_v59  ;;  %v4188_v31 = vunpack.i.l.bf16 %v5267_v23  ;;  %vm8576_vm0 = vcmask 1046528  }
  0x91   : > { %v543_v59 = vsel %vm8502_vm4, %v4178_v24, %v4179_v45 }
  0x92   : > { %v5275_v26 = vpop.permute.xlu0 %4191  ;;  %v5277_v27 = vpop.permute.xlu1 %4196  ;;  %v1066_v5 = vrot.slane %v543_v59, 7 }
  0x93   : > { %v4194_v41 = vunpack.i.h.bf16 %v5275_v26  ;;  %v4199_v48 = vunpack.i.h.bf16 %v5277_v27 }
  0x94   : > { %4481 = vrot.lane.b32.xlu0 %v5133_v16, %s8597_s18  ;;  %4486 = vrot.lane.b32.xlu1 %v5215_v19, %s5000_s22 }
  0x95   : > { %v544_v49 = vsel %vm8502_vm4, %v4179_v45, %v4194_v41 }
  0x96   : > { %v5288_v29 = vpop.permute.xlu0 %4201  ;;  %v5290_v30 = vpop.permute.xlu1 %4206  ;;  %v1067_v57 = vrot.slane %v544_v49, 7 }
  0x97   : > { %v8514_v33 = vunpack.i.h.bf16 %v5288_v29  ;;  %v4209_v46 = vunpack.i.h.bf16 %v5290_v30 }
  0x98   : > { %4491 = vrot.lane.b32.xlu0 %v5215_v19, %s5001_s23  ;;  %4496 = vrot.lane.b32.xlu1 %v5215_v19, %s5002_s26 }
  0x99   : > { %v350_v34 = vsel %vm8498_vm2, %v4189_v32, %v8514_v33 }
  0x9a   : > { %v977_v36 = vrot.slane %v350_v34, 6  ;;  %v5304_v37 = vpop.permute.xlu0 %4211  ;;  %v5306_v38 = vpop.permute.xlu1 %4216 }
  0x9b   : > { %v8512_v42 = vunpack.i.h.bf16 %v5306_v38  ;;  %v4214_v55 = vunpack.i.h.bf16 %v5304_v37  ;;  %v4213_v1 = vunpack.i.l.bf16 %v5304_v37 }
  0x9c   : > { %v1180_v40 = vsel %vm1177_vm3, %v1172_v39, %v977_v36  ;;  %4501 = vrot.lane.b32.xlu0 %v5215_v19, %s5003_s27  ;;  %539 = vrot.lane.b32.xlu1 %v5151_v18, %s8490_s8  ;;  %s8653_s8 = smov 127   ;;  %v960_v36 = vrot.slane %v321_v15, 7  ;;  %v4203_v39 = vunpack.i.l.bf16 %v5288_v29 }
  0x9d   : > { %v571_v51 = vsel %vm8504_vm6, %v4199_v48, %v8512_v42 }
  0x9e   : > { %v5317_v43 = vpop.permute.xlu0 %4221  ;;  %v5319_v44 = vpop.permute.xlu1 %4226  ;;  %v1082_v60 = vrot.slane %v571_v51, 6  ;;  %v1170_v45 = vsel %vm1169_vm1, %v5119_v11, %v960_v36 }
  0x9f   : > { %v8509_v47 = vunpack.i.h.bf16 %v5319_v44  ;;  %v4224_v2 = vunpack.i.h.bf16 %v5317_v43  ;;  %v4228_v36 = vunpack.i.l.bf16 %v5319_v44 }
  0xa0   : > { %4506 = vrot.lane.b32.xlu0 %v5215_v19, %s8491_s28  ;;  %318 = vrot.lane.b32.xlu1 %v5151_v18, %s8653_s8  ;;  %s8492_s28 = smov 112  }
  0xa1   : > { %v377_v50 = vsel %vm8500_vm5, %v4209_v46, %v8509_v47 }
  0xa2   : > { %v992_v52 = vrot.slane %v377_v50, 5  ;;  %v5344_v53 = vpop.permute.xlu0 %4231  ;;  %v5346_v54 = vpop.permute.xlu1 %4236 }
  0xa3   : > { %v8511_v56 = vunpack.i.h.bf16 %v5346_v54  ;;  %v4234_v16 = vunpack.i.h.bf16 %v5344_v53 }
  0xa4   : > { %v1188_v58 = vsel %vm8591_vm7, %v1180_v40, %v992_v52  ;;  %549 = vrot.lane.b32.xlu0 %v5119_v11, %s8492_s28  ;;  %566 = vrot.lane.b32.xlu1 %v5151_v18, %s4988_s10  ;;  %s8654_s10 = smov 126   ;;  %s8599_s28 = smov 88  }
  0xa5   : > { %v512_v61 = vsel %vm8503_vm8, %v4214_v55, %v8511_v56 }
  0xa6   : > { %v1227_v62 = vsel %vm1169_vm1, %v512_v61, %v1067_v57  ;;  %v5362_v63 = vpop.permute.xlu0 %4241  ;;  %v5364_v0 = vpop.permute.xlu1 %4246  ;;  %v1171_v57 = vsel %vm1169_vm1, %v5115_v9, %v961_v20  ;;  %v349_v61 = vsel %vm8498_vm2, %v4188_v31, %v4189_v32  ;;  %v4208_v9 = vunpack.i.l.bf16 %v5290_v30 }
  0xa7   : > { %v1234_v3 = vsel %vm1177_vm3, %v1227_v62, %v1082_v60  ;;  %v8508_v4 = vunpack.i.h.bf16 %v5362_v63  ;;  %v4249_v51 = vunpack.i.h.bf16 %v5364_v0  ;;  %v4198_v62 = vunpack.i.l.bf16 %v5277_v27 }
  0xa8   : > { %4511 = vrot.lane.b32.xlu0 %v5215_v19, %s8604_s29  ;;  %345 = vrot.lane.b32.xlu1 %v5151_v18, %s8654_s10  ;;  %v976_v20 = vrot.slane %v349_v61, 6  ;;  %v376_v59 = vsel %vm8500_vm5, %v4208_v9, %v4209_v46  ;;  %v511_v61 = vsel %vm8503_vm8, %v4213_v1, %v4214_v55  ;;  %v4238_v27 = vunpack.i.l.bf16 %v5346_v54 }
  0xa9   : > { %v598_v6 = vsel %vm8516_vm9, %v4224_v2, %v8508_v4  ;;  %v4218_v46 = vunpack.i.l.bf16 %v5306_v38 }
  0xaa   : > { %v1097_v7 = vrot.slane %v598_v6, 5  ;;  %v5382_v8 = vpop.permute.xlu0 %4251  ;;  %v5384_v10 = vpop.permute.xlu1 %4256  ;;  %v4223_v6 = vunpack.i.l.bf16 %v5317_v43 }
  0xab   : > { %v8499_v17 = vunpack.i.h.bf16 %v5382_v8 }
  0xac   : > { %v1241_v28 = vsel %vm8591_vm7, %v1234_v3, %v1097_v7  ;;  %507 = vrot.lane.b32.xlu0 %v5151_v18, %s4990_s12  ;;  %576 = vrot.lane.b32.xlu1 %v5119_v11, %s8599_s28  ;;  %v4259_v7 = vunpack.i.h.bf16 %v5384_v10  ;;  %s8592_s12 = smov 113   ;;  %s8610_s28 = smov 92  }
  0xad   : > { %v404_v34 = vsel %vm8506_vm10, %v4234_v16, %v8499_v17  ;;  %v1226_v17 = vsel %vm1169_vm1, %v511_v61, %v1066_v5 }
  0xae   : > { %v1007_v40 = vrot.slane %v404_v34, 4  ;;  %v5402_v49 = vpop.permute.xlu0 %4261  ;;  %v5404_v50 = vpop.permute.xlu1 %4266  ;;  %v4193_v34 = vunpack.i.l.bf16 %v5275_v26 }
  0xaf   : > { %v8497_v52 = vunpack.i.h.bf16 %v5402_v49  ;;  %v4269_v37 = vunpack.i.h.bf16 %v5404_v50 }
  0xb0   : > { %v1196_v60 = vsel %vm1193_vm12, %v1188_v58, %v1007_v40  ;;  %593 = vrot.lane.b32.xlu0 %v5151_v18, %s4991_s13  ;;  %4516 = vrot.lane.b32.xlu1 %v5215_v19, %s8598_s30  ;;  %v348_v58 = vsel %vm8498_vm2, %v4203_v39, %v4188_v31  ;;  %v570_v39 = vsel %vm8504_vm6, %v4198_v62, %v4199_v48  ;;  %s5013_s13 = smov 87   ;;  %vm8521_vm2 = vcmask 809984  }
  0xb1   : > { %v625_v22 = vsel %vm8515_vm11, %v4249_v51, %v8497_v52  ;;  %v975_v40 = vrot.slane %v348_v58, 6  ;;  %v542_v35 = vsel %vm8502_vm4, %v4193_v34, %v4178_v24  ;;  %vm8578_vm4 = vcmask 1045504  }
  0xb2   : > { %v1112_v23 = vrot.slane %v625_v22, 4  ;;  %v5432_v3 = vpop.permute.xlu0 %4271  ;;  %v5434_v32 = vpop.permute.xlu1 %4276  ;;  %v4233_v22 = vunpack.i.l.bf16 %v5344_v53  ;;  %v1065_v61 = vrot.slane %v542_v35, 7 }
  0xb3   : > { %v8496_v15 = vunpack.i.h.bf16 %v5434_v32 }
  0xb4   : > { %v1248_v31 = vsel %vm1193_vm12, %v1241_v28, %v1112_v23  ;;  %372 = vrot.lane.b32.xlu0 %v5151_v18, %s4989_s11  ;;  %522 = vrot.lane.b32.xlu1 %v5119_v11, %s8592_s12  ;;  %v597_v23 = vsel %vm8516_vm9, %v4223_v6, %v4224_v2  ;;  %v1081_v2 = vrot.slane %v570_v39, 6  ;;  %v403_v34 = vsel %vm8506_vm10, %v4233_v22, %v4234_v16  ;;  %s5032_s12 = smov 104  }
  0xb5   : > { %v431_v28 = vsel %vm8513_vm13, %v4259_v7, %v8496_v15  ;;  %v991_v15 = vrot.slane %v376_v59, 5 }
  0xb6   : > { %v1022_v48 = vrot.slane %v431_v28, 3  ;;  %v5462_v58 = vpop.permute.xlu0 %4281  ;;  %v5464_v30 = vpop.permute.xlu1 %4286  ;;  %v375_v28 = vsel %vm8500_vm5, %v4228_v36, %v4208_v9  ;;  %vm8520_vm5 = vcmask 556032   ;;  %v1096_v9 = vrot.slane %v597_v23, 5 }
  0xb7   : > { %v8501_v55 = vunpack.i.h.bf16 %v5464_v30  ;;  %v510_v36 = vsel %vm8503_vm8, %v4238_v27, %v4213_v1  ;;  %vm8519_vm8 = vcmask 801792   ;;  %v1233_v35 = vsel %vm1177_vm3, %v1226_v17, %v1081_v2 }
  0xb8   : > { %v5477_v52 = vsel %vm8582_vm14, %v1196_v60, %v1022_v48  ;;  %603 = vrot.lane.b32.xlu0 %v5119_v11, %s5013_s13  ;;  %620 = vrot.lane.b32.xlu1 %v5151_v18, %s4993_s15  ;;  %v1179_v60 = vsel %vm1177_vm3, %v1171_v57, %v976_v20  ;;  %v1178_v48 = vsel %vm1177_vm3, %v1170_v45, %v975_v40  ;;  %v990_v57 = vrot.slane %v375_v28, 5  ;;  %s5014_s15 = smov 86   ;;  %s8655_s13 = smov 42  }
  0xb9   : > { %v652_v24 = vsel %vm8558_vm15, %v4269_v37, %v8501_v55  ;;  %v569_v55 = vsel %vm8504_vm6, %v4218_v46, %v4198_v62  ;;  %v1187_v16 = vsel %vm8591_vm7, %v1179_v60, %v991_v15  ;;  %v1006_v1 = vrot.slane %v403_v34, 4 }
  0xba   : > { %v1127_v39 = vrot.slane %v652_v24, 3  ;;  %v5495_v5 = vpop.permute.xlu0 %4291  ;;  %v5497_v59 = vpop.permute.xlu1 %4296  ;;  %v1225_v45 = vsel %vm1169_vm1, %v510_v36, %v1065_v61  ;;  %v4243_v62 = vunpack.i.l.bf16 %v5362_v63  ;;  %v4248_v40 = vunpack.i.l.bf16 %v5364_v0 }
  0xbb   : > { %v4253_v27 = vunpack.i.l.bf16 %v5382_v8  ;;  %vm8518_vm6 = vcmask 359424   ;;  %v1240_v15 = vsel %vm8591_vm7, %v1233_v35, %v1096_v9  ;;  %v4268_v17 = vunpack.i.l.bf16 %v5404_v50 }
  0xbc   : > { %v5502_v20 = vsel %vm8582_vm14, %v1248_v31, %v1127_v39  ;;  %4521 = vrot.lane.b32.xlu0 %v5215_v19, %s8596_s9  ;;  %399 = vrot.lane.b32.xlu1 %v5151_v18, %s4992_s14  ;;  %v1080_v31 = vrot.slane %v569_v55, 6  ;;  %v4258_v19 = vunpack.i.l.bf16 %v5384_v10  ;;  %v4284_v28 = vunpack.i.h.bf16 %v5462_v58 }
  0xbd   : > { %v5524_v24 = vsel %vm8591_vm7, %v1178_v48, %v990_v57  ;;  %v4283_v60 = vunpack.i.l.bf16 %v5462_v58  ;;  %v4294_v34 = vunpack.i.h.bf16 %v5495_v5  ;;  %v4293_v36 = vunpack.i.l.bf16 %v5495_v5 }
  0xbe   : > { %v5515_v46 = vpop.permute.xlu0 %4301  ;;  %v5517_v23 = vpop.permute.xlu1 %4306  ;;  %v5527_v55 = vsel %vm1177_vm3, %v1225_v45, %v1080_v31  ;;  %v5538_v9 = vsel %vm8516_vm9, %v4243_v62, %v4223_v6  ;;  %v624_v39 = vsel %vm8515_vm11, %v4248_v40, %v4249_v51  ;;  %v1195_v48 = vsel %vm1193_vm12, %v1187_v16, %v1006_v1 }
  0xbf   : > { %v8507_v2 = vunpack.i.h.bf16 %v5517_v23  ;;  %v5552_v43 = vsel %vm8506_vm10, %v4253_v27, %v4233_v22  ;;  %v430_v6 = vsel %vm8513_vm13, %v4258_v19, %v4259_v7  ;;  %v4278_v57 = vunpack.i.l.bf16 %v5434_v32 }
  0xc0   : > { %426 = vrot.lane.b32.xlu0 %v5151_v18, %s4994_s16  ;;  %630 = vrot.lane.b32.xlu1 %v5119_v11, %s5014_s15  ;;  %v651_v53 = vsel %vm8558_vm15, %v4268_v17, %v4269_v37  ;;  %v1111_v7 = vrot.slane %v624_v39, 4  ;;  %v457_v1 = vsel %vm8521_vm2, %v4283_v60, %v4284_v28  ;;  %v678_v37 = vsel %vm8520_vm5, %v4293_v36, %v4294_v34  ;;  %s5016_s15 = smov 85  }
  0xc1   : > { %v458_v61 = vsel %vm8521_vm2, %v4284_v28, %v8507_v2  ;;  %v1021_v31 = vrot.slane %v430_v6, 3  ;;  %v4263_v27 = vunpack.i.l.bf16 %v5402_v49  ;;  %vm8559_vm10 = vcmask 343040  }
  0xc2   : > { %v1037_v35 = vrot.slane %v458_v61, 2  ;;  %v5558_v51 = vpop.permute.xlu0 %4311  ;;  %v5560_v45 = vpop.permute.xlu1 %4316  ;;  %v1126_v61 = vrot.slane %v651_v53, 3  ;;  %v429_v2 = vsel %vm8513_vm13, %v4278_v57, %v4258_v19  ;;  %v1141_v56 = vrot.slane %v678_v37, 2 }
  0xc3   : > { %v4314_v22 = vunpack.i.h.bf16 %v5558_v51  ;;  %v4313_v16 = vunpack.i.l.bf16 %v5558_v51  ;;  %v8510_v10 = vunpack.i.h.bf16 %v5560_v45  ;;  %v1095_v42 = vrot.slane %v5538_v9, 5 }
  0xc4   : > { %647 = vrot.lane.b32.xlu0 %v5151_v18, %s4995_s17  ;;  %760 = vrot.lane.b32.xlu1 %v5151_v18, %s8655_s13  ;;  %v5582_v62 = vsel %vm8578_vm4, %v5477_v52, %v1037_v35  ;;  %v4288_v52 = vunpack.i.l.bf16 %v5464_v30  ;;  %s5015_s17 = smov 116   ;;  %v1247_v57 = vsel %vm1193_vm12, %v1240_v15, %v1111_v7  ;;  %v5615_v9 = vsel %vm8515_vm11, %v4263_v27, %v4248_v40  ;;  %s5023_s13 = smov 59  }
  0xc5   : > { %v679_v39 = vsel %vm8520_vm5, %v4294_v34, %v8510_v10  ;;  %v484_v28 = vsel %vm8519_vm8, %v4313_v16, %v4314_v22  ;;  %v1036_v10 = vrot.slane %v457_v1, 2  ;;  %vm8531_vm13 = vcmask 334848  }
  0xc6   : > { %v1142_v35 = vrot.slane %v679_v39, 2  ;;  %v5595_v6 = vpop.permute.xlu0 %4321  ;;  %v5597_v4 = vpop.permute.xlu1 %4326  ;;  %v1051_v19 = vrot.slane %v484_v28, 1  ;;  %v1005_v39 = vrot.slane %v5552_v43, 4  ;;  %v4308_v1 = vunpack.i.l.bf16 %v5517_v23 }
  0xc7   : > { %v4324_v47 = vunpack.i.h.bf16 %v5595_v6  ;;  %v4323_v34 = vunpack.i.l.bf16 %v5595_v6  ;;  %v1020_v28 = vrot.slane %v429_v2, 3  ;;  %v1203_v43 = vsel %vm8582_vm14, %v1195_v48, %v1021_v31 }
  0xc8   : > { %436 = vrot.lane.b32.xlu0 %v5119_v11, %s5015_s17  ;;  %453 = vrot.lane.b32.xlu1 %v5151_v18, %s4997_s19  ;;  %v5609_v53 = vsel %vm8578_vm4, %v5502_v20, %v1142_v35  ;;  %v1254_v0 = vsel %vm8582_vm14, %v1247_v57, %v1126_v61  ;;  %v5630_v40 = vsel %vm8558_vm15, %v4288_v52, %v4268_v17  ;;  %v8526_v27 = vunpack.i.h.bf16 %v5497_v59 }
  0xc9   : > { %v705_v37 = vsel %vm8518_vm6, %v4323_v34, %v4324_v47  ;;  %v1211_v35 = vsel %vm8578_vm4, %v1203_v43, %v1036_v10  ;;  %v1261_v2 = vsel %vm8578_vm4, %v1254_v0, %v1141_v56  ;;  %v4318_v33 = vunpack.i.l.bf16 %v5560_v45 }
  0xca   : > { %v5621_v15 = vpop.permute.xlu0 %4331  ;;  %v5623_v7 = vpop.permute.xlu1 %4336  ;;  %v1156_v20 = vrot.slane %v705_v37, 1  ;;  %vm8557_vm11 = vcmask 351232   ;;  %vm8535_vm9 = vcmask 326656   ;;  %v1219_v50 = vsel %vm8576_vm0, %v1211_v35, %v1051_v19 }
  0xcb   : > { %v1239_v48 = vsel %vm8591_vm7, %v5527_v55, %v1095_v42  ;;  %v4274_v10 = vunpack.i.h.bf16 %v5432_v3  ;;  %v456_v56 = vsel %vm8521_vm2, %v4308_v1, %v4283_v60  ;;  %v1194_v61 = vsel %vm1193_vm12, %v5524_v24, %v1005_v39 }
  0xcc   : > { %657 = vrot.lane.b32.xlu0 %v5119_v11, %s5016_s15  ;;  %674 = vrot.lane.b32.xlu1 %v5151_v18, %s4998_s20  ;;  %v1268_v17 = vsel %vm8576_vm0, %v1261_v2, %v1156_v20  ;;  %v1110_v52 = vrot.slane %v5615_v9, 4  ;;  %v1125_v57 = vrot.slane %v5630_v40, 3  ;;  %v8517_v19 = vunpack.i.h.bf16 %v5621_v15  ;;  %s5017_s20 = smov 58   ;;  %s5024_s15 = smov 56  }
  0xcd   : > { %v3743_v31 = vpack.c.bf16 %v1268_v17, %v1219_v50  ;;  %v1202_v42 = vsel %vm8582_vm14, %v1194_v61, %v1020_v28  ;;  %v765_v58 = vsel %vm8559_vm10, %v4274_v10, %v8526_v27  ;;  %v4304_v39 = vunpack.i.h.bf16 %v5515_v46 }
  0xce   : > { %v5652_v37 = vpop.permute.xlu0 %4341  ;;  %v5654_v20 = vpop.permute.xlu1 %4346  ;;  %v1035_v9 = vrot.slane %v456_v56, 2  ;;  %v677_v1 = vsel %vm8520_vm5, %v4318_v33, %v4293_v36  ;;  %v4329_v43 = vunpack.i.h.bf16 %v5597_v4  ;;  %v4339_v51 = vunpack.i.h.bf16 %v5623_v7 }
  0xcf   : > { %v8529_v24 = vunpack.i.h.bf16 %v5652_v37  ;;  %v4343_v55 = vunpack.i.l.bf16 %v5652_v37  ;;  %v8527_v60 = vunpack.i.h.bf16 %v5654_v20  ;;  %3744 = vmatprep.subr.bf16.mxu0 %v3743_v31  ;;  %v4348_v28 = vunpack.i.l.bf16 %v5654_v20 }
  0xd0   : > { %770 = vrot.lane.b32.xlu0 %v5119_v11, %s5017_s20  ;;  %787 = vrot.lane.b32.xlu1 %v5151_v18, %s4999_s21  ;;  %v792_v36 = vsel %vm8531_vm13, %v4304_v39, %v8517_v19  ;;  %v1277_v56 = vrot.slane %v765_v58, 7  ;;  %v1140_v31 = vrot.slane %v677_v1, 2  ;;  %s5018_s21 = smov 115   ;;  %vm358_vm5 = vcmask 113664   ;;  %s8661_s20 = smov 16  }
  0xd1   : > { %v485_v0 = vsel %vm8519_vm8, %v4314_v22, %v8529_v24  ;;  %v706_v33 = vsel %vm8518_vm6, %v4324_v47, %v8527_v60  ;;  %v483_v5 = vsel %vm8519_vm8, %v4343_v55, %v4313_v16  ;;  %v704_v47 = vsel %vm8518_vm6, %v4348_v28, %v4323_v34 }
  0xd2   : > { %v1052_v40 = vrot.slane %v485_v0, 1  ;;  %v1157_v35 = vrot.slane %v706_v33, 1  ;;  %v5690_v2 = vpop.permute.xlu0 %4351  ;;  %v5692_v50 = vpop.permute.xlu1 %4356  ;;  %v1050_v17 = vrot.slane %v483_v5, 1  ;;  %v1292_v61 = vrot.slane %v792_v36, 6 }
  0xd3   : > { %v8525_v22 = vunpack.i.h.bf16 %v5690_v2  ;;  %v8523_v16 = vunpack.i.h.bf16 %v5692_v50  ;;  %v1155_v1 = vrot.slane %v704_v47, 1  ;;  %v1210_v33 = vsel %vm8578_vm4, %v1202_v42, %v1035_v9 }
  0xd4   : > { %463 = vrot.lane.b32.xlu0 %v5119_v11, %s5018_s21  ;;  %480 = vrot.lane.b32.xlu1 %v5151_v18, %s5000_s22  ;;  %v5706_v6 = vsel %vm8576_vm0, %v5582_v62, %v1052_v40  ;;  %v5710_v34 = vsel %vm8576_vm0, %v5609_v53, %v1157_v35  ;;  %v1246_v5 = vsel %vm1193_vm12, %v1239_v48, %v1110_v52  ;;  %v4273_v36 = vunpack.i.l.bf16 %v5432_v3  ;;  %s5019_s22 = smov 84  }
  0xd5   : > { %v733_v58 = vsel %vm8557_vm11, %v4329_v43, %v8525_v22  ;;  %v819_v55 = vsel %vm8535_vm9, %v4339_v51, %v8523_v16  ;;  %v1218_v35 = vsel %vm8576_vm0, %v1210_v33, %v1050_v17  ;;  %v1253_v19 = vsel %vm8582_vm14, %v1246_v5, %v1125_v57 }
  0xd6   : > { %v1381_v62 = vsel %vm1169_vm1, %v733_v58, %v1277_v56  ;;  %v1307_v28 = vrot.slane %v819_v55, 5  ;;  %v5723_v0 = vpop.permute.xlu0 %4361  ;;  %v5725_v53 = vpop.permute.xlu1 %4366  ;;  %v1260_v56 = vsel %vm8578_vm4, %v1253_v19, %v1140_v31  ;;  %v764_v57 = vsel %vm8559_vm10, %v4273_v36, %v4274_v10 }
  0xd7   : > { %v1388_v40 = vsel %vm1177_vm3, %v1381_v62, %v1292_v61  ;;  %v1267_v48 = vsel %vm8576_vm0, %v1260_v56, %v1155_v1  ;;  %v4298_v19 = vunpack.i.l.bf16 %v5497_v59  ;;  %v4364_v31 = vunpack.i.h.bf16 %v5723_v0 }
  0xd8   : > { %v1395_v47 = vsel %vm8591_vm7, %v1388_v40, %v1307_v28  ;;  %684 = vrot.lane.b32.xlu0 %v5119_v11, %s5019_s22  ;;  %701 = vrot.lane.b32.xlu1 %v5151_v18, %s5001_s23  ;;  %v3745_v42 = vpack.c.bf16 %v1267_v48, %v1218_v35  ;;  %v8524_v61 = vunpack.i.h.bf16 %v5725_v53  ;;  %v4303_v55 = vunpack.i.l.bf16 %v5515_v46  ;;  %s5020_s23 = smov 57   ;;  %s5025_s22 = smov 32  }
  0xd9   : > { %v4328_v1 = vunpack.i.l.bf16 %v5597_v4  ;;  %vm8552_vm6 = vcmask 130048   ;;  %v4353_v3 = vunpack.i.l.bf16 %v5690_v2  ;;  %v4368_v10 = vunpack.i.l.bf16 %v5725_v53 }
  0xda   : > { %v5741_v9 = vpop.permute.xlu0 %4371  ;;  %v5743_v17 = vpop.permute.xlu1 %4376  ;;  %3746 = vmatpush1.bf16.msra.mxu0 %v3745_v42  ;;  %vm8584_vm8 = vcmask 121856   ;;  %v1276_v5 = vrot.slane %v764_v57, 7  ;;  %v763_v48 = vsel %vm8559_vm10, %v4298_v19, %v4273_v36  ;;  %v4333_v42 = vunpack.i.l.bf16 %v5621_v15 }
  0xdb   : > { %v8522_v58 = vunpack.i.h.bf16 %v5743_v17  ;;  %vm8656_vm2 = vcmask 1039360   ;;  %v791_v57 = vsel %vm8531_vm13, %v4303_v55, %v4304_v39  ;;  %v732_v36 = vsel %vm8557_vm11, %v4328_v1, %v4329_v43 }
  0xdc   : > { %728 = vrot.lane.b32.xlu0 %v5151_v18, %s5002_s26  ;;  %797 = vrot.lane.b32.xlu1 %v5119_v11, %s5020_s23  ;;  %v4338_v19 = vunpack.i.l.bf16 %v5623_v7  ;;  %v4358_v22 = vunpack.i.l.bf16 %v5692_v50  ;;  %v4363_v27 = vunpack.i.l.bf16 %v5723_v0  ;;  %v1291_v52 = vrot.slane %v791_v57, 6  ;;  %s8594_s26 = smov 114   ;;  %s5026_s23 = smov 31  }
  0xdd   : > { %v846_v62 = vsel %vm8552_vm6, %v4364_v31, %v8522_v58  ;;  %v325_v58 = vsel %vm8656_vm2, %v4368_v10, %v8524_v61  ;;  %v731_v61 = vsel %vm8557_vm11, %v4353_v3, %v4328_v1  ;;  %v1275_v3 = vrot.slane %v763_v48, 7 }
  0xde   : > { %v5762_v28 = vpop.permute.xlu0 %4381  ;;  %v5764_v33 = vpop.permute.xlu1 %4386  ;;  %v1322_v40 = vrot.slane %v846_v62, 4  ;;  %v964_v43 = vrot.slane %v325_v58, 7  ;;  %v1380_v0 = vsel %vm1169_vm1, %v732_v36, %v1276_v5  ;;  %v790_v60 = vsel %vm8531_vm13, %v4333_v42, %v4303_v55 }
  0xdf   : > { %v4384_v35 = vunpack.i.h.bf16 %v5762_v28  ;;  %v8528_v16 = vunpack.i.h.bf16 %v5764_v33  ;;  %v4373_v24 = vunpack.i.l.bf16 %v5741_v9  ;;  %vm8657_vm2 = vcmask 1031168  }
  0xe0   : > { %814 = vrot.lane.b32.xlu0 %v5151_v18, %s5003_s27  ;;  %v1402_v62 = vsel %vm1193_vm12, %v1395_v47, %v1322_v40  ;;  %934 = vrot.lane.b32.xlu1 %v5123_v13, %s8597_s18  ;;  %s5022_s27 = smov 60   ;;  %v818_v55 = vsel %vm8535_vm9, %v4338_v19, %v4339_v51  ;;  %v1379_v5 = vsel %vm1169_vm1, %v731_v61, %v1275_v3  ;;  %v1290_v56 = vrot.slane %v790_v60, 6 }
  0xe1   : > { %v870_v4 = vsel %vm8584_vm8, %v4384_v35, %v8528_v16  ;;  %v8533_v16 = vunpack.i.h.bf16 %v5741_v9  ;;  %v817_v42 = vsel %vm8535_vm9, %v4358_v22, %v4338_v19  ;;  %v1387_v51 = vsel %vm1177_vm3, %v1380_v0, %v1291_v52 }
  0xe2   : > { %v5797_v46 = vpop.permute.xlu0 %4391  ;;  %v5799_v39 = vpop.permute.xlu1 %4396  ;;  %v1337_v47 = vrot.slane %v870_v4, 3  ;;  %v845_v4 = vsel %vm8552_vm6, %v4363_v27, %v4364_v31  ;;  %v1306_v19 = vrot.slane %v818_v55, 5  ;;  %v4378_v31 = vunpack.i.l.bf16 %v5743_v17 }
  0xe3   : > { %v8530_v40 = vunpack.i.h.bf16 %v5797_v46  ;;  %v8540_v1 = vunpack.i.l.bf16 %v5797_v46  ;;  %v1386_v60 = vsel %vm1177_vm3, %v1379_v5, %v1290_v56  ;;  %v1305_v52 = vrot.slane %v817_v42, 5 }
  0xe4   : > { %490 = vrot.lane.b32.xlu0 %v5119_v11, %s8594_s26  ;;  %v1409_v58 = vsel %vm8582_vm14, %v1402_v62, %v1337_v47  ;;  %711 = vrot.lane.b32.xlu1 %v5119_v11, %s5022_s27  ;;  %v1174_v47 = vsel %vm1169_vm1, %v5123_v13, %v964_v43  ;;  %v8536_v43 = vunpack.i.l.bf16 %v5799_v39  ;;  %v1321_v3 = vrot.slane %v845_v4, 4  ;;  %s5027_s27 = smov 30   ;;  %s5033_s26 = smov 103  }
  0xe5   : > { %v352_v48 = vsel %vm8657_vm2, %v8540_v1, %v8530_v40  ;;  %v8534_v40 = vunpack.i.h.bf16 %v5799_v39  ;;  %vm8658_vm2 = vcmask 785408   ;;  %vm8660_vm13 = vcmask 1039360  }
  0xe6   : > { %v979_v57 = vrot.slane %v352_v48, 6  ;;  %v5821_v36 = vpop.permute.xlu0 %4401  ;;  %v5823_v62 = vpop.permute.xlu1 %4406  ;;  %v546_v13 = vsel %vm8658_vm2, %v4373_v24, %v8533_v16  ;;  %vm8659_vm2 = vcmask 588800   ;;  %v324_v42 = vsel %vm8660_vm13, %v4184_v25, %v4368_v10 }
  0xe7   : > { %v8537_v7 = vunpack.i.h.bf16 %v5821_v36  ;;  %v8532_v22 = vunpack.i.h.bf16 %v5823_v62  ;;  %v1069_v4 = vrot.slane %v546_v13, 7  ;;  %vm8662_vm9 = vcmask 1022976  }
  0xe8   : > { %v1182_v61 = vsel %vm1177_vm3, %v1174_v47, %v979_v57  ;;  %743 = vrot.lane.b32.xlu0 %v5119_v11, %s5023_s13  ;;  %824 = vrot.lane.b32.xlu1 %v5119_v11, %s5024_s15  ;;  %v573_v57 = vsel %vm8659_vm2, %v8536_v43, %v8534_v40  ;;  %vm8587_vm2 = vcmask 105472   ;;  %v4383_v40 = vunpack.i.l.bf16 %v5762_v28  ;;  %s5028_s13 = smov 29   ;;  %s5029_s15 = smov 28  }
  0xe9   : > { %v894_v0 = vsel %vm358_vm5, %v8537_v7, %v8532_v22  ;;  %v1084_v13 = vrot.slane %v573_v57, 6  ;;  %vm8663_vm13 = vcmask 793600   ;;  %v1393_v57 = vsel %vm8591_vm7, %v1386_v60, %v1305_v52 }
  0xea   : > { %v5848_v48 = vpop.permute.xlu0 %4411  ;;  %v5850_v55 = vpop.permute.xlu1 %4416  ;;  %v1352_v47 = vrot.slane %v894_v0, 2  ;;  %v844_v0 = vsel %vm8552_vm6, %v4378_v31, %v4363_v27  ;;  %v8666_v60 = vunpack.i.l.bf16 %v5764_v33  ;;  %vm8684_vm6 = vcmask 1022976  }
  0xeb   : > { %v8538_v56 = vunpack.i.h.bf16 %v5848_v48  ;;  %v8539_v5 = vunpack.i.l.bf16 %v5848_v48  ;;  %v8541_v22 = vunpack.i.h.bf16 %v5850_v55  ;;  %v4418_v16 = vunpack.i.l.bf16 %v5850_v55 }
  0xec   : > { %841 = vrot.lane.b32.xlu0 %v5151_v18, %s8661_s20  ;;  %851 = vrot.lane.b32.xlu1 %v5119_v11, %s5025_s22  ;;  %v1416_v25 = vsel %vm8578_vm4, %v1409_v58, %v1352_v47  ;;  %v868_v26 = vsel %vm8584_vm8, %v8666_v60, %v4383_v40  ;;  %v8668_v60 = vunpack.i.h.bf16 %v5288_v29  ;;  %vm8701_vm11 = vcmask 818176   ;;  %s8896_s20 = smov 112   ;;  %s8608_s22 = smov 90  }
  0xed   : > { %v379_v21 = vsel %vm8662_vm9, %v8539_v5, %v8538_v56  ;;  %v514_v27 = vsel %vm8663_vm13, %v4418_v16, %v8541_v22  ;;  %v1394_v56 = vsel %vm8591_vm7, %v1387_v51, %v1306_v19  ;;  %vm8664_vm9 = vcmask 785408  }
  0xee   : > { %v994_v43 = vrot.slane %v379_v21, 5  ;;  %v5883_v31 = vpop.permute.xlu0 %4421  ;;  %v5885_v7 = vpop.permute.xlu1 %4426  ;;  %v1229_v5 = vsel %vm1169_vm1, %v514_v27, %v1069_v4  ;;  %v963_v21 = vrot.slane %v324_v42, 7  ;;  %v1401_v22 = vsel %vm1193_vm12, %v1394_v56, %v1321_v3 }
  0xef   : > { %v8542_v58 = vunpack.i.h.bf16 %v5883_v31  ;;  %v8547_v47 = vunpack.i.l.bf16 %v5883_v31  ;;  %v1236_v10 = vsel %vm1177_vm3, %v1229_v5, %v1084_v13  ;;  %v5902_v51 = vsel %vm8664_vm9, %v4194_v41, %v4373_v24 }
  0xf0   : > { %v1190_v1 = vsel %vm8591_vm7, %v1182_v61, %v994_v43  ;;  %866 = vrot.lane.b32.xlu0 %v5151_v18, %s8604_s29  ;;  %v1320_v19 = vrot.slane %v844_v0, 4  ;;  %vm8665_vm13 = vcmask 580608   ;;  %875 = vrot.lane.b32.xlu1 %v5119_v11, %s5026_s23  ;;  %v869_v43 = vsel %vm8584_vm8, %v4383_v40, %v4384_v35  ;;  %s8897_s23 = smov 88  }
  0xf1   : > { %v600_v61 = vsel %vm8665_vm13, %v8547_v47, %v8542_v58  ;;  %v4403_v41 = vunpack.i.l.bf16 %v5821_v36  ;;  %v8546_v56 = vunpack.i.l.bf16 %v5823_v62  ;;  %v4429_v5 = vunpack.i.h.bf16 %v5885_v7 }
  0xf2   : > { %v1099_v24 = vrot.slane %v600_v61, 5  ;;  %v5917_v52 = vpop.permute.xlu0 %4431  ;;  %v5919_v3 = vpop.permute.xlu1 %4436  ;;  %v1173_v35 = vsel %vm1169_vm1, %v5121_v12, %v963_v21  ;;  %v1400_v13 = vsel %vm1193_vm12, %v1393_v57, %v1320_v19  ;;  %v1336_v27 = vrot.slane %v869_v43, 3 }
  0xf3   : > { %v8543_v42 = vunpack.i.h.bf16 %v5917_v52  ;;  %v8544_v28 = vunpack.i.h.bf16 %v5919_v3  ;;  %v8545_v0 = vunpack.i.l.bf16 %v5919_v3  ;;  %v8667_v61 = vunpack.i.l.bf16 %v5797_v46 }
  0xf4   : > { %v1243_v4 = vsel %vm8591_vm7, %v1236_v10, %v1099_v24  ;;  %890 = vrot.lane.b32.xlu0 %v5151_v18, %s8598_s30  ;;  %vm8669_vm9 = vcmask 1031168   ;;  %899 = vrot.lane.b32.xlu1 %v5119_v11, %s5027_s27  ;;  %v1335_v10 = vrot.slane %v868_v26, 3  ;;  %v8670_v21 = vunpack.i.h.bf16 %v5821_v36  ;;  %s8603_s30 = smov 91   ;;  %s8601_s27 = smov 89  }
  0xf5   : > { %v351_v58 = vsel %vm8669_vm9, %v8668_v60, %v8667_v61  ;;  %v918_v12 = vsel %vm8587_vm2, %v4429_v5, %v8543_v42  ;;  %vm8671_vm13 = vcmask 1014784   ;;  %v892_v61 = vsel %vm358_vm5, %v8546_v56, %v4403_v41 }
  0xf6   : > { %v893_v24 = vsel %vm358_vm5, %v4403_v41, %v8670_v21  ;;  %v1367_v57 = vrot.slane %v918_v12, 1  ;;  %v406_v29 = vsel %vm8671_vm13, %v8545_v0, %v8544_v28  ;;  %v5950_v19 = vpop.permute.xlu0 %4441  ;;  %v5952_v43 = vpop.permute.xlu1 %4446  ;;  %v978_v12 = vrot.slane %v351_v58, 6 }
  0xf7   : > { %v1009_v26 = vrot.slane %v406_v29, 4  ;;  %v8548_v36 = vunpack.i.h.bf16 %v5950_v19  ;;  %v8549_v60 = vunpack.i.l.bf16 %v5950_v19  ;;  %v8550_v21 = vunpack.i.h.bf16 %v5952_v43 }
  0xf8   : > { %v8551_v42 = vunpack.i.l.bf16 %v5952_v43  ;;  %914 = vrot.lane.b32.xlu0 %v5151_v18, %s8596_s9  ;;  %v5964_v28 = vsel %vm8576_vm0, %v1416_v25, %v1367_v57  ;;  %v8673_v0 = vunpack.i.l.bf16 %v5799_v39  ;;  %v8674_v41 = vunpack.i.h.bf16 %v5306_v38  ;;  %923 = vrot.lane.b32.xlu1 %v5119_v11, %s5028_s13  ;;  %s8609_s9 = smov 102   ;;  %s8602_s13 = smov 80  }
  0xf9   : > { %8672 = vst [vmem:[#allocation2_spill] sm:$0xff] %v5964_v28  ;;  %vm8675_vm9 = vcmask 588800   ;;  %v1351_v56 = vrot.slane %v893_v24, 2  ;;  %v1198_v47 = vsel %vm1193_vm12, %v1190_v1, %v1009_v26  ;;  %vm8676_vm13 = vcmask 572416  }
  0xfa   : > { %v572_v29 = vsel %vm8675_vm9, %v8674_v41, %v8673_v0  ;;  %v627_v58 = vsel %vm8676_vm13, %v8549_v60, %v8548_v36  ;;  %v1350_v25 = vrot.slane %v892_v61, 2  ;;  %v4428_v57 = vunpack.i.l.bf16 %v5885_v7  ;;  %v5984_v1 = vpop.permute.xlu0 %4451  ;;  %v5986_v0 = vpop.permute.xlu1 %4456 }
  0xfb   : > { %v1114_v40 = vrot.slane %v627_v58, 4  ;;  %vm8677_vm9 = vcmask 818176   ;;  %8678 = vst [vmem:[#allocation3_spill] sm:$0xff] %v5986_v0  ;;  %v8555_v41 = vunpack.i.h.bf16 %v5984_v1  ;;  %v4453_v61 = vunpack.i.l.bf16 %v5984_v1 }
  0xfc   : > { %v433_v38 = vsel %vm8677_vm9, %v8551_v42, %v8550_v21  ;;  %vm8577_vm13 = vcmask 97280   ;;  %v1408_v7 = vsel %vm8582_vm14, %v1401_v22, %v1336_v27  ;;  %v1407_v58 = vsel %vm8582_vm14, %v1400_v13, %v1335_v10  ;;  %947 = vrot.lane.b32.xlu1 %v5119_v11, %s5029_s15  ;;  %s8899_s15 = smov 12  }
  0xfd   : > { %v1024_v26 = vrot.slane %v433_v38, 3  ;;  %v1083_v36 = vrot.slane %v572_v29, 6  ;;  %v1250_v60 = vsel %vm1193_vm12, %v1243_v4, %v1114_v40  ;;  %v8679_v21 = vpack.i.bf16 %v5151_v18, %v5125_v14 }
  0xfe   : > { %v5999_v42 = vsel %vm1177_vm3, %v1173_v35, %v978_v12  ;;  %v8680_v38 = vunpack.i.h.bf16 %v5346_v54  ;;  %vm8681_vm9 = vcmask 793600   ;;  %v654_v40 = vsel %vm8558_vm15, %v4453_v61, %v8555_v41 }
  0xff   : > { %4526 = vrot.lane.b32.xlu0 %v8679_v21, %s8597_s18  ;;  %v1206_v22 = vsel %vm8582_vm14, %v1198_v47, %v1024_v26  ;;  %v8682_v4 = vunpack.i.l.bf16 %v5848_v48  ;;  %v8683_v35 = vunpack.i.h.bf16 %v5319_v44  ;;  %v917_v54 = vsel %vm8587_vm2, %v4428_v57, %v4429_v5  ;;  %v6021_v47 = vpop.permute.xlu1 %4466  ;;  %s8611_s18 = smov 101  }
 0x100   : > { %v513_v24 = vsel %vm8681_vm9, %v8680_v38, %v4418_v16  ;;  %v1129_v27 = vrot.slane %v654_v40, 3  ;;  %v6019_v16 = vpop.permute.xlu0 %4461  ;;  %8685 = vst [vmem:[#allocation4_spill] sm:$0xff] %v6021_v47  ;;  %v1415_v10 = vsel %vm8578_vm4, %v1408_v7, %v1351_v56  ;;  %v8686_v12 = vunpack.i.l.bf16 %v5917_v52 }
 0x101   : > { %v6016_v13 = vsel %vm8684_vm6, %v8683_v35, %v8682_v4  ;;  %v8553_v21 = vunpack.i.h.bf16 %v6019_v16  ;;  %v4463_v44 = vunpack.i.l.bf16 %v6019_v16  ;;  %v1414_v29 = vsel %vm8578_vm4, %v1407_v58, %v1350_v25  ;;  %v1431_v25 = vld [vmem:[%s8479_s2 + $0x8] sm:$0x3] }
 0x102   : > { %v916_v11 = vsel %vm8587_vm2, %v8686_v12, %v4428_v57  ;;  %v8687_v26 = vrot.slane %v5902_v51, 7  ;;  %v1257_v38 = vsel %vm8582_vm14, %v1250_v60, %v1129_v27  ;;  %v8554_v40 = vunpack.i.h.bf16 %v6021_v47  ;;  %v1430_v60 = vld [vmem:[%s8479_s2] sm:$0xff] }
 0x103   : > { %v4468_v56 = vunpack.i.l.bf16 %v6021_v47  ;;  %v8688_v7 = vunpack.i.l.bf16 %v5883_v31  ;;  %v8689_v57 = vunpack.i.h.bf16 %v5362_v63  ;;  %vm8690_vm6 = vcmask 580608  }
 0x104   : > { %v1228_v5 = vsel %vm1169_vm1, %v513_v24, %v8687_v26  ;;  %v1366_v35 = vrot.slane %v917_v54, 1  ;;  %vm8691_vm9 = vcmask 809984   ;;  %v1365_v24 = vrot.slane %v916_v11, 1  ;;  %v6062_v26 = vpop.permute.xlu0 %4471 }
 0x105   : > { %v6041_v4 = vsel %vm8690_vm6, %v8689_v57, %v8688_v7  ;;  %v460_v51 = vsel %vm8691_vm9, %v4463_v44, %v8553_v21  ;;  %v8692_v58 = vunpack.i.l.bf16 %v5919_v3  ;;  %v8693_v63 = vunpack.i.h.bf16 %v5382_v8  ;;  %v4477_v7 = vpop.permute.xlu1 %4476 }
 0x106   : > { %vm8694_vm6 = vcmask 1014784   ;;  %v1039_v54 = vrot.slane %v460_v51, 2  ;;  %vm8695_vm9 = vcmask 556032   ;;  %v5030_v57 = vmov 0  }
 0x107   : > { %v6057_v27 = vsel %vm8694_vm6, %v8693_v63, %v8692_v58  ;;  %v681_v12 = vsel %vm8695_vm9, %v4468_v56, %v8554_v40  ;;  %4531 = vset.pattern.permute.xlu1 %v5030_v57  ;;  %4530 = vset.pattern.permute.xlu0 %v5030_v57  ;;  %v993_v11 = vrot.slane %v6016_v13, 5  ;;  %v1235_v21 = vsel %vm1177_vm3, %v1228_v5, %v1083_v36 }
 0x108   : > { %v8696_v8 = vunpack.i.l.bf16 %v5950_v19  ;;  %v8697_v58 = vunpack.i.h.bf16 %v5402_v49  ;;  %vm8698_vm6 = vcmask 572416   ;;  %v1144_v63 = vrot.slane %v681_v12, 2  ;;  %1434 = vperm.xlu0 %4530, %v1430_v60   ;;  %1439 = vperm.xlu1 %4531, %v1431_v25  }
 0x109   : > { %v1098_v40 = vrot.slane %v6041_v4, 5  ;;  %v4479_v41 = vunpack.i.h.bf16 %v4477_v7  ;;  %v4478_v47 = vunpack.i.l.bf16 %v4477_v7  ;;  %vm8575_vm9 = vcmask 203776  }
 0x10a   : > { %v626_v51 = vsel %vm8698_vm6, %v8697_v58, %v8696_v8  ;;  %v1214_v57 = vsel %vm8578_vm4, %v1206_v22, %v1039_v54  ;;  %v1008_v13 = vrot.slane %v6057_v27, 4  ;;  %v8699_v36 = vunpack.i.l.bf16 %v5952_v43  ;;  %v6085_v22 = vpop.permute.xlu0 %4481  ;;  %v6087_v27 = vpop.permute.xlu1 %4486 }
 0x10b   : > { %v8700_v5 = vunpack.i.h.bf16 %v5434_v32  ;;  %v1422_v8 = vsel %vm8576_vm0, %v1415_v10, %v1366_v35  ;;  %v1264_v60 = vsel %vm8578_vm4, %v1257_v38, %v1144_v63  ;;  %v1113_v25 = vrot.slane %v626_v51, 4 }
 0x10c   : > { %v8702_v4 = vunpack.i.h.bf16 %v5464_v30  ;;  %v941_v7 = vsel %vm8577_vm13, %v4478_v47, %v4479_v41  ;;  %v1421_v54 = vsel %vm8576_vm0, %v1414_v29, %v1365_v24  ;;  %v8563_v32 = vunpack.i.h.bf16 %v6085_v22 }
 0x10d   : > { %v432_v49 = vsel %vm8701_vm11, %v8700_v5, %v8699_v36  ;;  %v4483_v58 = vunpack.i.l.bf16 %v6085_v22  ;;  %v8562_v10 = vunpack.i.h.bf16 %v6087_v27  ;;  %v4488_v38 = vunpack.i.l.bf16 %v6087_v27 }
 0x10e   : > { %v653_v12 = vsel %vm8558_vm15, %v8702_v4, %v4453_v61  ;;  %vm8560_vm11 = vmmov 1   ;;  %v8703_v30 = vmov 0  ;;  %v1023_v61 = vrot.slane %v432_v49, 3 }
 0x10f   : > { %vm6096_vm6 = vmpackc.low %vm1169_vm1, %vm8560_vm11  ;;  %v8706_v35 = vunpack.i.h.bf16 %v5517_v23  ;;  %vm8707_vm15 = vcmask 809984   ;;  %v8708_v24 = vunpack.i.h.bf16 %v5560_v45  ;;  %vm8709_vm10 = vcmask 556032  }
 0x110   : > { %v8704_v30 = vsel %vm6096_vm6, 4294967295, %v8703_v30  ;;  %v3747_v63 = vpack.c.bf16 %v941_v7, %v1422_v8  ;;  %v940_v36 = vsel %vm8577_vm13, %v4483_v58, %v4478_v47  ;;  %v6112_v5 = vsel %vm8577_vm13, %v4479_v41, %v8563_v32  ;;  %v6124_v47 = vpop.permute.xlu0 %4491  ;;  %v6126_v41 = vpop.permute.xlu1 %4496 }
 0x111   : > { %8705 = vst [vmem:[#allocation5_spill] sm:$0xff] %v8704_v30  ;;  %v459_v29 = vsel %vm8707_vm15, %v8706_v35, %v4463_v44  ;;  %v680_v51 = vsel %vm8709_vm10, %v8708_v24, %v4468_v56  ;;  %8710 = vst [vmem:[#allocation6_spill] sm:$0xff] %v6112_v5  ;;  %v8711_v49 = vunpack.i.h.bf16 %v5652_v37  ;;  %vm8712_vm11 = vcmask 801792  }
 0x112   : > { %vm8713_vm15 = vmmov %vm8712_vm11  ;;  %v1128_v44 = vrot.slane %v653_v12, 3  ;;  %3749 = vmatprep.subr.msk.bf16.mxu0 %vm6096_vm6, %v3747_v63  ;;  %8714 = vst [vmem:[#allocation7_spill] sm:$0xff] %v6124_v47  ;;  %v3750_v4 = vpack.c.bf16 %v940_v36, %v1421_v54  ;;  %v1038_v37 = vrot.slane %v459_v29, 2  ;;  %v1143_v7 = vrot.slane %v680_v51, 2  ;;  %v6138_v63 = vld [vmem:[%s8478_s1] sm:$0xff] }
 0x113   : > { %v486_v23 = vsel %vm8712_vm11, %v8711_v49, %v4488_v38  ;;  %v487_v45 = vsel %vm8713_vm15, %v4488_v38, %v8562_v10  ;;  %v8561_v35 = vunpack.i.h.bf16 %v6124_v47  ;;  %v4493_v24 = vunpack.i.l.bf16 %v6124_v47  ;;  %8715 = vst [vmem:[#allocation8_spill] sm:$0xff] %v6138_v63 }
 0x114   : > { %v1054_v8 = vrot.slane %v487_v45, 1  ;;  %v1189_v12 = vsel %vm8591_vm7, %v5999_v42, %v993_v11  ;;  %v1242_v38 = vsel %vm8591_vm7, %v1235_v21, %v1098_v40  ;;  %v1053_v49 = vrot.slane %v486_v23, 1  ;;  %3752 = vmatpush1.bf16.msk.msra.mxu0 %vm6096_vm6, %v3750_v4  ;;  %v6151_v23 = vpop.permute.xlu0 %4501  ;;  %v6153_v45 = vpop.permute.xlu1 %539 }
 0x115   : > { %v8717_v29 = vunpack.i.h.bf16 %v5654_v20  ;;  %vm8718_vm10 = vcmask 359424   ;;  %v1197_v21 = vsel %vm1193_vm12, %v1189_v12, %v1008_v13  ;;  %v1249_v40 = vsel %vm1193_vm12, %v1242_v38, %v1113_v25  ;;  %v6167_v12 = vld [vmem:[%s8478_s1 + $0x8] sm:$0x3] }
 0x116   : > { %v6141_v54 = vsel %vm8576_vm0, %v1214_v57, %v1054_v8  ;;  %vm8719_vm11 = vmmov %vm8718_vm10  ;;  %v1205_v57 = vsel %vm8582_vm14, %v1197_v21, %v1023_v61  ;;  %v1256_v20 = vsel %vm8582_vm14, %v1249_v40, %v1128_v44  ;;  %8721 = vst [vmem:[#allocation10_spill] sm:$0xff] %v6167_v12  ;;  %vm8730_vm15 = vcmask 343040  }
 0x117   : > { %8716 = vst [vmem:[#allocation9_spill] sm:$0xff] %v6141_v54  ;;  %v707_v51 = vsel %vm8718_vm10, %v8717_v29, %v4493_v24  ;;  %v708_v42 = vsel %vm8719_vm11, %v4493_v24, %v8561_v35  ;;  %v1213_v8 = vsel %vm8578_vm4, %v1205_v57, %v1038_v37  ;;  %v1263_v4 = vsel %vm8578_vm4, %v1256_v20, %v1143_v7  ;;  %vm8733_vm10 = vmmov %vm8730_vm15 }
 0x118   : > { %v1158_v11 = vrot.slane %v707_v51, 1  ;;  %v1159_v36 = vrot.slane %v708_v42, 1  ;;  %3701 = vmatmul.mubr.msk.f32.vlgmr.msra.gmra.mrb[0].mxu0 %vm8575_vm9, %v6138_v63  ;;  %v1221_v13 = vsel %vm8576_vm0, %v1213_v8, %v1053_v49  ;;  %v8720_v24 = vmov 0.0   ;;  %v6174_v7 = vpop.permute.xlu0 %4506  ;;  %v319_v38 = vpop.permute.xlu1 %318 }
 0x119   : > { %1534 = vmatprep.mubr.f32.mxu0 %v8720_v24  ;;  %v8723_v49 = vpack.c.bf16 %v5710_v34, %v5706_v6  ;;  %v4458_v54 = vunpack.i.l.bf16 %v5986_v0  ;;  %vm8585_vm11 = vcmask 916480   ;;  %vm8742_vm14 = vcmask 1039360  }
 0x11a   : > { %v1270_v25 = vsel %vm8576_vm0, %v1263_v4, %v1158_v11  ;;  %v6170_v61 = vsel %vm8576_vm0, %v1264_v60, %v1159_v36  ;;  %v8724_v60 = vunpack.i.l.bf16 %v5764_v33  ;;  %v8725_v36 = vunpack.i.l.bf16 %v5823_v62 }
 0x11b   : > { %8722 = vst [vmem:[#allocation11_spill] sm:$0xff] %v6170_v61  ;;  %v3753_v44 = vpack.c.bf16 %v1270_v25, %v1221_v13  ;;  %vm8735_vm0 = vcmask 351232   ;;  %vm687_vm4 = vcmask 687104  }
 0x11c   : > { %3702 = vmatmul.mubr.msk.f32.gmra.mrb[2].mxu0 %vm8575_vm9, %v6167_v12  ;;  %v332_v29 = vsel %vm8584_vm8, %v319_v38, %v8724_v60  ;;  %v6185_v51 = vpop.permute.xlu0 %549  ;;  %v6187_v42 = vpop.permute.xlu1 %566  ;;  %v8726_v60 = vunpack.i.l.bf16 %v5917_v52  ;;  %vm8586_vm9 = vcmask 719872  }
 0x11d   : > { %3754 = vmatprep.subr.bf16.mxu0 %v3753_v44  ;;  %1605 = vmatprep.mubr.f32.mxu0 %v8720_v24  ;;  %v966_v21 = vrot.slane %v332_v29, 7 }
 0x11e   : > { %3756 = vmatpush1.bf16.msra.mxu0 %v8723_v49 }
 0x11f   : > { %v1176_v57 = vsel %vm1169_vm1, %v5151_v18, %v966_v21 }
 0x120   : > { %v6189_v40 = vpop.permute.xlu0 %4511  ;;  %v6191_v11 = vpop.permute.xlu1 %345 }
 0x121   : > { %v359_v6 = vsel %vm358_vm5, %v6191_v11, %v8725_v36 }
 0x122   : > { %v981_v34 = vrot.slane %v359_v6, 6 }
 0x124   : > { %v1184_v20 = vsel %vm1177_vm3, %v1176_v57, %v981_v34  ;;  %v6200_v8 = vpop.permute.xlu0 %507  ;;  %v6202_v4 = vpop.permute.xlu1 %576 }
 0x128   : > { %v6204_v13 = vpop.permute.xlu0 %593  ;;  %v6206_v25 = vpop.permute.xlu1 %4516 }
 0x12c   : > { %v6208_v44 = vpop.permute.xlu0 %372  ;;  %v6210_v49 = vpop.permute.xlu1 %522 }
 0x12d   : > { %v386_v29 = vsel %vm8587_vm2, %v6208_v44, %v8726_v60 }
 0x12e   : > { %v996_v18 = vrot.slane %v386_v29, 5 }
 0x130   : > { %v1192_v21 = vsel %vm8591_vm7, %v1184_v20, %v996_v18  ;;  %v6217_v36 = vpop.permute.xlu0 %603  ;;  %v6219_v6 = vpop.permute.xlu1 %620 }
 0x134   : > { %v6221_v34 = vpop.permute.xlu0 %4521  ;;  %v6223_v57 = vpop.permute.xlu1 %399 }
 0x135   : > { %v413_v37 = vsel %vm8577_vm13, %v6223_v57, %v4483_v58  ;;  %vm8588_vm13 = vcmask 924672  }
 0x136   : > { %v1011_v56 = vrot.slane %v413_v37, 4  ;;  %v4498_v37 = vunpack.i.l.bf16 %v6126_v41 }
 0x138   : > { %v6230_v35 = vsel %vm1193_vm12, %v1192_v21, %v1011_v56  ;;  %v6232_v60 = vpop.permute.xlu0 %426  ;;  %v6234_v20 = vpop.permute.xlu1 %630  ;;  %v8580_v56 = vunpack.i.h.bf16 %v5986_v0  ;;  %v4503_v21 = vunpack.i.l.bf16 %v6151_v23  ;;  %v8741_v0 = vunpack.i.h.bf16 %v5725_v53 }
 0x139   : > { %8727 = vst [vmem:[#allocation12_spill] sm:$0xff] %v6230_v35  ;;  %v8734_v35 = vunpack.i.h.bf16 %v5690_v2 }
 0x13a   : > { %v6264_v5 = vsel %vm8733_vm10, %v4458_v54, %v8580_v56  ;;  %vm8740_vm10 = vcmask 334848   ;;  %v326_v2 = vsel %vm8742_vm14, %v8741_v0, %v319_v38  ;;  %v4504_v0 = vunpack.i.h.bf16 %v6151_v23 }
 0x13b   : > { %vm660_vm14 = vcmask 695296   ;;  %v965_v30 = vrot.slane %v326_v2, 7 }
 0x13c   : > { %v6236_v29 = vpop.permute.xlu0 %647  ;;  %v6238_v18 = vpop.permute.xlu1 %760 }
 0x13d   : > { %8728 = vst [vmem:[#allocation13_spill] sm:$0xff] %v6238_v18  ;;  %v8729_v18 = vunpack.i.h.bf16 %v5497_v59  ;;  %v734_v59 = vsel %vm8735_vm0, %v8734_v35, %v4498_v37  ;;  %vm8745_vm0 = vcmask 130048   ;;  %v8747_v35 = vunpack.i.h.bf16 %v5764_v33 }
 0x13f   : > { %v766_v12 = vsel %vm8730_vm15, %v8729_v18, %v4458_v54  ;;  %v8736_v18 = vunpack.i.h.bf16 %v5692_v50  ;;  %vm8737_vm15 = vcmask 326656   ;;  %v8739_v54 = vunpack.i.h.bf16 %v5621_v15 }
 0x140   : > { %v6240_v10 = vpop.permute.xlu0 %436  ;;  %v6242_v32 = vpop.permute.xlu1 %453 }
 0x141   : > { %v820_v24 = vsel %vm8737_vm15, %v8736_v18, %v4503_v21  ;;  %v8743_v18 = vunpack.i.l.bf16 %v6174_v7  ;;  %vm8751_vm15 = vcmask 351232  }
 0x142   : > { %v1308_v38 = vrot.slane %v820_v24, 5  ;;  %v8750_v24 = vunpack.i.h.bf16 %v6126_v41 }
 0x144   : > { %v6245_v61 = vpop.permute.xlu0 %657  ;;  %v6247_v58 = vpop.permute.xlu1 %674 }
 0x148   : > { %v6257_v63 = vpop.permute.xlu0 %770  ;;  %v6259_v28 = vpop.permute.xlu1 %787 }
 0x149   : > { %8731 = vst [vmem:[#allocation14_spill] sm:$0xff] %v6257_v63  ;;  %8732 = vst [vmem:[#allocation15_spill] sm:$0xff] %v6259_v28  ;;  %v1278_v28 = vrot.slane %v766_v12, 7  ;;  %v8738_v63 = vunpack.i.l.bf16 %v6062_v26  ;;  %v8744_v12 = vunpack.i.h.bf16 %v5743_v17 }
 0x14b   : > { %v793_v56 = vsel %vm8740_vm10, %v8739_v54, %v8738_v63  ;;  %v847_v47 = vsel %vm8745_vm0, %v8744_v12, %v8743_v18  ;;  %v1382_v53 = vsel %vm1169_vm1, %v734_v59, %v1278_v28  ;;  %v8746_v54 = vunpack.i.l.bf16 %v6189_v40 }
 0x14c   : > { %v6289_v15 = vpop.permute.xlu0 %463  ;;  %v6291_v63 = vpop.permute.xlu1 %480  ;;  %vm8590_vm10 = vcmask 941056   ;;  %v1293_v17 = vrot.slane %v793_v56, 6  ;;  %v8748_v18 = vunpack.i.h.bf16 %v5741_v9  ;;  %vm8749_vm0 = vcmask 785408  }
 0x14d   : > { %v871_v50 = vsel %vm8584_vm8, %v8747_v35, %v8746_v54  ;;  %v4518_v28 = vunpack.i.l.bf16 %v6206_v25  ;;  %v6308_v59 = vsel %vm8751_vm15, %v4498_v37, %v8750_v24  ;;  %v1323_v33 = vrot.slane %v847_v47, 4 }
 0x14e   : > { %v547_v12 = vsel %vm8749_vm0, %v8748_v18, %v6153_v45  ;;  %v4523_v56 = vunpack.i.l.bf16 %v6221_v34  ;;  %v1389_v54 = vsel %vm1177_vm3, %v1382_v53, %v1293_v17  ;;  %v8752_v9 = vunpack.i.h.bf16 %v5799_v39 }
 0x14f   : > { %v553_v35 = vsel %vm8585_vm11, %v547_v12, %v6185_v51  ;;  %vm8753_vm0 = vcmask 588800   ;;  %v1338_v2 = vrot.slane %v871_v50, 3  ;;  %v8754_v18 = vunpack.i.h.bf16 %v5797_v46 }
 0x150   : > { %v574_v45 = vsel %vm8753_vm0, %v8752_v9, %v6187_v42  ;;  %vm8755_vm8 = vcmask 1031168   ;;  %v6322_v24 = vpop.permute.xlu0 %684  ;;  %v702_v47 = vpop.permute.xlu1 %701  ;;  %vm8756_vm15 = vcmask 326656   ;;  %v1396_v53 = vsel %vm8591_vm7, %v1389_v54, %v1308_v38 }
 0x151   : > { %v353_v37 = vsel %vm8755_vm8, %v8754_v18, %v6191_v11  ;;  %v6327_v12 = vsel %vm8756_vm15, %v4503_v21, %v4504_v0  ;;  %v4509_v39 = vunpack.i.h.bf16 %v6174_v7  ;;  %v580_v42 = vsel %vm8586_vm9, %v574_v45, %v6202_v4 }
 0x152   : > { %v1175_v46 = vsel %vm1169_vm1, %v5125_v14, %v965_v30  ;;  %v1070_v50 = vrot.slane %v553_v35, 7  ;;  %v8757_v11 = vunpack.i.h.bf16 %v5823_v62  ;;  %v8758_v21 = vunpack.i.h.bf16 %v5848_v48 }
 0x153   : > { %vm8759_vm8 = vcmask 1022976   ;;  %vm8589_vm0 = vcmask 932864   ;;  %v4514_v54 = vunpack.i.h.bf16 %v6189_v40  ;;  %v980_v9 = vrot.slane %v353_v37, 6 }
 0x154   : > { %v895_v17 = vsel %vm358_vm5, %v8757_v11, %v4518_v28  ;;  %v380_v38 = vsel %vm8759_vm8, %v8758_v21, %v6208_v44  ;;  %v8760_v14 = vunpack.i.h.bf16 %v5917_v52  ;;  %v1403_v35 = vsel %vm1193_vm12, %v1396_v53, %v1323_v33  ;;  %v6359_v37 = vpop.permute.xlu0 %728  ;;  %v6366_v53 = vpop.permute.xlu1 %797 }
 0x155   : > { %vm714_vm15 = vcmask 490496   ;;  %v8761_v62 = vunpack.i.h.bf16 %v5850_v55  ;;  %vm8762_vm11 = vcmask 793600   ;;  %v1085_v45 = vrot.slane %v580_v42, 6 }
 0x156   : > { %v919_v30 = vsel %vm8587_vm2, %v8760_v14, %v4523_v56  ;;  %v8763_v44 = vunpack.i.h.bf16 %v5883_v31  ;;  %vm8764_vm8 = vcmask 580608   ;;  %vm8765_vm9 = vcmask 1044480  }
 0x157   : > { %v515_v48 = vsel %vm8762_vm11, %v8761_v62, %v6200_v8  ;;  %v1410_v52 = vsel %vm8765_vm9, %v1403_v35, %v1338_v2  ;;  %v1353_v11 = vrot.slane %v895_v17, 2  ;;  %v995_v21 = vrot.slane %v380_v38, 5 }
 0x158   : > { %v601_v18 = vsel %vm8764_vm8, %v8763_v44, %v6204_v13  ;;  %v526_v33 = vsel %vm8588_vm13, %v515_v48, %v6210_v49  ;;  %vm8766_vm2 = vcmask 711680   ;;  %v8767_v8 = vunpack.i.h.bf16 %v5950_v19  ;;  %v6401_v48 = vpop.permute.xlu0 %814 }
 0x159   : > { %v607_v55 = vsel %vm8766_vm2, %v601_v18, %v6217_v36  ;;  %vm8768_vm11 = vcmask 572416   ;;  %v1368_v13 = vrot.slane %v919_v30, 1  ;;  %v8769_v42 = vunpack.i.h.bf16 %v5919_v3  ;;  %v8779_v30 = vld [vmem:[#allocation4_spill] sm:$0xff] }
 0x15a   : > { %v628_v31 = vsel %vm8768_vm11, %v8767_v8, %v6219_v6  ;;  %vm8770_vm9 = vcmask 1014784   ;;  %v8771_v17 = vunpack.i.h.bf16 %v5952_v43  ;;  %vm8772_vm8 = vcmask 818176  }
 0x15b   : > { %v407_v2 = vsel %vm8770_vm9, %v8769_v42, %v6223_v57  ;;  %vm8773_vm2 = vcmask 703488   ;;  %v8774_v35 = vunpack.i.h.bf16 %v5984_v1  ;;  %vm8775_vm13 = vcmask 564224  }
 0x15c   : > { %v434_v38 = vsel %vm8772_vm8, %v8771_v17, %v6232_v60  ;;  %v634_v14 = vsel %vm8773_vm2, %v628_v31, %v6234_v20  ;;  %vm8776_vm11 = vcmask 949248   ;;  %v8777_v3 = vunpack.i.h.bf16 %v6019_v16 }
 0x15d   : > { %v655_v19 = vsel %vm8775_vm13, %v8774_v35, %v6236_v29  ;;  %v440_v6 = vsel %vm8776_vm11, %v434_v38, %v6240_v10  ;;  %vm8778_vm9 = vcmask 809984   ;;  %v1230_v43 = vsel %vm1169_vm1, %v526_v33, %v1070_v50 }
 0x15e   : > { %v461_v57 = vsel %vm8778_vm9, %v8777_v3, %v6242_v32  ;;  %v661_v60 = vsel %vm660_vm14, %v655_v19, %v6245_v61  ;;  %v8780_v62 = vunpack.i.h.bf16 %v8779_v30  ;;  %vm8781_vm8 = vcmask 556032   ;;  %v6405_v32 = vpop.permute.xlu1 %934  ;;  %v8793_v30 = vld [vmem:[#allocation6_spill] sm:$0xff] }
 0x15f   : > { %v467_v29 = vsel %vm8590_vm10, %v461_v57, %v6289_v15  ;;  %v1100_v44 = vrot.slane %v607_v55, 5  ;;  %v1010_v18 = vrot.slane %v407_v2, 4  ;;  %vm8782_vm13 = vcmask 1045504   ;;  %v2089_v57 = vld [vmem:[%s8482_s5 + $0x218] sm:$0xff] }
 0x160   : > { %v682_v1 = vsel %vm8781_vm8, %v8780_v62, %v6247_v58  ;;  %v1417_v50 = vsel %vm8782_vm13, %v1410_v52, %v1353_v11  ;;  %v1115_v33 = vrot.slane %v634_v14, 4  ;;  %v1025_v8 = vrot.slane %v440_v6, 3  ;;  %v8794_v62 = vld [vmem:[#allocation2_spill] sm:$0xff] }
 0x161   : > { %v688_v16 = vsel %vm687_vm4, %v682_v1, %v6322_v24  ;;  %v8783_v31 = vunpack.i.h.bf16 %v6085_v22  ;;  %vm8784_vm14 = vcmask 97280   ;;  %vm8785_vm2 = vcmask 1046528   ;;  %v6420_v22 = vpop.permute.xlu0 %490 }
 0x162   : > { %v1424_v42 = vsel %vm8785_vm2, %v1417_v50, %v1368_v13  ;;  %v1183_v17 = vsel %vm1177_vm3, %v1175_v46, %v980_v9  ;;  %v1130_v55 = vrot.slane %v661_v60, 3  ;;  %v1040_v2 = vrot.slane %v467_v29, 2  ;;  %v8788_v46 = vld [vmem:[#allocation7_spill] sm:$0xff] }
 0x163   : > { %v943_v58 = vsel %vm8784_vm14, %v8783_v31, %v6405_v32  ;;  %v1191_v35 = vsel %vm8591_vm7, %v1183_v17, %v995_v21  ;;  %v1237_v19 = vsel %vm1177_vm3, %v1230_v43, %v1085_v45  ;;  %v8786_v52 = vunpack.i.h.bf16 %v6087_v27  ;;  %v6429_v45 = vpop.permute.xlu1 %711 }
 0x164   : > { %v3757_v38 = vpack.c.bf16 %v943_v58, %v1424_v42  ;;  %vm8787_vm4 = vcmask 801792   ;;  %v1145_v14 = vrot.slane %v688_v16, 2  ;;  %v1244_v6 = vsel %vm8591_vm7, %v1237_v19, %v1100_v44  ;;  %v8806_v19 = vld [vmem:[#allocation8_spill] sm:$0xff] }
 0x165   : > { %v488_v11 = vsel %vm8787_vm4, %v8786_v52, %v6291_v63  ;;  %v1199_v13 = vsel %vm1193_vm12, %v1191_v35, %v1010_v18  ;;  %v8789_v9 = vunpack.i.h.bf16 %v8788_v46  ;;  %vm8790_vm11 = vcmask 359424   ;;  %v6455_v58 = vpop.permute.xlu0 %743  ;;  %vm8802_vm4 = vmmov %vm8782_vm13 }
 0x166   : > { %v494_v21 = vsel %vm8589_vm0, %v488_v11, %v6420_v22  ;;  %3759 = vmatprep.subr.msk.bf16.mxu0 %vm6096_vm6, %v3757_v38  ;;  %v1251_v27 = vsel %vm1193_vm12, %v1244_v6, %v1115_v33  ;;  %vm8792_vm9 = vcmask 1044480   ;;  %v8795_v1 = vpack.c.bf16 %v8793_v30, %v8794_v62  ;;  %v8812_v30 = vld [vmem:[#allocation11_spill] sm:$0xff]  ;;  %v8813_v62 = vld [vmem:[#allocation9_spill] sm:$0xff] }
 0x167   : > { %v709_v3 = vsel %vm8790_vm11, %v8789_v9, %v702_v47  ;;  %v1207_v63 = vsel %vm8792_vm9, %v1199_v13, %v1025_v8  ;;  %v1055_v43 = vrot.slane %v494_v21, 1  ;;  %v4519_v47 = vunpack.i.h.bf16 %v6206_v25  ;;  %vm8796_vm8 = vmmov %vm8792_vm9  ;;  %v6464_v38 = vpop.permute.xlu1 %824 }
 0x168   : > { %v715_v60 = vsel %vm714_vm15, %v709_v3, %v6429_v45  ;;  %3762 = vmatpush1.bf16.msk.msra.mxu0 %vm6096_vm6, %v8795_v1  ;;  %v1258_v29 = vsel %vm8796_vm8, %v1251_v27, %v1130_v55  ;;  %v1215_v18 = vsel %vm8782_vm13, %v1207_v63, %v1040_v2  ;;  %v8797_v16 = vunpack.i.h.bf16 %v6062_v26  ;;  %vm8805_vm9 = vmmov %vm8785_vm2  ;;  %v8810_v63 = vld [vmem:[#allocation10_spill] sm:$0xff] }
 0x169   : > { %v1160_v44 = vrot.slane %v715_v60, 1  ;;  %v8798_v50 = vunpack.i.l.bf16 %v6062_v26  ;;  %vm8799_vm14 = vcmask 334848   ;;  %v8800_v8 = vunpack.i.l.bf16 %v6174_v7 }
 0x16a   : > { %vm8801_vm15 = vcmask 130048   ;;  %v1223_v42 = vsel %vm8785_vm2, %v1215_v18, %v1055_v43  ;;  %v1265_v17 = vsel %vm8802_vm4, %v1258_v29, %v1145_v14  ;;  %v8803_v55 = vunpack.i.l.bf16 %v6189_v40 }
 0x16b   : > { %v794_v33 = vsel %vm8799_vm14, %v8798_v50, %v8797_v16  ;;  %v848_v31 = vsel %vm8801_vm15, %v8800_v8, %v4509_v39  ;;  %vm8804_vm11 = vcmask 121856   ;;  %v1272_v35 = vsel %vm8805_vm9, %v1265_v17, %v1160_v44  ;;  %v8816_v16 = vld [vmem:[#allocation13_spill] sm:$0xff]  ;;  %v8817_v50 = vld [vmem:[#allocation3_spill] sm:$0xff]  ;;  %v8820_v17 = vld [vmem:[#allocation14_spill] sm:$0xff] }
 0x16c   : > { %v872_v2 = vsel %vm8804_vm11, %v8803_v55, %v4514_v54  ;;  %vm8807_vm8 = vcmask 203776   ;;  %v8808_v52 = vrot.slane %v6264_v5, 7  ;;  %v1309_v14 = vrot.slane %v6327_v12, 5  ;;  %v842_v5 = vpop.permute.xlu0 %841  ;;  %v6482_v12 = vpop.permute.xlu1 %851 }
 0x16d   : > { %3705 = vmatmul.mubr.msk.f32.vlgmr.msra.gmra.mrb[4].mxu0 %vm8807_vm8, %v8806_v19  ;;  %v8809_v6 = vmov 0.0   ;;  %v1294_v13 = vrot.slane %v794_v33, 6  ;;  %v1324_v46 = vrot.slane %v848_v31, 4  ;;  %v896_v9 = vsel %vm358_vm5, %v4518_v28, %v4519_v47  ;;  %vm8811_vm4 = vmmov %vm8807_vm8 }
 0x16e   : > { %v1383_v11 = vsel %vm1169_vm1, %v6308_v59, %v8808_v52  ;;  %1611 = vmatprep.mubr.f32.mxu0 %v8809_v6  ;;  %v3763_v3 = vpack.c.bf16 %v1272_v35, %v1223_v42  ;;  %v1071_v21 = vrot.slane %v6185_v51, 7  ;;  %v1339_v27 = vrot.slane %v872_v2, 3 }
 0x16f   : > { %vm773_vm13 = vcmask 474112   ;;  %v1390_v59 = vsel %vm1177_vm3, %v1383_v11, %v1294_v13  ;;  %vm800_vm14 = vcmask 465920   ;;  %vm746_vm15 = vcmask 482304  }
 0x170   : > { %vm827_vm2 = vcmask 457728   ;;  %3764 = vmatprep.subr.bf16.mxu0 %v3763_v3  ;;  %v1397_v43 = vsel %vm8591_vm7, %v1390_v59, %v1309_v14  ;;  %v1354_v28 = vrot.slane %v896_v9, 2  ;;  %v1231_v51 = vsel %vm1169_vm1, %v6210_v49, %v1071_v21  ;;  %v6506_v55 = vpop.permute.xlu1 %875 }
 0x171   : > { %3706 = vmatmul.mubr.msk.f32.gmra.mrb[6].mxu0 %vm8811_vm4, %v8810_v63  ;;  %v1101_v60 = vrot.slane %v6217_v36, 5  ;;  %v8814_v1 = vpack.c.bf16 %v8812_v30, %v8813_v62  ;;  %v1404_v29 = vsel %vm1193_vm12, %v1397_v43, %v1324_v46  ;;  %v1086_v44 = vrot.slane %v6202_v4, 6  ;;  %v867_v36 = vpop.permute.xlu0 %866 }
 0x172   : > { %1682 = vmatprep.mubr.f32.mxu0 %v8809_v6  ;;  %vm854_vm11 = vcmask 261120   ;;  %vm878_vm9 = vcmask 252928   ;;  %vm8815_vm8 = vcmask 1044480   ;;  %v8818_v33 = vunpack.i.h.bf16 %v8817_v50 }
 0x173   : > { %3766 = vmatpush1.bf16.msra.mxu0 %v8814_v1  ;;  %v1411_v18 = vsel %vm8815_vm8, %v1404_v29, %v1339_v27  ;;  %vm8819_vm4 = vcmask 343040   ;;  %vm902_vm0 = vcmask 244736   ;;  %vm926_vm10 = vcmask 236544  }
 0x174   : > { %v768_v49 = vsel %vm8819_vm4, %v8818_v33, %v8816_v16  ;;  %v1238_v8 = vsel %vm1177_vm3, %v1231_v51, %v1086_v44  ;;  %v4524_v31 = vunpack.i.h.bf16 %v6221_v34  ;;  %v1116_v42 = vrot.slane %v6234_v20, 4  ;;  %v8824_v20 = vld [vmem:[#allocation15_spill] sm:$0xff] }
 0x175   : > { %v774_v4 = vsel %vm773_vm13, %v768_v49, %v8820_v17  ;;  %v1245_v2 = vsel %vm8591_vm7, %v1238_v8, %v1101_v60  ;;  %v1026_v35 = vrot.slane %v6240_v10, 3  ;;  %v8821_v52 = vunpack.i.h.bf16 %v6126_v41  ;;  %v891_v21 = vpop.permute.xlu0 %890 }
 0x176   : > { %vm8822_vm8 = vcmask 351232   ;;  %vm8823_vm4 = vcmask 1045504   ;;  %v1131_v13 = vrot.slane %v6245_v61, 3  ;;  %v8825_v46 = vunpack.i.h.bf16 %v6062_v26 }
 0x177   : > { %v736_v11 = vsel %vm8822_vm8, %v8821_v52, %v6359_v37  ;;  %v6515_v14 = vsel %vm8823_vm4, %v1411_v18, %v1354_v28  ;;  %vm8826_vm13 = vcmask 334848   ;;  %vm8827_vm7 = vcmask 130048  }
 0x178   : > { %v795_v9 = vsel %vm8826_vm13, %v8825_v46, %v8824_v20  ;;  %v747_v3 = vsel %vm746_vm15, %v736_v11, %v6455_v58  ;;  %v849_v10 = vsel %vm8827_vm7, %v4509_v39, %v842_v5  ;;  %v1280_v41 = vrot.slane %v774_v4, 7  ;;  %v900_v5 = vpop.permute.xlu1 %899 }
 0x179   : > { %v801_v37 = vsel %vm800_vm14, %v795_v9, %v6366_v53  ;;  %vm8828_vm8 = vcmask 326656   ;;  %vm8829_vm4 = vcmask 121856   ;;  %vm8830_vm15 = vcmask 105472   ;;  %v915_v30 = vpop.permute.xlu0 %914 }
 0x17a   : > { %v822_v61 = vsel %vm8828_vm8, %v4504_v0, %v6401_v48  ;;  %v873_v26 = vsel %vm8829_vm4, %v4514_v54, %v867_v36  ;;  %v920_v7 = vsel %vm8830_vm15, %v4523_v56, %v4524_v31  ;;  %v1252_v39 = vsel %vm1193_vm12, %v1245_v2, %v1116_v42  ;;  %v8831_v0 = vld [vmem:[#allocation12_spill] sm:$0xff] }
 0x17b   : > { %v828_v27 = vsel %vm827_vm2, %v822_v61, %v6464_v38  ;;  %v897_v23 = vsel %vm358_vm5, %v4519_v47, %v891_v21  ;;  %vm950_vm7 = vcmask 228352   ;;  %vm8832_vm14 = vcmask 1044480  }
 0x17c   : > { %v1208_v40 = vsel %vm8832_vm14, %v8831_v0, %v1026_v35  ;;  %v1281_v54 = vrot.slane %v8820_v17, 7  ;;  %v1384_v34 = vsel %vm1169_vm1, %v747_v3, %v1280_v41  ;;  %v855_v56 = vsel %vm854_vm11, %v849_v10, %v6482_v12  ;;  %vm8833_vm2 = vmmov %vm8832_vm14  ;;  %v924_v29 = vpop.permute.xlu1 %923 }
 0x17d   : > { %v1041_v48 = vrot.slane %v6289_v15, 2  ;;  %v1146_v59 = vrot.slane %v6322_v24, 2  ;;  %v1295_v43 = vrot.slane %v801_v37, 6  ;;  %v879_v25 = vsel %vm878_vm9, %v873_v26, %v6506_v55  ;;  %vm8834_vm11 = vmmov %vm8830_vm15  ;;  %v4527_v17 = vpop.permute.xlu0 %4526 }
 0x17e   : > { %v1259_v47 = vsel %vm8833_vm2, %v1252_v39, %v1131_v13  ;;  %v1296_v28 = vrot.slane %v6366_v53, 6  ;;  %v1310_v51 = vrot.slane %v828_v27, 5  ;;  %v903_v60 = vsel %vm902_vm0, %v897_v23, %v900_v5 }
 0x17f   : > { %v1385_v62 = vsel %vm1169_vm1, %v6455_v58, %v1281_v54  ;;  %v1391_v1 = vsel %vm1177_vm3, %v1384_v34, %v1295_v43  ;;  %v1325_v15 = vrot.slane %v855_v56, 4  ;;  %v921_v24 = vsel %vm8834_vm11, %v4524_v31, %v915_v30  ;;  %v2087_v54 = vld [vmem:[%s8482_s5 + $0x208] sm:$0xff]  ;;  %v2088_v34 = vld [vmem:[%s8482_s5 + $0x210] sm:$0xff] }
 0x180   : > { %v1056_v44 = vrot.slane %v6420_v22, 1  ;;  %v1161_v18 = vrot.slane %v6429_v45, 1  ;;  %v1340_v16 = vrot.slane %v879_v25, 3  ;;  %v927_v53 = vsel %vm926_vm10, %v921_v24, %v924_v29  ;;  %vm8838_vm10 = vmmov %vm8833_vm2  ;;  %v948_v9 = vpop.permute.xlu1 %947  ;;  %v2091_v56 = vld [vmem:[%s8482_s5 + $0x228] sm:$0xff]  ;;  %v2090_v25 = vld [vmem:[%s8482_s5 + $0x220] sm:$0xff] }
 0x181   : > { %v1369_v50 = vrot.slane %v920_v7, 1  ;;  %v1355_v33 = vrot.slane %v903_v60, 2  ;;  %vm8835_vm0 = vcmask 1045504   ;;  %v1392_v58 = vsel %vm1177_vm3, %v1385_v62, %v1296_v28  ;;  %v2095_v28 = vld [vmem:[%s8482_s5 + $0x248] sm:$0xff]  ;;  %v2094_v62 = vld [vmem:[%s8482_s5 + $0x240] sm:$0xff]  ;;  %v2101_v24 = vld [vmem:[%s8482_s5 + $0x278] sm:$0xff] }
 0x182   : > { %v1216_v49 = vsel %vm8835_vm0, %v1208_v40, %v1041_v48  ;;  %vm8836_vm9 = vmmov %vm8835_vm0  ;;  %v1311_v8 = vrot.slane %v6464_v38, 5  ;;  %vm8837_vm1 = vcmask 1042432   ;;  %v1370_v42 = vrot.slane %v927_v53, 1  ;;  %v2093_v48 = vld [vmem:[%s8482_s5 + $0x238] sm:$0xff]  ;;  %v2103_v53 = vld [vmem:[%s8482_s5 + $0x288] sm:$0xff] }
 0x183   : > { %v1266_v36 = vsel %vm8836_vm9, %v1259_v47, %v1146_v59  ;;  %v1398_v31 = vsel %vm8837_vm1, %v1391_v1, %v1310_v51  ;;  %v1326_v22 = vrot.slane %v6482_v12, 4  ;;  %v4529_v4 = vunpack.i.h.bf16 %v4527_v17  ;;  %vm8843_vm14 = vmmov %vm8835_vm0  ;;  %v2092_v47 = vld [vmem:[%s8482_s5 + $0x230] sm:$0xff]  ;;  %v2097_v51 = vld [vmem:[%s8482_s5 + $0x258] sm:$0xff] }
 0x184   : > { %v1405_v45 = vsel %vm1193_vm12, %v1398_v31, %v1325_v15  ;;  %v4528_v2 = vunpack.i.l.bf16 %v4527_v17  ;;  %v1341_v35 = vrot.slane %v6506_v55, 3  ;;  %vm8839_vm13 = vcmask 1046528   ;;  %vm8844_vm2 = vmmov %vm8837_vm1  ;;  %v2096_v1 = vld [vmem:[%s8482_s5 + $0x250] sm:$0xff]  ;;  %v2099_v15 = vld [vmem:[%s8482_s5 + $0x268] sm:$0xff] }
 0x185   : > { %v1412_v52 = vsel %vm8838_vm10, %v1405_v45, %v1340_v16  ;;  %v1224_v11 = vsel %vm8839_vm13, %v1216_v49, %v1056_v44  ;;  %vm8840_vm8 = vmmov %vm8839_vm13  ;;  %v1356_v20 = vrot.slane %v900_v5, 2  ;;  %vm8841_vm4 = vcmask 97280   ;;  %v2100_v16 = vld [vmem:[%s8482_s5 + $0x270] sm:$0xff]  ;;  %v2109_v31 = vld [vmem:[%s8482_s5 + $0x2b8] sm:$0xff] }
 0x186   : > { %v1273_v13 = vsel %vm8840_vm8, %v1266_v36, %v1161_v18  ;;  %v944_v38 = vsel %vm8841_vm4, %v6405_v32, %v4528_v2  ;;  %vm8842_vm15 = vmmov %vm8841_vm4  ;;  %v1419_v12 = vsel %vm8843_vm14, %v1412_v52, %v1355_v33  ;;  %v1399_v3 = vsel %vm8844_vm2, %v1392_v58, %v1311_v8  ;;  %v2098_v18 = vld [vmem:[%s8482_s5 + $0x260] sm:$0xff]  ;;  %v2104_v58 = vld [vmem:[%s8482_s5 + $0x290] sm:$0xff] }
 0x187   : > { %v945_v46 = vsel %vm8842_vm15, %v4528_v2, %v4529_v4  ;;  %v1371_v10 = vrot.slane %v924_v29, 1  ;;  %vm8845_vm11 = vmmov %vm8840_vm8  ;;  %v1406_v37 = vsel %vm1193_vm12, %v1399_v3, %v1326_v22  ;;  %v3773_v39 = vpack.c.bf16 %v1273_v13, %v1224_v11  ;;  %v2102_v36 = vld [vmem:[%s8482_s5 + $0x280] sm:$0xff]  ;;  %v2107_v8 = vld [vmem:[%s8482_s5 + $0x2a8] sm:$0xff] }
 0x188   : > { %v951_v55 = vsel %vm950_vm7, %v945_v46, %v948_v9  ;;  %v1426_v41 = vsel %vm8845_vm11, %v1419_v12, %v1370_v42  ;;  %vm8846_vm0 = vmmov %vm8840_vm8  ;;  %vm8850_vm7 = vcmask 203776   ;;  %v3851_v43 = vpack.c.bf16 %v2093_v48, %v2091_v56  ;;  %v2106_v22 = vld [vmem:[%s8482_s5 + $0x2a0] sm:$0xff]  ;;  %v2108_v45 = vld [vmem:[%s8482_s5 + $0x2b0] sm:$0xff] }
 0x189   : > { %v1425_v61 = vsel %vm8846_vm0, %v6515_v14, %v1369_v50  ;;  %v3767_v26 = vpack.c.bf16 %v951_v55, %v1426_v41  ;;  %vm8847_vm9 = vmmov %vm8838_vm10  ;;  %v3853_v60 = vpack.c.bf16 %v2092_v47, %v2090_v25  ;;  %v3855_v30 = vpack.c.bf16 %v2097_v51, %v2095_v28  ;;  %v2105_v50 = vld [vmem:[%s8482_s5 + $0x298] sm:$0xff]  ;;  %v2111_v4 = vld [vmem:[%s8482_s5 + $0x2c8] sm:$0xff] }
 0x18a   : > { %v1413_v32 = vsel %vm8847_vm9, %v1406_v37, %v1341_v35  ;;  %v3770_v21 = vpack.c.bf16 %v944_v38, %v1425_v61  ;;  %vm8848_vm1 = vmmov %vm8843_vm14  ;;  %v3857_v29 = vpack.c.bf16 %v2096_v1, %v2094_v62  ;;  %v3859_v44 = vpack.c.bf16 %v2101_v24, %v2099_v15  ;;  %v2113_v2 = vld [vmem:[%s8482_s5 + $0x2d8] sm:$0xff]  ;;  %v2110_v11 = vld [vmem:[%s8482_s5 + $0x2c0] sm:$0xff] }
 0x18b   : > { %v1420_v7 = vsel %vm8848_vm1, %v1413_v32, %v1356_v20  ;;  %3769 = vmatprep.subr.msk.bf16.mxu0 %vm6096_vm6, %v3767_v26  ;;  %vm8849_vm10 = vmmov %vm8846_vm0  ;;  %v3861_v33 = vpack.c.bf16 %v2100_v16, %v2098_v18  ;;  %v3863_v49 = vpack.c.bf16 %v2105_v50, %v2103_v53  ;;  %v3865_v42 = vpack.c.bf16 %v2104_v58, %v2102_v36  ;;  %v2112_v13 = vld [vmem:[%s8482_s5 + $0x2d0] sm:$0xff]  ;;  %v2115_v20 = vld [vmem:[%s8482_s5 + $0x2e8] sm:$0xff]  ;;  %v6776_v16 = vpop.permute.xlu0 %1434 }
 0x18c   : > { %v1427_v27 = vsel %vm8849_vm10, %v1420_v7, %v1371_v10  ;;  %3772 = vmatpush1.bf16.msk.msra.mxu0 %vm6096_vm6, %v3770_v21  ;;  %vm8851_vm13 = vmmov %vm8850_vm7  ;;  %v3867_v17 = vpack.c.bf16 %v2109_v31, %v2107_v8  ;;  %v3869_v35 = vpack.c.bf16 %v2108_v45, %v2106_v22  ;;  %v3871_v52 = vpack.c.bf16 %v2113_v2, %v2111_v4  ;;  %v2117_v38 = vld [vmem:[%s8482_s5 + $0x2f8] sm:$0xff]  ;;  %v2114_v12 = vld [vmem:[%s8482_s5 + $0x2e0] sm:$0xff]  ;;  %v6789_v8 = vpop.permute.xlu1 %1439 }
 0x18d   : > { %3774 = vmatprep.subr.bf16.mxu0 %v3773_v39  ;;  %v3777_v23 = vpack.c.bf16 %v948_v9, %v1427_v27  ;;  %vm8852_vm8 = vmmov %vm8850_vm7  ;;  %v3873_v46 = vpack.c.bf16 %v2112_v13, %v2110_v11  ;;  %v3875_v9 = vpack.c.bf16 %v2117_v38, %v2115_v20  ;;  %v2116_v3 = vld [vmem:[%s8482_s5 + $0x2f0] sm:$0xff]  ;;  %v2119_v10 = vld [vmem:[%s8482_s5 + $0x308] sm:$0xff]  ;;  %vm8856_vm14 = vcmask 818176  }
 0x18e   : > { %vm8853_vm4 = vmmov %vm8850_vm7  ;;  %v2121_v55 = vld [vmem:[%s8482_s5 + $0x318] sm:$0xff]  ;;  %v3877_v41 = vpack.c.bf16 %v2116_v3, %v2114_v12  ;;  %v2118_v61 = vld [vmem:[%s8482_s5 + $0x300] sm:$0xff]  ;;  %vm8857_vm2 = vcmask 809984  }
 0x18f   : > { %3709 = vmatmul.mubr.msk.f32.vlgmr.msra.gmra.mrb[8].mxu0 %vm8850_vm7, %v8806_v19  ;;  %v3879_v37 = vpack.c.bf16 %v2121_v55, %v2119_v10  ;;  %v2120_v26 = vld [vmem:[%s8482_s5 + $0x310] sm:$0xff]  ;;  %v2123_v32 = vld [vmem:[%s8482_s5 + $0x328] sm:$0xff]  ;;  %v2125_v21 = vld [vmem:[%s8482_s5 + $0x338] sm:$0xff] }
 0x190   : > { %3776 = vmatpush3.bf16.msra.mxu0 %v3773_v39  ;;  %1688 = vmatprep.mubr.f32.mxu0 %v8809_v6  ;;  %v3881_v7 = vpack.c.bf16 %v2120_v26, %v2118_v61  ;;  %v2122_v39 = vld [vmem:[%s8482_s5 + $0x320] sm:$0xff]  ;;  %v3883_v27 = vpack.c.bf16 %v2125_v21, %v2123_v32  ;;  %v2024_v48 = vld [vmem:[%s8482_s5 + $0x10] sm:$0xff]  ;;  %v2027_v28 = vld [vmem:[%s8482_s5 + $0x28] sm:$0xff] }
 0x191   : > { %3779 = vmatprep.subr.msk.bf16.mxu0 %vm6096_vm6, %v3777_v23  ;;  %v2128_v25 = vld [vmem:[%s8482_s5 + $0x350] sm:$0xff]  ;;  %v2026_v62 = vld [vmem:[%s8482_s5 + $0x20] sm:$0xff]  ;;  %v2131_v24 = vld [vmem:[%s8482_s5 + $0x368] sm:$0xff] }
 0x192   : > { %v2028_v1 = vld [vmem:[%s8482_s5 + $0x30] sm:$0xff]  ;;  %v2130_v36 = vld [vmem:[%s8482_s5 + $0x360] sm:$0xff]  ;;  %v2031_v13 = vld [vmem:[%s8482_s5 + $0x48] sm:$0xff] }
 0x193   : > { %3710 = vmatmul.mubr.msk.f32.gmra.mrb[10].mxu0 %vm8851_vm13, %v8810_v63  ;;  %v3789_v18 = vpack.c.bf16 %v2028_v1, %v2026_v62  ;;  %v2132_v58 = vld [vmem:[%s8482_s5 + $0x370] sm:$0xff]  ;;  %v2033_v20 = vld [vmem:[%s8482_s5 + $0x58] sm:$0xff]  ;;  %v2030_v38 = vld [vmem:[%s8482_s5 + $0x40] sm:$0xff] }
 0x194   : > { %3782 = vmatpush3.bf16.msk.msra.mxu0 %vm6096_vm6, %v3777_v23  ;;  %3740 = vmatprep.mubr.msk.f32.mxu0 %vm8852_vm8, %v8806_v19  ;;  %v2086_v19 = vld [vmem:[%s8482_s5 + $0x200] sm:$0xff]  ;;  %v2124_v23 = vld [vmem:[%s8482_s5 + $0x330] sm:$0xff]  ;;  %v3893_v45 = vpack.c.bf16 %v2132_v58, %v2130_v36  ;;  %v2139_v12 = vld [vmem:[%s8482_s5 + $0x3a8] sm:$0xff]  ;;  %vm8854_vm6 = vcmask 1039360  }
 0x195   : > { %v3849_v59 = vpack.c.bf16 %v2088_v34, %v2086_v19  ;;  %v2023_v19 = vld [vmem:[%s8482_s5 + $0x8] sm:$0xff]  ;;  %v2022_v34 = vld [vmem:[%s8482_s5] sm:$0xff]  ;;  %v2141_v3 = vld [vmem:[%s8482_s5 + $0x3b8] sm:$0xff] }
 0x196   : > { %v3785_v47 = vpack.c.bf16 %v2024_v48, %v2022_v34  ;;  %v3899_v55 = vpack.c.bf16 %v2141_v3, %v2139_v12  ;;  %v2035_v26 = vld [vmem:[%s8482_s5 + $0x68] sm:$0xff]  ;;  %v2037_v32 = vld [vmem:[%s8482_s5 + $0x78] sm:$0xff]  ;;  %v2034_v21 = vld [vmem:[%s8482_s5 + $0x60] sm:$0xff] }
 0x197   : > { %3741 = vmatmul.mubr.msk.f32.vlgmr.msra.gmra.mrb[12].mxu0 %vm8853_vm4, %v8810_v63  ;;  %v3847_v63 = vpack.c.bf16 %v2089_v57, %v2087_v54  ;;  %v2127_v54 = vld [vmem:[%s8482_s5 + $0x348] sm:$0xff]  ;;  %v2129_v57 = vld [vmem:[%s8482_s5 + $0x358] sm:$0xff]  ;;  %v2144_v34 = vld [vmem:[%s8482_s5 + $0x3d0] sm:$0xff] }
 0x198   : > { %v2040_v62 = vld [vmem:[%s8482_s5 + $0x90] sm:$0xff]  ;;  %v2147_v1 = vld [vmem:[%s8482_s5 + $0x3e8] sm:$0xff]  ;;  %v2045_v36 = vld [vmem:[%s8482_s5 + $0xb8] sm:$0xff] }
 0x199   : > { %3848 = vmatprep.subr.bf16.mxu0 %v3847_v63  ;;  %v2025_v63 = vld [vmem:[%s8482_s5 + $0x18] sm:$0xff]  ;;  %v2048_v12 = vld [vmem:[%s8482_s5 + $0xd0] sm:$0xff]  ;;  %vm8855_vm15 = vmmov %vm8854_vm6 }
 0x19a   : > { %3850 = vmatpush1.bf16.msra.mxu0 %v3849_v59  ;;  %v3783_v56 = vpack.c.bf16 %v2025_v63, %v2023_v19  ;;  %v3885_v59 = vpack.c.bf16 %v2124_v23, %v2122_v39  ;;  %v2036_v39 = vld [vmem:[%s8482_s5 + $0x70] sm:$0xff]  ;;  %v2145_v23 = vld [vmem:[%s8482_s5 + $0x3d8] sm:$0xff]  ;;  %v2142_v63 = vld [vmem:[%s8482_s5 + $0x3c0] sm:$0xff] }
 0x19b   : > { %3852 = vmatprep.subr.bf16.mxu0 %v3851_v43  ;;  %v2126_v43 = vld [vmem:[%s8482_s5 + $0x340] sm:$0xff]  ;;  %vm8858_vm11 = vmmov %vm8857_vm2 }
 0x19c   : > { %3784 = vmatprep.subr.bf16.mxu1 %v3783_v56  ;;  %v3889_v53 = vpack.c.bf16 %v2128_v25, %v2126_v43  ;;  %v3905_v43 = vpack.c.bf16 %v2144_v34, %v2142_v63  ;;  %v2059_v34 = vld [vmem:[%s8482_s5 + $0x128] sm:$0xff]  ;;  %vm8859_vm0 = vmmov %vm8856_vm14 }
 0x19d   : > { %3786 = vmatpush1.bf16.msra.mxu1 %v3785_v47  ;;  %v2039_v47 = vld [vmem:[%s8482_s5 + $0x88] sm:$0xff]  ;;  %vm8860_vm9 = vmmov %vm8859_vm0 }
 0x19e   : > { %3854 = vmatpush1.bf16.msra.mxu0 %v3853_v60  ;;  %v3887_v60 = vpack.c.bf16 %v2129_v57, %v2127_v54  ;;  %v3797_v57 = vpack.c.bf16 %v2036_v39, %v2034_v21  ;;  %v2057_v39 = vld [vmem:[%s8482_s5 + $0x118] sm:$0xff]  ;;  %vm8861_vm1 = vmmov %vm8857_vm2 }
 0x19f   : > { %3856 = vmatprep.subr.bf16.mxu0 %v3855_v30  ;;  %v2029_v30 = vld [vmem:[%s8482_s5 + $0x38] sm:$0xff]  ;;  %vm8862_vm10 = vmmov %vm8854_vm6 }
 0x1a0   : > { %vm8863_vm7 = vmmov %vm8854_vm6 }
 0x1a1   : > { %vm8864_vm13 = vmmov %vm8854_vm6 }
 0x1a2   : > { %3858 = vmatpush1.bf16.msra.mxu0 %v3857_v29  ;;  %v2133_v29 = vld [vmem:[%s8482_s5 + $0x378] sm:$0xff]  ;;  %vm8865_vm8 = vmmov %vm8859_vm0 }
 0x1a3   : > { %3860 = vmatprep.subr.bf16.mxu0 %v3859_v44  ;;  %v3787_v44 = vpack.c.bf16 %v2029_v30, %v2027_v28  ;;  %v2041_v28 = vld [vmem:[%s8482_s5 + $0x98] sm:$0xff]  ;;  %v2038_v30 = vld [vmem:[%s8482_s5 + $0x80] sm:$0xff]  ;;  %vm8866_vm4 = vmmov %vm8861_vm1 }
 0x1a5   : > { %3788 = vmatprep.subr.bf16.mxu1 %v3787_v44  ;;  %v2146_v44 = vld [vmem:[%s8482_s5 + $0x3e0] sm:$0xff] }
 0x1a6   : > { %3862 = vmatpush1.bf16.msra.mxu0 %v3861_v33  ;;  %3790 = vmatpush1.bf16.msra.mxu1 %v3789_v18 }
 0x1a7   : > { %3864 = vmatprep.subr.bf16.mxu0 %v3863_v49  ;;  %v3891_v49 = vpack.c.bf16 %v2133_v29, %v2131_v24  ;;  %v3801_v24 = vpack.c.bf16 %v2040_v62, %v2038_v30  ;;  %v2149_v29 = vld [vmem:[%s8482_s5 + $0x3f8] sm:$0xff]  ;;  %v2062_v30 = vld [vmem:[%s8482_s5 + $0x140] sm:$0xff] }
 0x1a8   : > { %v3907_v18 = vpack.c.bf16 %v2149_v29, %v2147_v1  ;;  %v2064_v29 = vld [vmem:[%s8482_s5 + $0x150] sm:$0xff] }
 0x1aa   : > { %3866 = vmatpush1.bf16.msra.mxu0 %v3865_v42  ;;  %v2135_v42 = vld [vmem:[%s8482_s5 + $0x388] sm:$0xff] }
 0x1ab   : > { %3868 = vmatprep.subr.bf16.mxu0 %v3867_v17  ;;  %v2137_v17 = vld [vmem:[%s8482_s5 + $0x398] sm:$0xff] }
 0x1ac   : > { %v3895_v2 = vpack.c.bf16 %v2137_v17, %v2135_v42  ;;  %v2044_v42 = vld [vmem:[%s8482_s5 + $0xb0] sm:$0xff]  ;;  %v2151_v17 = vld [vmem:[%s8482_s5 + $0x408] sm:$0xff] }
 0x1ae   : > { %3870 = vmatpush1.bf16.msra.mxu0 %v3869_v35  ;;  %v2134_v35 = vld [vmem:[%s8482_s5 + $0x380] sm:$0xff] }
 0x1af   : > { %3872 = vmatprep.subr.bf16.mxu0 %v3871_v52  ;;  %v2136_v52 = vld [vmem:[%s8482_s5 + $0x390] sm:$0xff] }
 0x1b0   : > { %v3897_v11 = vpack.c.bf16 %v2136_v52, %v2134_v35  ;;  %v2153_v35 = vld [vmem:[%s8482_s5 + $0x418] sm:$0xff] }
 0x1b2   : > { %3874 = vmatpush1.bf16.msra.mxu0 %v3873_v46  ;;  %v3791_v46 = vpack.c.bf16 %v2033_v20, %v2031_v13  ;;  %v2047_v13 = vld [vmem:[%s8482_s5 + $0xc8] sm:$0xff]  ;;  %v2049_v20 = vld [vmem:[%s8482_s5 + $0xd8] sm:$0xff] }
 0x1b3   : > { %3876 = vmatprep.subr.bf16.mxu0 %v3875_v9  ;;  %v2032_v9 = vld [vmem:[%s8482_s5 + $0x50] sm:$0xff] }
 0x1b4   : > { %v3793_v10 = vpack.c.bf16 %v2032_v9, %v2030_v38  ;;  %3792 = vmatprep.subr.bf16.mxu1 %v3791_v46  ;;  %v2046_v38 = vld [vmem:[%s8482_s5 + $0xc0] sm:$0xff]  ;;  %v3807_v9 = vpack.c.bf16 %v2049_v20, %v2047_v13  ;;  %v2077_v13 = vld [vmem:[%s8482_s5 + $0x1b8] sm:$0xff] }
 0x1b5   : > { %v3809_v3 = vpack.c.bf16 %v2048_v12, %v2046_v38  ;;  %v2076_v12 = vld [vmem:[%s8482_s5 + $0x1b0] sm:$0xff] }
 0x1b6   : > { %3878 = vmatpush1.bf16.msra.mxu0 %v3877_v41  ;;  %v2138_v41 = vld [vmem:[%s8482_s5 + $0x3a0] sm:$0xff]  ;;  %3794 = vmatpush1.bf16.msra.mxu1 %v3793_v10 }
 0x1b7   : > { %3880 = vmatprep.subr.bf16.mxu0 %v3879_v37  ;;  %v2140_v37 = vld [vmem:[%s8482_s5 + $0x3b0] sm:$0xff] }
 0x1b8   : > { %v3901_v61 = vpack.c.bf16 %v2140_v37, %v2138_v41  ;;  %v2053_v41 = vld [vmem:[%s8482_s5 + $0xf8] sm:$0xff]  ;;  %v2050_v37 = vld [vmem:[%s8482_s5 + $0xe0] sm:$0xff] }
 0x1ba   : > { %3882 = vmatpush1.bf16.msra.mxu0 %v3881_v7  ;;  %v3795_v7 = vpack.c.bf16 %v2037_v32, %v2035_v26 }
 0x1bb   : > { %3884 = vmatprep.subr.bf16.mxu0 %v3883_v27  ;;  %v2143_v27 = vld [vmem:[%s8482_s5 + $0x3c8] sm:$0xff] }
 0x1bc   : > { %v3903_v19 = vpack.c.bf16 %v2145_v23, %v2143_v27  ;;  %3796 = vmatprep.subr.bf16.mxu1 %v3795_v7  ;;  %v2054_v23 = vld [vmem:[%s8482_s5 + $0x100] sm:$0xff] }
 0x1bd   : > { %3798 = vmatpush1.bf16.msra.mxu1 %v3797_v57 }
 0x1be   : > { %3886 = vmatpush1.bf16.msra.mxu0 %v3885_v59 }
 0x1bf   : > { %3888 = vmatprep.subr.bf16.mxu0 %v3887_v60  ;;  %v3799_v60 = vpack.c.bf16 %v2041_v28, %v2039_v47  ;;  %v2060_v47 = vld [vmem:[%s8482_s5 + $0x130] sm:$0xff] }
 0x1c1   : > { %3800 = vmatprep.subr.bf16.mxu1 %v3799_v60  ;;  %v2065_v60 = vld [vmem:[%s8482_s5 + $0x158] sm:$0xff] }
 0x1c2   : > { %3890 = vmatpush1.bf16.msra.mxu0 %v3889_v53  ;;  %v2148_v53 = vld [vmem:[%s8482_s5 + $0x3f0] sm:$0xff]  ;;  %3802 = vmatpush1.bf16.msra.mxu1 %v3801_v24 }
 0x1c3   : > { %3892 = vmatprep.subr.bf16.mxu0 %v3891_v49  ;;  %v2043_v49 = vld [vmem:[%s8482_s5 + $0xa8] sm:$0xff]  ;;  %v3909_v58 = vpack.c.bf16 %v2148_v53, %v2146_v44  ;;  %v3825_v44 = vpack.c.bf16 %v2064_v29, %v2062_v30 }
 0x1c4   : > { %v2067_v53 = vld [vmem:[%s8482_s5 + $0x168] sm:$0xff] }
 0x1c6   : > { %3894 = vmatpush1.bf16.msra.mxu0 %v3893_v45 }
 0x1c7   : > { %3896 = vmatprep.subr.bf16.mxu0 %v3895_v2 }
 0x1ca   : > { %3898 = vmatpush1.bf16.msra.mxu0 %v3897_v11  ;;  %v3911_v11 = vpack.c.bf16 %v2153_v35, %v2151_v17  ;;  %v2070_v35 = vld [vmem:[%s8482_s5 + $0x180] sm:$0xff] }
 0x1cb   : > { %3900 = vmatprep.subr.bf16.mxu0 %v3899_v55  ;;  %v2051_v55 = vld [vmem:[%s8482_s5 + $0xe8] sm:$0xff] }
 0x1ce   : > { %3902 = vmatpush1.bf16.msra.mxu0 %v3901_v61  ;;  %v3811_v61 = vpack.c.bf16 %v2053_v41, %v2051_v55  ;;  %v2079_v41 = vld [vmem:[%s8482_s5 + $0x1c8] sm:$0xff] }
 0x1cf   : > { %3904 = vmatprep.subr.bf16.mxu0 %v3903_v19 }
 0x1d2   : > { %3906 = vmatpush1.bf16.msra.mxu0 %v3905_v43  ;;  %v2058_v43 = vld [vmem:[%s8482_s5 + $0x120] sm:$0xff] }
 0x1d3   : > { %3908 = vmatprep.subr.bf16.mxu0 %v3907_v18  ;;  %v3821_v28 = vpack.c.bf16 %v2060_v47, %v2058_v43 }
 0x1d6   : > { %3910 = vmatpush1.bf16.msra.mxu0 %v3909_v58 }
 0x1d7   : > { %3912 = vmatprep.subr.bf16.mxu0 %v3911_v11  ;;  %v2072_v11 = vld [vmem:[%s8482_s5 + $0x190] sm:$0xff] }
 0x1eb   : > { %v6606_v14 = vpop.f32.mrb[0].mxu0 }
 0x1ec   : > { %v6608_v5 = vpop.f32.mrb[1].mxu0  ;;  %v6929_v46 = vadd.f32 %v6606_v14, %v6776_v16 }
 0x1ed   : > { %v7029_v18 = vadd.f32 %v6608_v5, %v6776_v16  ;;  %v2068_v5 = vld [vmem:[%s8482_s5 + $0x170] sm:$0xff] }
 0x1ef   : > { %v6610_v0 = vpop.f32.mrb[2].mxu0 }
 0x1f0   : > { %v6612_v40 = vpop.f32.mrb[3].mxu0  ;;  %v6940_v10 = vadd.f32 %v6610_v0, %v6789_v8  ;;  %v2052_v0 = vld [vmem:[%s8482_s5 + $0xf0] sm:$0xff] }
 0x1f1   : > { %v3813_v32 = vpack.c.bf16 %v2052_v0, %v2050_v37  ;;  %v7084_v55 = vadd.f32 %v6612_v40, %v6789_v8  ;;  %v2081_v37 = vld [vmem:[%s8482_s5 + $0x1d8] sm:$0xff]  ;;  %v2078_v0 = vld [vmem:[%s8482_s5 + $0x1c0] sm:$0xff] }
 0x240   : > { %v1607_v51 = vpop.f32.mrb[4].mxu0 }
 0x241   : > { %v1609_v15 = vpop.f32.mrb[5].mxu0  ;;  %v6779_v50 = vadd.f32 %v1607_v51, %v6776_v16 }
 0x242   : > { %v6858_v56 = vadd.f32 %v1609_v15, %v6776_v16 }
 0x244   : > { %v6781_v33 = vpop.f32.mrb[6].mxu0 }
 0x245   : > { %v1615_v31 = vpop.f32.mrb[7].mxu0  ;;  %v6959_v26 = vadd.f32 %v6781_v33, %v6789_v8  ;;  %v2055_v33 = vld [vmem:[%s8482_s5 + $0x108] sm:$0xff] }
 0x246   : > { %v6798_v22 = vadd.f32 %v1615_v31, %v6789_v8  ;;  %v2042_v31 = vld [vmem:[%s8482_s5 + $0xa0] sm:$0xff]  ;;  %v3815_v27 = vpack.c.bf16 %v2057_v39, %v2055_v33  ;;  %v4602_v33 = vpack.i.bf16 %v6929_v46, %v7029_v18  ;;  %v4612_v39 = vpack.i.bf16 %v7084_v55, %v6929_v46 }
 0x247   : > { %v3805_v2 = vpack.c.bf16 %v2044_v42, %v2042_v31 }
 0x248   : > { %v4532_v4 = vpack.i.bf16 %v6798_v22, %v6779_v50 }
 0x24a   : > { %4533 = vrot.lane.b32.xlu0 %v4532_v4, %s8653_s8  ;;  %v3803_v4 = vpack.c.bf16 %v2045_v36, %v2043_v49  ;;  %v2069_v49 = vld [vmem:[%s8482_s5 + $0x178] sm:$0xff]  ;;  %v2066_v36 = vld [vmem:[%s8482_s5 + $0x160] sm:$0xff] }
 0x24b   : > { %v3827_v31 = vpack.c.bf16 %v2069_v49, %v2067_v53  ;;  %v3829_v42 = vpack.c.bf16 %v2068_v5, %v2066_v36 }
 0x24c   : > { %3804 = vmatprep.subr.bf16.mxu1 %v3803_v4  ;;  %v2073_v4 = vld [vmem:[%s8482_s5 + $0x198] sm:$0xff] }
 0x24d   : > { %3806 = vmatpush1.bf16.msra.mxu1 %v3805_v2 }
 0x24e   : > { %3808 = vmatprep.subr.bf16.mxu1 %v3807_v9  ;;  %v2074_v9 = vld [vmem:[%s8482_s5 + $0x1a0] sm:$0xff] }
 0x251   : > { %3810 = vmatpush1.bf16.msra.mxu1 %v3809_v3  ;;  %v3837_v3 = vpack.c.bf16 %v2076_v12, %v2074_v9 }
 0x252   : > { %3812 = vmatprep.subr.bf16.mxu1 %v3811_v61  ;;  %v3839_v61 = vpack.c.bf16 %v2081_v37, %v2079_v41  ;;  %v2154_v41 = vld [vmem:[%s8482_s5 + $0x420] sm:$0xff]  ;;  %v2156_v37 = vld [vmem:[%s8482_s5 + $0x430] sm:$0xff] }
 0x255   : > { %3814 = vmatpush1.bf16.msra.mxu1 %v3813_v32  ;;  %v2080_v32 = vld [vmem:[%s8482_s5 + $0x1d0] sm:$0xff] }
 0x256   : > { %3816 = vmatprep.subr.bf16.mxu1 %v3815_v27  ;;  %v3841_v40 = vpack.c.bf16 %v2080_v32, %v2078_v0  ;;  %v2161_v0 = vld [vmem:[%s8482_s5 + $0x458] sm:$0xff] }
 0x262   : > { %v1684_v54 = vpop.f32.mrb[8].mxu0 }
 0x263   : > { %v6861_v48 = vadd.f32 %v1684_v54, %v6776_v16  ;;  %v1686_v59 = vpop.f32.mrb[9].mxu0  ;;  %v2056_v54 = vld [vmem:[%s8482_s5 + $0x110] sm:$0xff] }
 0x264   : > { %v6943_v14 = vadd.f32 %v1686_v59, %v6776_v16  ;;  %v3817_v57 = vpack.c.bf16 %v2056_v54, %v2054_v23  ;;  %v2061_v59 = vld [vmem:[%s8482_s5 + $0x138] sm:$0xff]  ;;  %v2082_v23 = vld [vmem:[%s8482_s5 + $0x1e0] sm:$0xff]  ;;  %v2084_v54 = vld [vmem:[%s8482_s5 + $0x1f0] sm:$0xff] }
 0x265   : > { %v4537_v25 = vpack.i.bf16 %v6861_v48, %v6858_v56 }
 0x266   : > { %v1690_v51 = vpop.f32.mrb[10].mxu0  ;;  %v4552_v7 = vpack.i.bf16 %v6943_v14, %v6959_v26  ;;  %3818 = vmatpush1.bf16.msra.mxu1 %v3817_v57  ;;  %v3845_v57 = vpack.c.bf16 %v2084_v54, %v2082_v23  ;;  %v2163_v23 = vld [vmem:[%s8482_s5 + $0x468] sm:$0xff]  ;;  %v2165_v54 = vld [vmem:[%s8482_s5 + $0x478] sm:$0xff] }
 0x267   : > { %v6880_v15 = vpop.f32.mrb[11].mxu0  ;;  %4538 = vrot.lane.b32.xlu1 %v4537_v25, %s8653_s8  ;;  %4543 = vrot.lane.b32.xlu0 %v4537_v25, %s4994_s16  ;;  %v6966_v21 = vadd.f32 %v1690_v51, %v6789_v8  ;;  %v2063_v51 = vld [vmem:[%s8482_s5 + $0x148] sm:$0xff] }
 0x268   : > { %v6987_v19 = vadd.f32 %v6880_v15, %v6789_v8  ;;  %v3823_v24 = vpack.c.bf16 %v2065_v60, %v2063_v51 }
 0x269   : > { %v4567_v63 = vpack.i.bf16 %v6966_v21, %v6798_v22  ;;  %v4562_v1 = vpack.i.bf16 %v6959_v26, %v6966_v21 }
 0x26a   : > { %v6908_v45 = vpop.f32.mrb[12].mxu0  ;;  %v4577_v15 = vpack.i.bf16 %v6987_v19, %v6943_v14 }
 0x26b   : > { %v6913_v52 = vpop.f32.mrb[13].mxu0  ;;  %4548 = vrot.lane.b32.xlu1 %v4537_v25, %s4997_s19  ;;  %1924 = vrot.lane.b32.xlu0 %v6779_v50, %s4997_s19  ;;  %v3819_v25 = vpack.c.bf16 %v2061_v59, %v2059_v34  ;;  %v7016_v62 = vadd.f32 %v6908_v45, %v6789_v8  ;;  %v2071_v45 = vld [vmem:[%s8482_s5 + $0x188] sm:$0xff] }
 0x26c   : > { %v7049_v17 = vadd.f32 %v6913_v52, %v6776_v16  ;;  %v3831_v2 = vpack.c.bf16 %v2073_v4, %v2071_v45  ;;  %v3833_v16 = vpack.c.bf16 %v2072_v11, %v2070_v35  ;;  %v2075_v52 = vld [vmem:[%s8482_s5 + $0x1a8] sm:$0xff]  ;;  %v2150_v11 = vld [vmem:[%s8482_s5 + $0x400] sm:$0xff] }
 0x26d   : > { %3820 = vmatprep.subr.bf16.mxu1 %v3819_v25  ;;  %v4582_v58 = vpack.i.bf16 %v7029_v18, %v7016_v62  ;;  %v3835_v38 = vpack.c.bf16 %v2077_v13, %v2075_v52  ;;  %v2083_v8 = vld [vmem:[%s8482_s5 + $0x1e8] sm:$0xff]  ;;  %v2157_v52 = vld [vmem:[%s8482_s5 + $0x438] sm:$0xff] }
 0x26e   : > { %3822 = vmatpush1.bf16.msra.mxu1 %v3821_v28  ;;  %v4597_v20 = vpack.i.bf16 %v6987_v19, %v7049_v17 }
 0x26f   : > { %1864 = vrot.lane.b32.xlu1 %v6779_v50, %s4994_s16  ;;  %1912 = vrot.lane.b32.xlu0 %v6929_v46, %s5015_s17 }
 0x270   : > { %3824 = vmatprep.subr.bf16.mxu1 %v3823_v24 }
 0x272   : > { %3826 = vmatpush1.bf16.msra.mxu1 %v3825_v44 }
 0x273   : > { %1972 = vrot.lane.b32.xlu1 %v6929_v46, %s5018_s21  ;;  %1974 = vrot.lane.b32.xlu0 %v6940_v10, %s5018_s21 }
 0x274   : > { %3828 = vmatprep.subr.bf16.mxu1 %v3827_v31 }
 0x276   : > { %3830 = vmatpush1.bf16.msra.mxu1 %v3829_v42 }
 0x277   : > { %1914 = vrot.lane.b32.xlu1 %v6940_v10, %s5015_s17  ;;  %4553 = vrot.lane.b32.xlu0 %v4552_v7, %s4994_s16 }
 0x278   : > { %3832 = vmatprep.subr.bf16.mxu1 %v3831_v2 }
 0x27a   : > { %3834 = vmatpush1.bf16.msra.mxu1 %v3833_v16  ;;  %v2152_v16 = vld [vmem:[%s8482_s5 + $0x410] sm:$0xff] }
 0x27b   : > { %4558 = vrot.lane.b32.xlu1 %v4552_v7, %s4997_s19  ;;  %4568 = vrot.lane.b32.xlu0 %v4567_v63, %s4994_s16  ;;  %v2085_v7 = vld [vmem:[%s8482_s5 + $0x1f8] sm:$0xff]  ;;  %v3913_v9 = vpack.c.bf16 %v2152_v16, %v2150_v11 }
 0x27c   : > { %3836 = vmatprep.subr.bf16.mxu1 %v3835_v38  ;;  %v3843_v27 = vpack.c.bf16 %v2085_v7, %v2083_v8  ;;  %v3917_v8 = vpack.c.bf16 %v2156_v37, %v2154_v41 }
 0x27e   : > { %3838 = vmatpush1.bf16.msra.mxu1 %v3837_v3 }
 0x27f   : > { %4563 = vrot.lane.b32.xlu1 %v4562_v1, %s8653_s8  ;;  %4578 = vrot.lane.b32.xlu0 %v4577_v15, %s8653_s8 }
 0x280   : > { %3840 = vmatprep.subr.bf16.mxu1 %v3839_v61  ;;  %v2159_v61 = vld [vmem:[%s8482_s5 + $0x448] sm:$0xff] }
 0x281   : > { %v3919_v7 = vpack.c.bf16 %v2161_v0, %v2159_v61 }
 0x282   : > { %3842 = vmatpush1.bf16.msra.mxu1 %v3841_v40 }
 0x283   : > { %4573 = vrot.lane.b32.xlu1 %v4567_v63, %s4997_s19  ;;  %4583 = vrot.lane.b32.xlu0 %v4582_v58, %s4994_s16  ;;  %v4617_v63 = vpack.i.bf16 %v6940_v10, %v7084_v55 }
 0x284   : > { %3844 = vmatprep.subr.bf16.mxu1 %v3843_v27 }
 0x286   : > { %3846 = vmatpush1.bf16.msra.mxu1 %v3845_v57 }
 0x287   : > { %4588 = vrot.lane.b32.xlu1 %v4582_v58, %s4997_s19  ;;  %1810 = vrot.lane.b32.xlu0 %v7016_v62, %s8653_s8 }
 0x28b   : > { %4598 = vrot.lane.b32.xlu1 %v4597_v20, %s4997_s19  ;;  %4593 = vrot.lane.b32.xlu0 %v4597_v20, %s4994_s16 }
 0x28f   : > { %1796 = vrot.lane.b32.xlu1 %v7049_v17, %s8653_s8  ;;  %1838 = vrot.lane.b32.xlu0 %v6929_v46, %s8604_s29 }
 0x293   : > { %4603 = vrot.lane.b32.xlu1 %v4602_v33, %s8653_s8  ;;  %4613 = vrot.lane.b32.xlu0 %v4612_v39, %s4997_s19  ;;  %v2158_v33 = vld [vmem:[%s8482_s5 + $0x440] sm:$0xff] }
 0x297   : > { %4608 = vrot.lane.b32.xlu1 %v4612_v39, %s4994_s16  ;;  %1840 = vrot.lane.b32.xlu0 %v6940_v10, %s8604_s29  ;;  %v2160_v39 = vld [vmem:[%s8482_s5 + $0x450] sm:$0xff] }
 0x29b   : > { %4618 = vrot.lane.b32.xlu1 %v4617_v63, %s8653_s8  ;;  %1934 = vrot.lane.b32.xlu0 %v6940_v10, %s4997_s19  ;;  %s8898_s19 = smov 14  }
 0x29f   : > { %1874 = vrot.lane.b32.xlu1 %v6940_v10, %s4994_s16 }
 0x2bc   : > { %v7130_v34 = vpop.permute.xlu0 %4533 }
 0x2bd   : > { %v4535_v1 = vunpack.i.l.bf16 %v7130_v34  ;;  %v4536_v16 = vunpack.i.h.bf16 %v7130_v34 }
 0x2d9   : > { %v7132_v59 = vpop.permute.xlu1 %4538  ;;  %v4544_v43 = vpop.permute.xlu0 %4543 }
 0x2da   : > { %v4541_v25 = vunpack.i.h.bf16 %v7132_v59  ;;  %v4540_v47 = vunpack.i.l.bf16 %v7132_v59  ;;  %v4546_v28 = vunpack.i.h.bf16 %v4544_v43  ;;  %v4545_v51 = vunpack.i.l.bf16 %v4544_v43 }
 0x2dc   : > { %v1815_v29 = vsel %vm8854_vm6, %v4540_v47, %v4541_v25  ;;  %v1814_v44 = vsel %vm8855_vm15, %v4535_v1, %v4540_v47  ;;  %v1891_v53 = vsel %vm8856_vm14, %v4545_v51, %v4546_v28  ;;  %v3921_v47 = vpack.c.bf16 %v2160_v39, %v2158_v33  ;;  %v2170_v39 = vld [vmem:[%s8482_s5 + $0x4a0] sm:$0xff]  ;;  %vm8867_vm6 = vmmov %vm8859_vm0 }
 0x2dd   : > { %v4549_v60 = vpop.permute.xlu1 %4548  ;;  %v7136_v30 = vpop.permute.xlu0 %1924  ;;  %v1849_v31 = vmax.f32 %v6858_v56, %v1815_v29  ;;  %v1848_v4 = vmax.f32 %v6779_v50, %v1814_v44  ;;  %v2155_v56 = vld [vmem:[%s8482_s5 + $0x428] sm:$0xff]  ;;  %vm8868_vm15 = vmmov %vm8861_vm1 }
 0x2de   : > { %v4551_v15 = vunpack.i.h.bf16 %v4549_v60  ;;  %v4550_v24 = vunpack.i.l.bf16 %v4549_v60  ;;  %v3915_v3 = vpack.c.bf16 %v2157_v52, %v2155_v56  ;;  %v2162_v60 = vld [vmem:[%s8482_s5 + $0x460] sm:$0xff]  ;;  %vm8869_vm14 = vmmov %vm8861_vm1 }
 0x2e0   : > { %v1951_v49 = vsel %vm8857_vm2, %v4550_v24, %v4551_v15  ;;  %v1950_v42 = vsel %vm8858_vm11, %v7136_v30, %v4550_v24  ;;  %v2164_v24 = vld [vmem:[%s8482_s5 + $0x470] sm:$0xff]  ;;  %vm8870_vm2 = vmmov %vm8859_vm0  ;;  %vm8871_vm11 = vcmask 949248  }
 0x2e1   : > { %v7147_v36 = vpop.permute.xlu1 %1864  ;;  %v7149_v58 = vpop.permute.xlu0 %1912  ;;  %v1983_v5 = vmax.f32 %v1891_v53, %v1951_v49  ;;  %v2167_v53 = vld [vmem:[%s8482_s5 + $0x488] sm:$0xff]  ;;  %v2169_v49 = vld [vmem:[%s8482_s5 + $0x498] sm:$0xff] }
 0x2e2   : > { %v1890_v45 = vsel %vm8859_vm0, %v7147_v36, %v4545_v51  ;;  %v3923_v51 = vpack.c.bf16 %v2165_v54, %v2163_v23  ;;  %v3927_v11 = vpack.c.bf16 %v2169_v49, %v2167_v53  ;;  %v2172_v23 = vld [vmem:[%s8482_s5 + $0x4b0] sm:$0xff]  ;;  %vm8872_vm0 = vcmask 941056  }
 0x2e3   : > { %v1982_v2 = vmax.f32 %v1890_v45, %v1950_v42  ;;  %v1997_v35 = vmax.f32 %v1849_v31, %v1983_v5 }
 0x2e5   : > { %v1996_v13 = vmax.f32 %v1848_v4, %v1982_v2  ;;  %v7169_v50 = vpop.permute.xlu1 %1972  ;;  %v7171_v20 = vpop.permute.xlu0 %1974  ;;  %v2011_v38 = vmax.f32 %v1997_v35, 0.0  ;;  %v3925_v4 = vpack.c.bf16 %v2164_v24, %v2162_v60  ;;  %v2166_v2 = vld [vmem:[%s8482_s5 + $0x480] sm:$0xff]  ;;  %v2168_v35 = vld [vmem:[%s8482_s5 + $0x490] sm:$0xff]  ;;  %v2175_v24 = vld [vmem:[%s8482_s5 + $0x4c8] sm:$0xff] }
 0x2e6   : > { %v3929_v59 = vpack.c.bf16 %v2168_v35, %v2166_v2  ;;  %v3933_v35 = vpack.c.bf16 %v2172_v23, %v2170_v39  ;;  %v2178_v23 = vld [vmem:[%s8482_s5 + $0x4e0] sm:$0xff] }
 0x2e7   : > { %v2010_v12 = vmax.f32 %v1996_v13, 0.0  ;;  %2365 = vmatprep.mubr.f32.mxu0 %v2011_v38  ;;  %v2171_v38 = vld [vmem:[%s8482_s5 + $0x4a8] sm:$0xff] }
 0x2e9   : > { %2366 = vmatmul.mubr.f32.vlgmr.msra.gmra.mrb[14].mxu0 %v2010_v12  ;;  %v7185_v32 = vpop.permute.xlu1 %1914  ;;  %v7187_v40 = vpop.permute.xlu0 %4553 }
 0x2ea   : > { %3914 = vmatpush1.bf16.msra.mxu0 %v3913_v9  ;;  %v4556_v27 = vunpack.i.h.bf16 %v7187_v40  ;;  %v2173_v9 = vld [vmem:[%s8482_s5 + $0x4b8] sm:$0xff]  ;;  %v4555_v12 = vunpack.i.l.bf16 %v7187_v40 }
 0x2eb   : > { %3916 = vmatprep.subr.bf16.mxu0 %v3915_v3 }
 0x2ec   : > { %v1892_v29 = vsel %vm8860_vm9, %v4546_v28, %v4556_v27  ;;  %vm8873_vm9 = vmmov %vm8863_vm7 }
 0x2ed   : > { %v7202_v57 = vpop.permute.xlu1 %4558  ;;  %v7204_v63 = vpop.permute.xlu0 %4568 }
 0x2ee   : > { %3918 = vmatpush1.bf16.msra.mxu0 %v3917_v8  ;;  %v4561_v43 = vunpack.i.h.bf16 %v7202_v57  ;;  %v4571_v56 = vunpack.i.h.bf16 %v7204_v63  ;;  %v4570_v52 = vunpack.i.l.bf16 %v7204_v63  ;;  %v4560_v3 = vunpack.i.l.bf16 %v7202_v57  ;;  %v2214_v63 = vld [vmem:[%s8482_s5 + $0x600] sm:$0xff] }
 0x2ef   : > { %3920 = vmatprep.subr.bf16.mxu0 %v3919_v7 }
 0x2f0   : > { %v1952_v44 = vsel %vm8861_vm1, %v4551_v15, %v4561_v43  ;;  %v1897_v54 = vsel %vm8865_vm8, %v4570_v52, %v4571_v56  ;;  %vm8877_vm8 = vmmov %vm8870_vm2 }
 0x2f1   : > { %v1984_v31 = vmax.f32 %v1892_v29, %v1952_v44  ;;  %v7225_v5 = vpop.permute.xlu1 %4563  ;;  %v7227_v42 = vpop.permute.xlu0 %4578  ;;  %v2177_v29 = vld [vmem:[%s8482_s5 + $0x4d8] sm:$0xff] }
 0x2f2   : > { %3922 = vmatpush1.bf16.msra.mxu0 %v3921_v47  ;;  %v4566_v28 = vunpack.i.h.bf16 %v7225_v5  ;;  %v4565_v45 = vunpack.i.l.bf16 %v7225_v5  ;;  %v4580_v15 = vunpack.i.l.bf16 %v7227_v42 }
 0x2f3   : > { %3924 = vmatprep.subr.bf16.mxu0 %v3923_v51  ;;  %v1896_v51 = vsel %vm8867_vm6, %v4555_v12, %v4570_v52  ;;  %v3935_v52 = vpack.c.bf16 %v2177_v29, %v2175_v24  ;;  %v2185_v24 = vld [vmem:[%s8482_s5 + $0x518] sm:$0xff]  ;;  %vm8879_vm6 = vmmov %vm8870_vm2 }
 0x2f4   : > { %v1816_v13 = vsel %vm8862_vm10, %v4541_v25, %v4580_v15  ;;  %v1821_v8 = vsel %vm8863_vm7, %v4536_v16, %v4565_v45  ;;  %v1820_v7 = vsel %vm8864_vm13, %v4566_v28, %v4536_v16  ;;  %vm8874_vm10 = vmmov %vm8863_vm7 }
 0x2f5   : > { %v1850_v41 = vmax.f32 %v6861_v48, %v1816_v13  ;;  %v7255_v37 = vpop.permute.xlu1 %4573  ;;  %v7257_v61 = vpop.permute.xlu0 %4583  ;;  %v3931_v48 = vpack.c.bf16 %v2173_v9, %v2171_v38  ;;  %v1856_v49 = vmax.f32 %v6798_v22, %v1821_v8  ;;  %v2174_v13 = vld [vmem:[%s8482_s5 + $0x4c0] sm:$0xff]  ;;  %v2176_v38 = vld [vmem:[%s8482_s5 + $0x4d0] sm:$0xff]  ;;  %v2179_v22 = vld [vmem:[%s8482_s5 + $0x4e8] sm:$0xff] }
 0x2f6   : > { %3926 = vmatpush1.bf16.msra.mxu0 %v3925_v4  ;;  %v4576_v25 = vunpack.i.h.bf16 %v7255_v37  ;;  %v4575_v0 = vunpack.i.l.bf16 %v7255_v37  ;;  %v1855_v4 = vmax.f32 %v6959_v26, %v1820_v7  ;;  %v2181_v26 = vld [vmem:[%s8482_s5 + $0x4f8] sm:$0xff]  ;;  %vm8875_vm7 = vmmov %vm8870_vm2 }
 0x2f7   : > { %v7267_v33 = vmax.f32 %v1850_v41, %v1984_v31  ;;  %3928 = vmatprep.subr.bf16.mxu0 %v3927_v11  ;;  %v3939_v39 = vpack.c.bf16 %v2181_v26, %v2179_v22  ;;  %vm8876_vm13 = vmmov %vm8873_vm9 }
 0x2f8   : > { %v1957_v47 = vsel %vm8866_vm4, %v4575_v0, %v4576_v25  ;;  %v1956_v60 = vsel %vm8868_vm15, %v4560_v3, %v4575_v0  ;;  %vm8878_vm4 = vmmov %vm8861_vm1 }
 0x2f9   : > { %v7293_v44 = vpop.permute.xlu1 %4588  ;;  %v7295_v53 = vpop.permute.xlu0 %1810  ;;  %v1990_v31 = vmax.f32 %v1897_v54, %v1957_v47  ;;  %v1989_v2 = vmax.f32 %v1896_v51, %v1956_v60  ;;  %v2180_v54 = vld [vmem:[%s8482_s5 + $0x4f0] sm:$0xff]  ;;  %v2183_v60 = vld [vmem:[%s8482_s5 + $0x508] sm:$0xff]  ;;  %vm8880_vm15 = vmmov %vm8873_vm9 }
 0x2fa   : > { %3930 = vmatpush1.bf16.msra.mxu0 %v3929_v59 }
 0x2fb   : > { %3932 = vmatprep.subr.bf16.mxu0 %v3931_v48  ;;  %v2004_v11 = vmax.f32 %v1856_v49, %v1990_v31  ;;  %v2003_v16 = vmax.f32 %v1855_v4, %v1989_v2  ;;  %v3937_v48 = vpack.c.bf16 %v2176_v38, %v2174_v13  ;;  %v3941_v2 = vpack.c.bf16 %v2180_v54, %v2178_v23  ;;  %v2184_v13 = vld [vmem:[%s8482_s5 + $0x510] sm:$0xff]  ;;  %v2186_v54 = vld [vmem:[%s8482_s5 + $0x520] sm:$0xff] }
 0x2fc   : > { %v4586_v38 = vunpack.i.h.bf16 %v7257_v61 }
 0x2fd   : > { %v7311_v9 = vpop.permute.xlu1 %4598  ;;  %v7313_v41 = vpop.permute.xlu0 %4593  ;;  %v2018_v59 = vmax.f32 %v2004_v11, 0.0  ;;  %v2017_v0 = vmax.f32 %v2003_v16, 0.0  ;;  %v3943_v16 = vpack.c.bf16 %v2185_v24, %v2183_v60  ;;  %v2191_v24 = vld [vmem:[%s8482_s5 + $0x548] sm:$0xff] }
 0x2fe   : > { %3934 = vmatpush1.bf16.msra.mxu0 %v3933_v35  ;;  %v4600_v8 = vunpack.i.l.bf16 %v7311_v9  ;;  %v4595_v7 = vunpack.i.l.bf16 %v7313_v41 }
 0x2ff   : > { %2371 = vmatprep.mubr.f32.mxu0 %v2018_v59  ;;  %3936 = vmatprep.subr.bf16.mxu0 %v3935_v52  ;;  %v2182_v52 = vld [vmem:[%s8482_s5 + $0x500] sm:$0xff] }
 0x300   : > { %v1953_v47 = vsel %vm8869_vm14, %v4561_v43, %v4600_v8  ;;  %v1893_v51 = vsel %vm8870_vm2, %v4556_v27, %v4595_v7  ;;  %2372 = vmatmul.mubr.f32.gmra.mrb[16].mxu0 %v2017_v0  ;;  %v4591_v27 = vunpack.i.h.bf16 %v7293_v44  ;;  %v3945_v7 = vpack.c.bf16 %v2184_v13, %v2182_v52  ;;  %v2190_v13 = vld [vmem:[%s8482_s5 + $0x540] sm:$0xff]  ;;  %vm8881_vm14 = vmmov %vm8861_vm1 }
 0x301   : > { %v7335_v29 = vpop.permute.xlu1 %1796  ;;  %v7337_v49 = vpop.permute.xlu0 %1838  ;;  %v1918_v43 = vsel %vm8871_vm11, %v1893_v51, %v7149_v58  ;;  %v1978_v31 = vsel %vm8872_vm0, %v1953_v47, %v7169_v50  ;;  %v2188_v47 = vld [vmem:[%s8482_s5 + $0x530] sm:$0xff]  ;;  %vm8882_vm2 = vmmov %vm8873_vm9 }
 0x302   : > { %3938 = vmatpush1.bf16.msra.mxu0 %v3937_v48  ;;  %v1817_v4 = vsel %vm8873_vm9, %v4580_v15, %v7335_v29  ;;  %v1985_v35 = vmax.f32 %v1918_v43, %v1978_v31  ;;  %v2187_v15 = vld [vmem:[%s8482_s5 + $0x528] sm:$0xff]  ;;  %v1949_v48 = vsel %vm8861_vm1, %v4591_v27, %v7136_v30  ;;  %v1889_v30 = vsel %vm8875_vm7, %v4586_v38, %v7147_v36  ;;  %v2193_v43 = vld [vmem:[%s8482_s5 + $0x558] sm:$0xff]  ;;  %vm8883_vm11 = vmmov %vm8861_vm1 }
 0x303   : > { %v1851_v11 = vmax.f32 %v6943_v14, %v1817_v4  ;;  %3940 = vmatprep.subr.bf16.mxu0 %v3939_v39  ;;  %v2189_v14 = vld [vmem:[%s8482_s5 + $0x538] sm:$0xff]  ;;  %v1981_v34 = vmax.f32 %v1889_v30, %v1949_v48  ;;  %v3951_v52 = vpack.c.bf16 %v2193_v43, %v2191_v24  ;;  %v2199_v30 = vld [vmem:[%s8482_s5 + $0x588] sm:$0xff]  ;;  %vm8884_vm0 = vmmov %vm8879_vm6  ;;  %vm8888_vm7 = vcmask 941056  }
 0x304   : > { %v3947_v23 = vpack.c.bf16 %v2189_v14, %v2187_v15  ;;  %v2192_v15 = vld [vmem:[%s8482_s5 + $0x550] sm:$0xff]  ;;  %v2201_v24 = vld [vmem:[%s8482_s5 + $0x598] sm:$0xff]  ;;  %vm8885_vm9 = vmmov %vm8861_vm1 }
 0x305   : > { %v4604_v22 = vpop.permute.xlu1 %4603  ;;  %v7362_v26 = vpop.permute.xlu0 %4613  ;;  %v1999_v59 = vmax.f32 %v1851_v11, %v1985_v35  ;;  %v3949_v11 = vpack.c.bf16 %v2188_v47, %v2186_v54  ;;  %v3953_v54 = vpack.c.bf16 %v2192_v15, %v2190_v13  ;;  %v2205_v15 = vld [vmem:[%s8482_s5 + $0x5b8] sm:$0xff]  ;;  %vm8886_vm1 = vmmov %vm8884_vm0 }
 0x306   : > { %3942 = vmatpush1.bf16.msra.mxu0 %v3941_v2  ;;  %v4606_v0 = vunpack.i.h.bf16 %v4604_v22  ;;  %v4605_v8 = vunpack.i.l.bf16 %v4604_v22  ;;  %v4615_v51 = vunpack.i.l.bf16 %v7362_v26 }
 0x307   : > { %3944 = vmatprep.subr.bf16.mxu0 %v3943_v16  ;;  %v2013_v39 = vmax.f32 %v1999_v59, 0.0  ;;  %v2195_v59 = vld [vmem:[%s8482_s5 + $0x568] sm:$0xff] }
 0x308   : > { %v1813_v60 = vsel %vm8874_vm10, %v4605_v8, %v4535_v1  ;;  %v1812_v36 = vsel %vm8876_vm13, %v4606_v0, %v4605_v8  ;;  %v1948_v22 = vsel %vm8878_vm4, %v4615_v51, %v4591_v27  ;;  %v2197_v0 = vld [vmem:[%s8482_s5 + $0x578] sm:$0xff]  ;;  %v2194_v27 = vld [vmem:[%s8482_s5 + $0x560] sm:$0xff]  ;;  %vm8887_vm10 = vcmask 949248   ;;  %vm8889_vm13 = vmmov %vm8882_vm2 }
 0x309   : > { %v4609_v31 = vpop.permute.xlu1 %4608  ;;  %v7384_v4 = vpop.permute.xlu0 %1840  ;;  %2442 = vmatprep.mubr.f32.mxu0 %v2013_v39  ;;  %v1847_v2 = vmax.f32 %v7029_v18, %v1813_v60  ;;  %v4616_v18 = vunpack.i.h.bf16 %v7362_v26  ;;  %v1846_v48 = vmax.f32 %v6929_v46, %v1812_v36  ;;  %v3955_v60 = vpack.c.bf16 %v2197_v0, %v2195_v59  ;;  %v2196_v46 = vld [vmem:[%s8482_s5 + $0x570] sm:$0xff] }
 0x30a   : > { %3946 = vmatpush1.bf16.msra.mxu0 %v3945_v7  ;;  %v4611_v1 = vunpack.i.h.bf16 %v4609_v31  ;;  %v4610_v35 = vunpack.i.l.bf16 %v4609_v31 }
 0x30b   : > { %3948 = vmatprep.subr.bf16.mxu0 %v3947_v23  ;;  %v1995_v16 = vmax.f32 %v1847_v2, %v1981_v34 }
 0x30c   : > { %v1888_v14 = vsel %vm8877_vm8, %v4610_v35, %v4586_v38  ;;  %v1895_v38 = vsel %vm8879_vm6, %v4611_v1, %v4555_v12  ;;  %v1955_v12 = vsel %vm8881_vm14, %v4616_v18, %v4560_v3  ;;  %v2198_v3 = vld [vmem:[%s8482_s5 + $0x580] sm:$0xff]  ;;  %vm8890_vm8 = vmmov %vm8884_vm0 }
 0x30d   : > { %v4619_v8 = vpop.permute.xlu1 %4618  ;;  %v2009_v7 = vmax.f32 %v1995_v16, 0.0  ;;  %v1980_v39 = vmax.f32 %v1888_v14, %v1948_v22  ;;  %v1935_v47 = vpop.permute.xlu0 %1934  ;;  %v1988_v35 = vmax.f32 %v1895_v38, %v1955_v12  ;;  %v3957_v16 = vpack.c.bf16 %v2196_v46, %v2194_v27  ;;  %vm8891_vm6 = vmmov %vm8882_vm2 }
 0x30e   : > { %3950 = vmatpush1.bf16.msra.mxu0 %v3949_v11  ;;  %v4621_v23 = vunpack.i.h.bf16 %v4619_v8  ;;  %v4620_v26 = vunpack.i.l.bf16 %v4619_v8  ;;  %v1954_v11 = vsel %vm8883_vm11, %v1935_v47, %v4616_v18  ;;  %v4596_v22 = vunpack.i.h.bf16 %v7313_v41  ;;  %v2207_v41 = vld [vmem:[%s8482_s5 + $0x5c8] sm:$0xff] }
 0x30f   : > { %2288 = vmatprep.mubr.f32.mxu1 %v2009_v7  ;;  %3952 = vmatprep.subr.bf16.mxu0 %v3951_v52  ;;  %v1994_v51 = vmax.f32 %v1846_v48, %v1980_v39  ;;  %v3959_v52 = vpack.c.bf16 %v2201_v24, %v2199_v30  ;;  %v2202_v7 = vld [vmem:[%s8482_s5 + $0x5a0] sm:$0xff]  ;;  %v2204_v48 = vld [vmem:[%s8482_s5 + $0x5b0] sm:$0xff]  ;;  %v4585_v39 = vunpack.i.l.bf16 %v7257_v61  ;;  %v2211_v47 = vld [vmem:[%s8482_s5 + $0x5e8] sm:$0xff] }
 0x310   : > { %v1819_v40 = vsel %vm8880_vm15, %v4620_v26, %v4566_v28  ;;  %v1818_v43 = vsel %vm8882_vm2, %v4621_v23, %v4620_v26  ;;  %v2209_v23 = vld [vmem:[%s8482_s5 + $0x5d8] sm:$0xff]  ;;  %v3965_v27 = vpack.c.bf16 %v2204_v48, %v2202_v7  ;;  %v2206_v61 = vld [vmem:[%s8482_s5 + $0x5c0] sm:$0xff]  ;;  %vm8892_vm15 = vcmask 121856  }
 0x311   : > { %v1875_v31 = vpop.permute.xlu1 %1874  ;;  %v2008_v2 = vmax.f32 %v1994_v51, 0.0  ;;  %v1854_v34 = vmax.f32 %v7084_v55, %v1819_v40  ;;  %v1853_v28 = vmax.f32 %v6940_v10, %v1818_v43  ;;  %v2200_v55 = vld [vmem:[%s8482_s5 + $0x590] sm:$0xff]  ;;  %v4601_v10 = vunpack.i.h.bf16 %v7311_v9  ;;  %v2213_v51 = vld [vmem:[%s8482_s5 + $0x5f8] sm:$0xff]  ;;  %v2210_v43 = vld [vmem:[%s8482_s5 + $0x5e0] sm:$0xff] }
 0x312   : > { %3954 = vmatpush1.bf16.msra.mxu0 %v3953_v54  ;;  %v1894_v36 = vsel %vm8884_vm0, %v1875_v31, %v4611_v1  ;;  %v2203_v1 = vld [vmem:[%s8482_s5 + $0x5a8] sm:$0xff]  ;;  %v3961_v59 = vpack.c.bf16 %v2200_v55, %v2198_v3  ;;  %v4590_v9 = vunpack.i.l.bf16 %v7293_v44  ;;  %v1899_v54 = vsel %vm8886_vm1, %v4596_v22, %v4585_v39  ;;  %v2208_v44 = vld [vmem:[%s8482_s5 + $0x5d0] sm:$0xff]  ;;  %vm8893_vm14 = vmmov %vm8892_vm15 }
 0x313   : > { %v1987_v13 = vmax.f32 %v1894_v36, %v1954_v11  ;;  %2289 = vmatmul.mubr.f32.vlgmr.msra.gmra.mrb[0].mxu1 %v2008_v2  ;;  %3956 = vmatprep.subr.bf16.mxu0 %v3955_v60  ;;  %v2002_v57 = vmax.f32 %v1854_v34, %v1988_v35  ;;  %v3963_v8 = vpack.c.bf16 %v2205_v15, %v2203_v1  ;;  %v4581_v60 = vunpack.i.h.bf16 %v7227_v42  ;;  %v2212_v42 = vld [vmem:[%s8482_s5 + $0x5f0] sm:$0xff]  ;;  %v2215_v31 = vld [vmem:[%s8482_s5 + $0x608] sm:$0xff]  ;;  %v2217_v2 = vld [vmem:[%s8482_s5 + $0x618] sm:$0xff] }
 0x314   : > { %v1959_v26 = vsel %vm8885_vm9, %v4601_v10, %v4590_v9  ;;  %v3967_v38 = vpack.c.bf16 %v2209_v23, %v2207_v41  ;;  %v1919_v46 = vsel %vm8887_vm10, %v1899_v54, %v7185_v32  ;;  %v3969_v24 = vpack.c.bf16 %v2208_v44, %v2206_v61  ;;  %vm8914_vm10 = vmmov %vm8891_vm6 }
 0x315   : > { %v2016_v18 = vmax.f32 %v2002_v57, 0.0  ;;  %v2001_v14 = vmax.f32 %v1853_v28, %v1987_v13  ;;  %v1979_v30 = vsel %vm8888_vm7, %v1959_v26, %v7171_v20  ;;  %v1823_v40 = vsel %vm8889_vm13, %v4581_v60, %v7295_v53  ;;  %vm8915_vm7 = vmmov %vm8893_vm14 }
 0x316   : > { %3958 = vmatpush1.bf16.msra.mxu0 %v3957_v16  ;;  %v3971_v12 = vpack.c.bf16 %v2213_v51, %v2211_v47  ;;  %v1992_v34 = vmax.f32 %v1919_v46, %v1979_v30  ;;  %v1898_v35 = vsel %vm8890_vm8, %v4571_v56, %v4596_v22  ;;  %v1958_v11 = vsel %vm8878_vm4, %v4576_v25, %v4601_v10  ;;  %v2216_v56 = vld [vmem:[%s8482_s5 + $0x610] sm:$0xff] }
 0x317   : > { %2294 = vmatprep.mubr.f32.mxu1 %v2016_v18  ;;  %3960 = vmatprep.subr.bf16.mxu0 %v3959_v52  ;;  %v2015_v0 = vmax.f32 %v2001_v14, 0.0  ;;  %v1858_v36 = vmax.f32 %v6987_v19, %v1823_v40  ;;  %v3973_v16 = vpack.c.bf16 %v2212_v42, %v2210_v43  ;;  %v1822_v52 = vsel %vm8891_vm6, %v4565_v45, %v4581_v60  ;;  %v3283_v40 = vld [vmem:[%s8481_s4 + $0x8] sm:$0xff] }
 0x318   : > { %v3975_v13 = vpack.c.bf16 %v2217_v2, %v2215_v31  ;;  %v1991_v37 = vmax.f32 %v1898_v35, %v1958_v11  ;;  %v1844_v19 = vsel %vm8892_vm15, %v7335_v29, %v7337_v49  ;;  %v1857_v5 = vmax.f32 %v6966_v21, %v1822_v52  ;;  %v3284_v31 = vld [vmem:[%s8481_s4 + $0x10] sm:$0xf] }
 0x319   : > { %2295 = vmatmul.mubr.f32.gmra.mrb[2].mxu1 %v2015_v0  ;;  %v2006_v25 = vmax.f32 %v1858_v36, %v1992_v34  ;;  %v3977_v45 = vpack.c.bf16 %v2216_v56, %v2214_v63  ;;  %v2012_v57 = vmax.f32 %v7267_v33, 0.0  ;;  %v1852_v28 = vmax.f32 %v7049_v17, %v1844_v19 }
 0x31a   : > { %3962 = vmatpush1.bf16.msra.mxu0 %v3961_v59  ;;  %v2005_v3 = vmax.f32 %v1857_v5, %v1991_v37  ;;  %v1845_v55 = vsel %vm8893_vm14, %v7295_v53, %v7384_v4  ;;  %v1986_v15 = vmax.f32 %v7149_v58, %v7169_v50  ;;  %v1993_v17 = vmax.f32 %v7185_v32, %v7171_v20 }
 0x31b   : > { %3964 = vmatprep.subr.bf16.mxu0 %v3963_v8  ;;  %v2020_v1 = vmax.f32 %v2006_v25, 0.0  ;;  %v1859_v29 = vmax.f32 %v7016_v62, %v1845_v55  ;;  %vm8894_vm2 = vcmask 130048   ;;  %vm8614_vm0 = vcmask 998400  }
 0x31c   : > { %v2000_v21 = vmax.f32 %v1852_v28, %v1986_v15  ;;  %v2019_v49 = vmax.f32 %v2005_v3, 0.0  ;;  %vm8895_vm11 = vmmov %vm8894_vm2  ;;  %vm2722_vm9 = vcmask 850944   ;;  %vm8912_vm1 = vcmask 719872  }
 0x31d   : > { %v2007_v18 = vmax.f32 %v1859_v29, %v1993_v17  ;;  %vm8916_vm13 = vcmask 916480   ;;  %vm8917_vm8 = vcmask 1022976   ;;  %vm2744_vm4 = vcmask 842752  }
 0x31e   : > { %3966 = vmatpush1.bf16.msra.mxu0 %v3965_v27  ;;  %v2014_v33 = vmax.f32 %v2000_v21, 0.0  ;;  %vm8623_vm6 = vcmask 834560   ;;  %vm2788_vm15 = vcmask 826368   ;;  %vm8624_vm14 = vcmask 752640  }
 0x31f   : > { %3968 = vmatprep.subr.bf16.mxu0 %v3967_v38  ;;  %v2021_v58 = vmax.f32 %v2007_v18, 0.0 }
 0x322   : > { %3970 = vmatpush1.bf16.msra.mxu0 %v3969_v24  ;;  %v3277_v24 = vld [vmem:[%s8480_s3 + $0x8] sm:$0xff] }
 0x323   : > { %3972 = vmatprep.subr.bf16.mxu0 %v3971_v12  ;;  %v3282_v12 = vld [vmem:[%s8481_s4] sm:$0xff]  ;;  %3718 = vmatprep.mubr.msk.f32.mxu1 %vm8614_vm0, %v3277_v24  ;;  %vm8922_vm0 = vcmask 105472  }
 0x326   : > { %3974 = vmatpush1.bf16.msra.mxu0 %v3973_v16 }
 0x327   : > { %3976 = vmatprep.subr.bf16.mxu0 %v3975_v13 }
 0x329   : > { %2443 = vmatmul.mubr.f32.vlgmr.msra.gmra.mrb[14].mxu0 %v2012_v57 }
 0x32a   : > { %2448 = vmatprep.mubr.f32.mxu0 %v2020_v1  ;;  %3978 = vmatpush1.bf16.msra.mxu0 %v3977_v45 }
 0x32d   : > { %2449 = vmatmul.mubr.f32.gmra.mrb[16].mxu0 %v2019_v49 }
 0x32e   : > { %2519 = vmatprep.mubr.f32.mxu0 %v8809_v6 }
 0x331   : > { %3714 = vmatmul.mubr.msk.f32.vlgmr.msra.gmra.mrb[14].mxu0 %vm8894_vm2, %v2014_v33  ;;  %vm8617_vm2 = vcmask 744448  }
 0x332   : > { %2525 = vmatprep.mubr.f32.mxu0 %v8809_v6 }
 0x335   : > { %3715 = vmatmul.mubr.msk.f32.gmra.mrb[16].mxu0 %vm8895_vm11, %v2021_v58  ;;  %vm8620_vm11 = vcmask 736256  }
 0x3e6   : > { %v2290_v50 = vpop.f32.mrb[0].mxu1 }
 0x3e7   : > { %v2292_v53 = vpop.f32.mrb[1].mxu1 }
 0x3ec   : > { %v2296_v4 = vpop.f32.mrb[2].mxu1 }
 0x3ed   : > { %v2298_v62 = vpop.f32.mrb[3].mxu1 }
 0x404   : > { %v2521_v14 = vpop.f32.mrb[14].mxu0 }
 0x405   : > { %v7525_v10 = vadd.f32 %v2521_v14, %v2290_v50  ;;  %v2523_v20 = vpop.f32.mrb[15].mxu0 }
 0x406   : > { %v7527_v32 = vadd.f32 %v2523_v20, %v2292_v53 }
 0x407   : > { %v8618_v18 = vrot.slane %v7525_v10, 6 }
 0x408   : > { %v2527_v22 = vpop.f32.mrb[16].mxu0  ;;  %v4632_v59 = vpack.i.bf16 %v7525_v10, %v7527_v32  ;;  %v7539_v7 = vpack.i.bf16 %v7527_v32, %v7525_v10 }
 0x409   : > { %v7531_v0 = vadd.f32 %v2527_v22, %v2296_v4  ;;  %v2529_v6 = vpop.f32.mrb[17].mxu0 }
 0x40a   : > { %v7533_v8 = vadd.f32 %v2529_v6, %v2298_v62  ;;  %4633 = vrot.lane.b32.xlu0 %v4632_v59, %s4992_s14  ;;  %4623 = vrot.lane.b32.xlu1 %v4632_v59, %s8653_s8 }
 0x40b   : > { %v7569_v48 = vpack.i.bf16 %v7531_v0, %v7525_v10  ;;  %v4757_v39 = vpack.i.bf16 %v7525_v10, %v7531_v0  ;;  %v3102_v58 = vrot.slane %v7531_v0, 6 }
 0x40c   : > { %v4807_v9 = vpack.i.bf16 %v7533_v8, %v7527_v32  ;;  %v4802_v41 = vpack.i.bf16 %v7531_v0, %v7533_v8  ;;  %v4847_v23 = vpack.i.bf16 %v7527_v32, %v7533_v8  ;;  %v4862_v26 = vpack.i.bf16 %v7533_v8, %v7531_v0 }
 0x40e   : > { %4643 = vrot.lane.b32.xlu0 %v7539_v7, %s8896_s20  ;;  %4628 = vrot.lane.b32.xlu1 %v4632_v59, %s4989_s11 }
 0x412   : > { %4648 = vrot.lane.b32.xlu0 %v7539_v7, %s5032_s12  ;;  %4638 = vrot.lane.b32.xlu1 %v4632_v59, %s5018_s21 }
 0x416   : > { %4653 = vrot.lane.b32.xlu0 %v7539_v7, %s5033_s26  ;;  %4658 = vrot.lane.b32.xlu1 %v7539_v7, %s8609_s9  ;;  %s5047_s9 = smov 117  }
 0x41a   : > { %4663 = vrot.lane.b32.xlu0 %v7539_v7, %s8611_s18  ;;  %4673 = vrot.lane.b32.xlu1 %v7539_v7, %s8610_s28  ;;  %s5048_s28 = smov 118   ;;  %s5049_s18 = smov 108  }
 0x41e   : > { %4668 = vrot.lane.b32.xlu0 %v7539_v7, %s4994_s16  ;;  %4683 = vrot.lane.b32.xlu1 %v7539_v7, %s8603_s30  ;;  %s8901_s30 = smov 114  }
 0x422   : > { %4678 = vrot.lane.b32.xlu0 %v7539_v7, %s8608_s22  ;;  %4693 = vrot.lane.b32.xlu1 %v7539_v7, %s8897_s23  ;;  %s5046_s22 = smov 1  }
 0x426   : > { %4688 = vrot.lane.b32.xlu0 %v7539_v7, %s8601_s27  ;;  %4698 = vrot.lane.b32.xlu1 %v7539_v7, %s8602_s13  ;;  %s8606_s27 = smov 4   ;;  %s8900_s13 = smov 13  }
 0x42a   : > { %4708 = vrot.lane.b32.xlu1 %v7569_v48, %s8898_s19  ;;  %4703 = vrot.lane.b32.xlu0 %v7569_v48, %s8604_s29  ;;  %s8902_s19 = smov 113   ;;  %s5043_s29 = smov 120  }
 0x42e   : > { %4723 = vrot.lane.b32.xlu1 %v7569_v48, %s8899_s15  ;;  %4713 = vrot.lane.b32.xlu0 %v7569_v48, %s8654_s10  ;;  %s8612_s15 = smov 3  }
 0x432   : > { %4728 = vrot.lane.b32.xlu1 %v7569_v48, %s8606_s27  ;;  %4718 = vrot.lane.b32.xlu0 %v7569_v48, %s8900_s13  ;;  %s5044_s27 = smov 2   ;;  %s5045_s13 = smov 119  }
 0x436   : > { %4748 = vrot.lane.b32.xlu1 %v7569_v48, %s8901_s30  ;;  %4733 = vrot.lane.b32.xlu0 %v7569_v48, %s5015_s17 }
 0x43a   : > { %4758 = vrot.lane.b32.xlu1 %v4757_v39, %s8902_s19  ;;  %4738 = vrot.lane.b32.xlu0 %v7569_v48, %s8612_s15  ;;  %s5050_s15 = smov 107  }
 0x43e   : > { %4763 = vrot.lane.b32.xlu1 %v7569_v48, %s5043_s29  ;;  %4743 = vrot.lane.b32.xlu0 %v7569_v48, %s5044_s27  ;;  %s5051_s29 = smov 106   ;;  %s5052_s27 = smov 105  }
 0x442   : > { %4768 = vrot.lane.b32.xlu1 %v7569_v48, %s5045_s13  ;;  %4753 = vrot.lane.b32.xlu0 %v4757_v39, %s5046_s22  ;;  %s8907_s22 = smov 90  }
 0x446   : > { %4778 = vrot.lane.b32.xlu1 %v7569_v48, %s5047_s9  ;;  %4773 = vrot.lane.b32.xlu0 %v7569_v48, %s5048_s28  ;;  %s5053_s9 = smov 79   ;;  %s8906_s28 = smov 102  }
 0x44a   : > { %4783 = vrot.lane.b32.xlu1 %v7569_v48, %s5049_s18  ;;  %4793 = vrot.lane.b32.xlu0 %v4757_v39, %s5050_s15  ;;  %s8905_s18 = smov 92   ;;  %s5059_s15 = smov 76  }
 0x44e   : > { %4788 = vrot.lane.b32.xlu1 %v7569_v48, %s5051_s29  ;;  %4798 = vrot.lane.b32.xlu0 %v7569_v48, %s5052_s27  ;;  %s9069_s27 = smov 15  }
 0x452   : > { %4808 = vrot.lane.b32.xlu0 %v4807_v9, %s8654_s10  ;;  %4803 = vrot.lane.b32.xlu1 %v4802_v41, %s8653_s8  ;;  %s8903_s10 = smov 96  }
 0x456   : > { %4813 = vrot.lane.b32.xlu0 %v7539_v7, %s5053_s9  ;;  %4818 = vrot.lane.b32.xlu1 %v4802_v41, %s4989_s11  ;;  %s5054_s11 = smov 95  }
 0x45a   : > { %4823 = vrot.lane.b32.xlu0 %v4807_v9, %s5015_s17  ;;  %4828 = vrot.lane.b32.xlu1 %v4802_v41, %s4992_s14  ;;  %s8904_s14 = smov 101  }
 0x45e   : > { %4833 = vrot.lane.b32.xlu0 %v4802_v41, %s5018_s21  ;;  %4843 = vrot.lane.b32.xlu1 %v4807_v9, %s8901_s30  ;;  %s5055_s30 = smov 78  }
 0x462   : > { %4838 = vrot.lane.b32.xlu0 %v7569_v48, %s8903_s10  ;;  %4848 = vrot.lane.b32.xlu1 %v4847_v23, %s8902_s19  ;;  %s8910_s19 = smov 80  }
 0x466   : > { %4863 = vrot.lane.b32.xlu0 %v4862_v26, %s8896_s20  ;;  %4853 = vrot.lane.b32.xlu1 %v4862_v26, %s5032_s12  ;;  %s8908_s20 = smov 91   ;;  %s8909_s12 = smov 89  }
 0x46a   : > { %4868 = vrot.lane.b32.xlu0 %v4862_v26, %s5033_s26  ;;  %4858 = vrot.lane.b32.xlu1 %v7569_v48, %s5054_s11  ;;  %s5057_s26 = smov 77  }
 0x46e   : > { %4883 = vrot.lane.b32.xlu0 %v4862_v26, %s4994_s16  ;;  %4873 = vrot.lane.b32.xlu1 %v4862_v26, %s8904_s14  ;;  %s5056_s16 = smov 94  }
 0x472   : > { %4888 = vrot.lane.b32.xlu0 %v4862_v26, %s8905_s18  ;;  %4878 = vrot.lane.b32.xlu1 %v4862_v26, %s8906_s28 }
 0x476   : > { %4893 = vrot.lane.b32.xlu0 %v7539_v7, %s5055_s30  ;;  %4903 = vrot.lane.b32.xlu1 %v4862_v26, %s8907_s22 }
 0x47a   : > { %4898 = vrot.lane.b32.xlu0 %v4862_v26, %s8908_s20  ;;  %4908 = vrot.lane.b32.xlu1 %v4862_v26, %s8909_s12  ;;  %s9070_s20 = smov 4   ;;  %s9071_s12 = smov 3  }
 0x47c   : > { %v7632_v54 = vpop.permute.xlu0 %4633  ;;  %v4624_v27 = vpop.permute.xlu1 %4623 }
 0x47d   : > { %v4626_v36 = vunpack.i.h.bf16 %v4624_v27  ;;  %v4625_v16 = vunpack.i.l.bf16 %v4624_v27  ;;  %v4636_v50 = vunpack.i.h.bf16 %v7632_v54  ;;  %v4635_v53 = vunpack.i.l.bf16 %v7632_v54 }
 0x47e   : > { %4918 = vrot.lane.b32.xlu0 %v4862_v26, %s8897_s23  ;;  %4913 = vrot.lane.b32.xlu1 %v7569_v48, %s5056_s16  ;;  %s5058_s23 = smov 93  }
 0x47f   : > { %v7689_v19 = vsel %vm8914_vm10, %v4626_v36, %v4625_v16  ;;  %vm8615_vm10 = vcmask 654336  }
 0x480   : > { %v7636_v38 = vpop.permute.xlu0 %4643  ;;  %v7638_v61 = vpop.permute.xlu1 %4628  ;;  %v8621_v45 = vrot.slane %v7689_v19, 6 }
 0x481   : > { %v4646_v28 = vunpack.i.h.bf16 %v7636_v38  ;;  %v4645_v3 = vunpack.i.l.bf16 %v7636_v38  ;;  %v4631_v1 = vunpack.i.h.bf16 %v7638_v61  ;;  %v4630_v15 = vunpack.i.l.bf16 %v7638_v61 }
 0x482   : > { %4923 = vrot.lane.b32.xlu0 %v7539_v7, %s5057_s26  ;;  %4928 = vrot.lane.b32.xlu1 %v4862_v26, %s5053_s9  ;;  %v3168_v17 = vsel %vm1177_vm3, %v7531_v0, %v8621_v45 }
 0x483   : > { %v7722_v4 = vsel %vm8916_vm13, %v4645_v3, %v4646_v28  ;;  %v7728_v14 = vsel %vm8917_vm8, %v4631_v1, %v4630_v15  ;;  %v3981_v6 = vpack.c.bf16 %v3168_v17, %v7525_v10  ;;  %vm8919_vm13 = vcmask 941056  }
 0x484   : > { %v7642_v44 = vpop.permute.xlu0 %4648  ;;  %v7644_v47 = vpop.permute.xlu1 %4638  ;;  %vm2657_vm8 = vcmask 23552  }
 0x485   : > { %v7677_v52 = vunpack.i.l.bf16 %v7642_v44  ;;  %v4641_v20 = vunpack.i.h.bf16 %v7644_v47  ;;  %v4640_v22 = vunpack.i.l.bf16 %v7644_v47  ;;  %v4651_v39 = vunpack.i.h.bf16 %v7642_v44 }
 0x486   : > { %4933 = vrot.lane.b32.xlu0 %v4862_v26, %s8910_s19  ;;  %4938 = vrot.lane.b32.xlu1 %v4862_v26, %s5055_s30 }
 0x487   : > { %8911 = vst [vmem:[#allocation4_spill] sm:$0xff] %v7677_v52  ;;  %v7753_v9 = vsel %vm8919_vm13, %v4641_v20, %v4640_v22  ;;  %vm8921_vm13 = vcmask 818176  }
 0x488   : > { %v7647_v51 = vpop.permute.xlu0 %4653  ;;  %v7649_v60 = vpop.permute.xlu1 %4658 }
 0x489   : > { %v4656_v41 = vunpack.i.h.bf16 %v7647_v51  ;;  %v4655_v23 = vunpack.i.l.bf16 %v7647_v51  ;;  %v4661_v38 = vunpack.i.h.bf16 %v7649_v60  ;;  %v4660_v24 = vunpack.i.l.bf16 %v7649_v60 }
 0x48a   : > { %4948 = vrot.lane.b32.xlu0 %v7569_v48, %s5058_s23  ;;  %4943 = vrot.lane.b32.xlu1 %v4862_v26, %s5057_s26  ;;  %v7747_v48 = vsel %vm1177_vm3, %v8618_v18, %v3102_v58 }
 0x48b   : > { %v7786_v3 = vsel %vm2744_vm4, %v4655_v23, %v4656_v41 }
 0x48c   : > { %v7652_v46 = vpop.permute.xlu0 %4663  ;;  %v7654_v30 = vpop.permute.xlu1 %4673 }
 0x48d   : > { %v4665_v44 = vunpack.i.l.bf16 %v7652_v46 }
 0x48e   : > { %4958 = vrot.lane.b32.xlu0 %v4862_v26, %s5059_s15  ;;  %4953 = vrot.lane.b32.xlu1 %v7539_v7, %s5059_s15 }
 0x490   : > { %v7667_v43 = vpop.permute.xlu0 %4668  ;;  %v7669_v42 = vpop.permute.xlu1 %4683 }
 0x491   : > { %v4670_v51 = vunpack.i.l.bf16 %v7667_v43 }
 0x492   : > { %3292 = vperm.xlu0 %4530, %v3283_v40   ;;  %3287 = vperm.xlu1 %4531, %v3282_v12   ;;  %v4666_v40 = vunpack.i.h.bf16 %v7652_v46  ;;  %v4676_v12 = vunpack.i.h.bf16 %v7654_v30 }
 0x494   : > { %v7674_v2 = vpop.permute.xlu0 %4678  ;;  %v4694_v34 = vpop.permute.xlu1 %4693 }
 0x495   : > { %v4696_v35 = vunpack.i.h.bf16 %v4694_v34  ;;  %v4695_v11 = vunpack.i.l.bf16 %v4694_v34  ;;  %v4671_v34 = vunpack.i.h.bf16 %v7667_v43  ;;  %v4681_v36 = vunpack.i.h.bf16 %v7674_v2 }
 0x496   : > { %3297 = vperm.xlu1 %4531, %v3284_v31   ;;  %v7765_v31 = vunpack.i.l.bf16 %v7654_v30  ;;  %v4680_v60 = vunpack.i.l.bf16 %v7674_v2 }
 0x497   : > { %v2914_v13 = vsel %vm8912_vm1, %v4695_v11, %v4696_v35  ;;  %vm8616_vm1 = vcmask 728064   ;;  %v4686_v35 = vunpack.i.h.bf16 %v7669_v42  ;;  %v4685_v11 = vunpack.i.l.bf16 %v7669_v42 }
 0x498   : > { %v7682_v63 = vsel %vm2722_vm9, %v2914_v13, %v7677_v52  ;;  %v7684_v56 = vpop.permute.xlu0 %4688  ;;  %v7686_v37 = vpop.permute.xlu1 %4698  ;;  %8920 = vst [vmem:[#allocation5_spill] sm:$0xff] %v7765_v31  ;;  %v2723_v42 = vsel %vm2722_vm9, %v7677_v52, %v4651_v39  ;;  %v7796_v1 = vsel %vm8624_vm14, %v7765_v31, %v4676_v12  ;;  %vm8925_vm14 = vcmask 1045504  }
 0x499   : > { %8913 = vst [vmem:[#allocation7_spill] sm:$0xff] %v7682_v63  ;;  %v4691_v46 = vunpack.i.h.bf16 %v7684_v56  ;;  %v4701_v30 = vunpack.i.h.bf16 %v7686_v37  ;;  %v4700_v13 = vunpack.i.l.bf16 %v7686_v37  ;;  %v7792_v37 = vsel %vm2788_vm15, %v4665_v44, %v4666_v40 }
 0x49a   : > { %v7801_v58 = vsel %vm8617_vm2, %v4685_v11, %v4686_v35  ;;  %vm8630_vm2 = vcmask 883712  }
 0x49b   : > { %v7812_v39 = vsel %vm8615_vm10, %v4700_v13, %v4701_v30  ;;  %vm2799_vm10 = vcmask 957440  }
 0x49c   : > { %v7691_v25 = vpop.permute.xlu1 %4708  ;;  %v7693_v5 = vpop.permute.xlu0 %4703 }
 0x49d   : > { %v4705_v57 = vunpack.i.l.bf16 %v7693_v5 }
 0x49f   : > { %v7700_v55 = vsel %vm8915_vm7, %v4625_v16, %v4705_v57  ;;  %vm8918_vm7 = vcmask 1014784   ;;  %v4690_v16 = vunpack.i.l.bf16 %v7684_v56  ;;  %v7789_v56 = vsel %vm8623_vm6, %v4660_v24, %v4661_v38 }
 0x4a0   : > { %v8622_v21 = vrot.slane %v7700_v55, 6  ;;  %v7705_v29 = vpop.permute.xlu1 %4723  ;;  %v7707_v49 = vpop.permute.xlu0 %4713  ;;  %vm8646_vm6 = vcmask 859136  }
 0x4a2   : > { %v3169_v33 = vsel %vm1177_vm3, %v7533_v8, %v8622_v21 }
 0x4a3   : > { %v3979_v62 = vpack.c.bf16 %v3169_v33, %v7527_v32  ;;  %v7740_v32 = vsel %vm8918_vm7, %v4636_v50, %v4635_v53  ;;  %vm2733_vm7 = vcmask 982016   ;;  %v2810_v33 = vsel %vm8921_vm13, %v4670_v51, %v4671_v34 }
 0x4a4   : > { %v7732_v59 = vpop.permute.xlu1 %4728  ;;  %v7734_v0 = vpop.permute.xlu0 %4718  ;;  %v7804_v50 = vsel %vm8620_vm11, %v4680_v60, %v4681_v36  ;;  %vm2755_vm13 = vcmask 973824   ;;  %vm8648_vm11 = vcmask 867328  }
 0x4a5   : > { %3980 = vmatprep.subr.bf16.mxu1 %v3979_v62  ;;  %v4720_v17 = vunpack.i.l.bf16 %v7734_v0  ;;  %v4725_v62 = vunpack.i.l.bf16 %v7705_v29 }
 0x4a6   : > { %3982 = vmatpush1.bf16.msra.mxu1 %v3981_v6  ;;  %v7809_v6 = vsel %vm8616_vm1, %v4690_v16, %v4691_v46  ;;  %vm8923_vm1 = vcmask 97280  }
 0x4a7   : > { %v7828_v34 = vsel %vm8922_vm0, %v4630_v15, %v4720_v17  ;;  %v7839_v61 = vsel %vm8923_vm1, %v4635_v53, %v4725_v62  ;;  %vm8924_vm0 = vcmask 949248   ;;  %vm8629_vm1 = vcmask 965632  }
 0x4a8   : > { %v7757_v26 = vpop.permute.xlu1 %4748  ;;  %v4734_v27 = vpop.permute.xlu0 %4733 }
 0x4a9   : > { %v7814_v41 = vunpack.i.l.bf16 %v4734_v27  ;;  %v7823_v12 = vunpack.i.h.bf16 %v4734_v27 }
 0x4ab   : > { %v7846_v30 = vsel %vm8924_vm0, %v2810_v33, %v7814_v41  ;;  %v3150_v54 = vrot.slane %v7823_v12, 4  ;;  %v3147_v53 = vrot.slane %v7814_v41, 4  ;;  %vm8634_vm0 = vcmask 875520  }
 0x4ac   : > { %v7777_v57 = vpop.permute.xlu1 %4758  ;;  %v7779_v43 = vpop.permute.xlu0 %4738 }
 0x4ad   : > { %v4740_v51 = vunpack.i.l.bf16 %v7779_v43  ;;  %v3151_v2 = vsel %vm1193_vm12, %v3147_v53, %v3150_v54 }
 0x4af   : > { %v7860_v33 = vsel %vm2657_vm8, %v4640_v22, %v4740_v51 }
 0x4b0   : > { %v7816_v23 = vpop.permute.xlu1 %4763  ;;  %v7818_v38 = vpop.permute.xlu0 %4743 }
 0x4b1   : > { %v8619_v35 = vunpack.i.h.bf16 %v7816_v23  ;;  %v4765_v11 = vunpack.i.l.bf16 %v7816_v23 }
 0x4b3   : > { %v3114_v18 = vrot.slane %v8619_v35, 4  ;;  %v3111_v8 = vrot.slane %v4765_v11, 4  ;;  %v7867_v7 = vsel %vm2733_vm7, %v2723_v42, %v4765_v11 }
 0x4b4   : > { %v7848_v13 = vpop.permute.xlu1 %4768  ;;  %v7850_v17 = vpop.permute.xlu0 %4753 }
 0x4b5   : > { %v4770_v62 = vunpack.i.l.bf16 %v7848_v13  ;;  %v8625_v27 = vunpack.i.h.bf16 %v7848_v13  ;;  %v3115_v45 = vsel %vm1193_vm12, %v3111_v8, %v3114_v18  ;;  %v7911_v54 = vsel %vm1193_vm12, %v7747_v48, %v3111_v8 }
 0x4b7   : > { %v3123_v51 = vrot.slane %v4770_v62, 2  ;;  %v3126_v20 = vrot.slane %v8625_v27, 2  ;;  %v7889_v36 = vsel %vm2755_vm13, %v7786_v3, %v4770_v62 }
 0x4b8   : > { %v7873_v15 = vpop.permute.xlu1 %4778  ;;  %v7875_v35 = vpop.permute.xlu0 %4773 }
 0x4b9   : > { %v8626_v42 = vunpack.i.h.bf16 %v7873_v15  ;;  %v4780_v11 = vunpack.i.l.bf16 %v7873_v15  ;;  %v4775_v22 = vunpack.i.l.bf16 %v7875_v35  ;;  %v7901_v27 = vsel %vm8925_vm14, %v3115_v45, %v3123_v51 }
 0x4ba   : > { %v8628_v44 = vunpack.i.h.bf16 %v7875_v35  ;;  %v3127_v46 = vsel %vm8925_vm14, %v3123_v51, %v3126_v20  ;;  %vm2951_vm14 = vcmask 646144  }
 0x4bb   : > { %v3138_v21 = vrot.slane %v8626_v42, 6  ;;  %v3135_v16 = vrot.slane %v4780_v11, 6  ;;  %v7905_v3 = vsel %vm2799_vm10, %v7792_v37, %v4780_v11  ;;  %v7925_v48 = vsel %vm8629_vm1, %v7789_v56, %v4775_v22 }
 0x4bc   : > { %v7896_v47 = vpop.permute.xlu1 %4783  ;;  %v7898_v18 = vpop.permute.xlu0 %4793  ;;  %vm8933_vm1 = vcmask 1045504  }
 0x4bd   : > { %v8627_v62 = vunpack.i.h.bf16 %v7896_v47  ;;  %v4785_v42 = vunpack.i.l.bf16 %v7896_v47  ;;  %v8631_v40 = vunpack.i.h.bf16 %v7898_v18  ;;  %v3139_v45 = vsel %vm1177_vm3, %v3135_v16, %v3138_v21 }
 0x4be   : > { %v7938_v51 = vsel %vm1177_vm3, %v8628_v44, %v3135_v16  ;;  %v7944_v24 = vsel %vm1193_vm12, %v3139_v45, %v3147_v53 }
 0x4bf   : > { %v3162_v37 = vrot.slane %v8627_v62, 2  ;;  %v3159_v11 = vrot.slane %v4785_v42, 2  ;;  %v7929_v28 = vsel %vm8630_vm2, %v7796_v1, %v4785_v42  ;;  %8929 = vst [vmem:[#allocation10_spill] sm:$0xff] %v7938_v51  ;;  %8930 = vst [vmem:[#allocation11_spill] sm:$0xff] %v7944_v24  ;;  %v7946_v1 = vpack.c.bf16 %v4775_v22, %v3127_v46 }
 0x4c0   : > { %8926 = vst [vmem:[#allocation6_spill] sm:$0xff] %v7929_v28  ;;  %v7931_v21 = vpop.permute.xlu1 %4788  ;;  %v7933_v20 = vpop.permute.xlu0 %4798  ;;  %v7952_v42 = vsel %vm8634_vm0, %v7801_v58, %v8631_v40  ;;  %vm8935_vm2 = vmmov %vm8933_vm1  ;;  %vm8652_vm0 = vcmask 31744   ;;  %v8945_v24 = vunpack.i.h.bf16 %v7693_v5 }
 0x4c1   : > { %8927 = vst [vmem:[#allocation2_spill] sm:$0xff] %v7931_v21  ;;  %8928 = vst [vmem:[#allocation8_spill] sm:$0xff] %v7933_v20  ;;  %v8637_v62 = vunpack.i.h.bf16 %v7931_v21  ;;  %v4790_v8 = vunpack.i.l.bf16 %v7931_v21  ;;  %v4800_v44 = vunpack.i.l.bf16 %v7933_v20  ;;  %v7962_v46 = vsel %vm8933_vm1, %v3159_v11, %v3162_v37 }
 0x4c2   : > { %8931 = vst [vmem:[#allocation9_spill] sm:$0xff] %v7952_v42  ;;  %8934 = vst [vmem:[#allocation3_spill] sm:$0xff] %v7962_v46  ;;  %v7965_v53 = vsel %vm8935_vm2, %v3151_v2, %v3159_v11  ;;  %v8937_v45 = vunpack.i.h.bf16 %v7933_v20  ;;  %vm8939_vm2 = vcmask 1031168  }
 0x4c3   : > { %v7959_v56 = vsel %vm8648_vm11, %v7804_v50, %v4790_v8  ;;  %8936 = vst [vmem:[#allocation14_spill] sm:$0xff] %v7965_v53  ;;  %v3198_v58 = vrot.slane %v8637_v62, 6  ;;  %v3195_v22 = vrot.slane %v4790_v8, 6  ;;  %v7976_v2 = vsel %vm8646_vm6, %v7809_v6, %v4800_v44  ;;  %vm8942_vm1 = vmmov %vm8939_vm2 }
 0x4c4   : > { %8932 = vst [vmem:[#allocation13_spill] sm:$0xff] %v7959_v56  ;;  %v3210_v40 = vrot.slane %v8937_v45, 4  ;;  %v4809_v16 = vpop.permute.xlu0 %4808  ;;  %v4804_v31 = vpop.permute.xlu1 %4803  ;;  %v7978_v11 = vrot.slane %v4800_v44, 4  ;;  %v8938_v62 = vunpack.i.h.bf16 %v7707_v49  ;;  %v8940_v50 = vunpack.i.h.bf16 %v7691_v25 }
 0x4c5   : > { %v4811_v37 = vunpack.i.h.bf16 %v4809_v16  ;;  %v4810_v63 = vunpack.i.l.bf16 %v4809_v16  ;;  %v4806_v42 = vunpack.i.h.bf16 %v4804_v31  ;;  %v4805_v8 = vunpack.i.l.bf16 %v4804_v31 }
 0x4c6   : > { %v8941_v16 = vunpack.i.l.bf16 %v7707_v49  ;;  %v8943_v6 = vunpack.i.l.bf16 %v7691_v25  ;;  %vm8944_vm6 = vcmask 1039360   ;;  %vm2678_vm11 = vcmask 15360  }
 0x4c7   : > { %v2565_v20 = vsel %vm8939_vm2, %v8938_v62, %v4811_v37  ;;  %v2575_v60 = vsel %vm358_vm5, %v4811_v37, %v8940_v50  ;;  %v2545_v62 = vsel %vm8944_vm6, %v4806_v42, %v4805_v8  ;;  %vm8946_vm2 = vcmask 121856  }
 0x4c8   : > { %v2564_v56 = vsel %vm8942_vm1, %v8941_v16, %v4810_v63  ;;  %v2574_v44 = vsel %vm358_vm5, %v4810_v63, %v8943_v6  ;;  %v3042_v31 = vrot.slane %v2565_v20, 4  ;;  %v3044_v52 = vrot.slane %v2575_v60, 4  ;;  %v4814_v53 = vpop.permute.xlu0 %4813  ;;  %v4819_v46 = vpop.permute.xlu1 %4818 }
 0x4c9   : > { %v3040_v51 = vrot.slane %v2564_v56, 4  ;;  %v3041_v45 = vrot.slane %v2574_v44, 4  ;;  %v2555_v50 = vsel %vm8946_vm2, %v4805_v8, %v8945_v24  ;;  %v4816_v37 = vunpack.i.h.bf16 %v4814_v53 }
 0x4ca   : > { %v4815_v49 = vunpack.i.l.bf16 %v4814_v53  ;;  %v3030_v16 = vrot.slane %v2545_v62, 6  ;;  %v3032_v21 = vrot.slane %v2555_v50, 6  ;;  %v4821_v25 = vunpack.i.h.bf16 %v4819_v46 }
 0x4cb   : > { %v4820_v28 = vunpack.i.l.bf16 %v4819_v46  ;;  %v3045_v60 = vsel %vm1193_vm12, %v3041_v45, %v3044_v52  ;;  %v8947_v20 = vunpack.i.l.bf16 %v7898_v18  ;;  %v8004_v42 = vsel %vm1177_vm3, %v3195_v22, %v3198_v58 }
 0x4cc   : > { %vm8948_vm5 = vcmask 1022976   ;;  %v8949_v24 = vunpack.i.h.bf16 %v7734_v0  ;;  %vm8950_vm6 = vcmask 105472   ;;  %v4824_v8 = vpop.permute.xlu0 %4823  ;;  %v4829_v6 = vpop.permute.xlu1 %4828  ;;  %v8951_v46 = vrot.slane %v7700_v55, 6 }
 0x4cd   : > { %v3265_v56 = vsel %vm1177_vm3, %v8947_v20, %v3195_v22  ;;  %v2585_v5 = vsel %vm8948_vm5, %v4821_v25, %v4820_v28  ;;  %v8015_v52 = vsel %vm1193_vm12, %v7978_v11, %v3210_v40  ;;  %v8018_v62 = vsel %vm2951_vm14, %v4815_v49, %v4816_v37 }
 0x4ce   : > { %v2595_v53 = vsel %vm8950_vm6, %v4820_v28, %v8949_v24  ;;  %v3033_v44 = vsel %vm1177_vm3, %v8951_v46, %v3032_v21  ;;  %v4826_v58 = vunpack.i.h.bf16 %v4824_v8  ;;  %v4825_v22 = vunpack.i.l.bf16 %v4824_v8 }
 0x4cf   : > { %v3043_v50 = vsel %vm1193_vm12, %v3040_v51, %v3042_v31  ;;  %v3171_v0 = vsel %vm1193_vm12, %v3033_v44, %v3041_v45  ;;  %v8952_v28 = vrot.slane %v7828_v34, 2  ;;  %vm8953_vm1 = vcmask 1045504  }
 0x4d0   : > { %v8954_v55 = vrot.slane %v7689_v19, 6  ;;  %v8955_v40 = vunpack.i.h.bf16 %v7898_v18  ;;  %v3054_v37 = vrot.slane %v2585_v5, 2  ;;  %v3056_v49 = vrot.slane %v2595_v53, 2  ;;  %v4844_v44 = vpop.permute.xlu1 %4843  ;;  %vm8962_vm6 = vmmov %vm8953_vm1 }
 0x4d1   : > { %v3173_v25 = vsel %vm8953_vm1, %v3045_v60, %v8952_v28  ;;  %vm8957_vm2 = vcmask 949248   ;;  %v8958_v31 = vunpack.i.h.bf16 %v7732_v59  ;;  %v8960_v19 = vunpack.i.l.bf16 %v7732_v59 }
 0x4d2   : > { %v3031_v21 = vsel %vm1177_vm3, %v8954_v55, %v3030_v16  ;;  %v8030_v20 = vpack.c.bf16 %v3265_v56, %v8955_v40  ;;  %v2627_v24 = vsel %vm8957_vm2, %v7823_v12, %v4826_v58  ;;  %vm8959_vm5 = vmmov %vm8957_vm2  ;;  %v4831_v8 = vunpack.i.h.bf16 %v4829_v6  ;;  %v4834_v56 = vpop.permute.xlu0 %4833 }
 0x4d3   : > { %v2638_v45 = vsel %vm8652_vm0, %v4826_v58, %v8958_v31  ;;  %v2626_v60 = vsel %vm8959_vm5, %v7814_v41, %v4825_v22  ;;  %v2637_v16 = vsel %vm8652_vm0, %v4825_v22, %v8960_v19  ;;  %v4830_v46 = vunpack.i.l.bf16 %v4829_v6  ;;  %vm8965_vm2 = vmmov %vm8953_vm1 }
 0x4d4   : > { %8956 = vst [vmem:[#allocation15_spill] sm:$0xff] %v8030_v20  ;;  %v3066_v5 = vrot.slane %v2627_v24, 6  ;;  %v3068_v53 = vrot.slane %v2638_v45, 6  ;;  %v3983_v28 = vpack.c.bf16 %v3173_v25, %v3171_v0  ;;  %v3170_v55 = vsel %vm1193_vm12, %v3031_v21, %v3040_v51 }
 0x4d5   : > { %v8961_v40 = vrot.slane %v7728_v14, 2  ;;  %v4836_v31 = vunpack.i.h.bf16 %v4834_v56  ;;  %v4835_v63 = vunpack.i.l.bf16 %v4834_v56  ;;  %v4846_v41 = vunpack.i.h.bf16 %v4844_v44 }
 0x4d6   : > { %3984 = vmatprep.subr.bf16.mxu1 %v3983_v28  ;;  %v4845_v20 = vunpack.i.l.bf16 %v4844_v44  ;;  %v8963_v22 = vrot.slane %v7828_v34, 2  ;;  %vm2701_vm5 = vcmask 7168   ;;  %v3065_v51 = vrot.slane %v2637_v16, 6  ;;  %v8059_v56 = vpop.permute.xlu0 %4838  ;;  %v8061_v34 = vpop.permute.xlu1 %4848 }
 0x4d7   : > { %v3172_v58 = vsel %vm8962_vm6, %v3043_v50, %v8961_v40  ;;  %v8964_v24 = vmov %v8961_v40  ;;  %vm8966_vm0 = vcmask 941056   ;;  %v8967_v50 = vunpack.i.h.bf16 %v7779_v43 }
 0x4d8   : > { %v3985_v59 = vpack.c.bf16 %v3172_v58, %v3170_v55  ;;  %v3057_v6 = vsel %vm8953_vm1, %v8963_v22, %v3056_v49  ;;  %v3055_v0 = vsel %vm8965_vm2, %v8964_v24, %v3054_v37  ;;  %v2648_v25 = vsel %vm8966_vm0, %v4836_v31, %v4835_v63 }
 0x4d9   : > { %v2659_v21 = vsel %vm2657_vm8, %v4835_v63, %v8967_v50  ;;  %v8968_v45 = vunpack.i.h.bf16 %v7818_v38  ;;  %v3064_v49 = vrot.slane %v2626_v60, 6  ;;  %vm8969_vm6 = vcmask 1014784  }
 0x4da   : > { %v2605_v14 = vsel %vm8969_vm6, %v4831_v8, %v4830_v46  ;;  %v8970_v37 = vunpack.i.h.bf16 %v7705_v29  ;;  %vm8971_vm1 = vcmask 97280   ;;  %3986 = vmatpush1.bf16.msra.mxu1 %v3985_v59  ;;  %v8972_v43 = vunpack.i.h.bf16 %v7757_v26  ;;  %v4864_v24 = vpop.permute.xlu0 %4863 }
 0x4db   : > { %v2680_v19 = vsel %vm2678_vm11, %v4846_v41, %v8968_v45  ;;  %vm8973_vm0 = vcmask 932864   ;;  %v3078_v44 = vrot.slane %v2648_v25, 4  ;;  %v8974_v28 = vunpack.i.l.bf16 %v7818_v38 }
 0x4dc   : > { %v2617_v16 = vsel %vm8971_vm1, %v4830_v46, %v8970_v37  ;;  %v2669_v63 = vsel %vm8973_vm0, %v8972_v43, %v4846_v41  ;;  %v3987_v40 = vpack.c.bf16 %v7839_v61, %v3057_v6  ;;  %v3989_v60 = vpack.c.bf16 %v7740_v32, %v3055_v0  ;;  %vm8976_vm2 = vmmov %vm8973_vm0  ;;  %v4854_v61 = vpop.permute.xlu1 %4853 }
 0x4dd   : > { %v2679_v55 = vsel %vm2678_vm11, %v4845_v20, %v8974_v28  ;;  %v3080_v58 = vrot.slane %v2659_v21, 4  ;;  %v3092_v8 = vrot.slane %v2680_v19, 2  ;;  %v8975_v29 = vunpack.i.l.bf16 %v7757_v26 }
 0x4de   : > { %v4840_v31 = vunpack.i.l.bf16 %v8059_v56  ;;  %v3089_v59 = vrot.slane %v2679_v55, 2  ;;  %3988 = vmatprep.subr.bf16.mxu1 %v3987_v40  ;;  %v4851_v41 = vunpack.i.h.bf16 %v8061_v34  ;;  %v3069_v38 = vsel %vm1177_vm3, %v3065_v51, %v3068_v53 }
 0x4df   : > { %v2668_v46 = vsel %vm8976_vm2, %v8975_v29, %v4845_v20  ;;  %v3175_v22 = vsel %vm1177_vm3, %v2617_v16, %v3065_v51  ;;  %3990 = vmatpush1.bf16.msra.mxu1 %v3989_v60  ;;  %v4850_v32 = vunpack.i.l.bf16 %v8061_v34  ;;  %v8977_v6 = vrot.slane %v7860_v33, 4 }
 0x4e0   : > { %v3067_v20 = vsel %vm1177_vm3, %v3064_v49, %v3066_v5  ;;  %v3174_v0 = vsel %vm1177_vm3, %v2605_v14, %v3064_v49  ;;  %v3090_v25 = vrot.slane %v2669_v63, 2  ;;  %v3088_v50 = vrot.slane %v2668_v46, 2  ;;  %v4869_v63 = vpop.permute.xlu0 %4868  ;;  %v8103_v28 = vpop.permute.xlu1 %4858 }
 0x4e1   : > { %v3177_v26 = vsel %vm1193_vm12, %v3069_v38, %v8977_v6  ;;  %v4841_v21 = vunpack.i.h.bf16 %v8059_v56  ;;  %vm8978_vm11 = vcmask 785408   ;;  %v8979_v45 = vrot.slane %v7753_v9, 4 }
 0x4e2   : > { %v3991_v53 = vpack.c.bf16 %v3177_v26, %v3175_v22  ;;  %v8093_v51 = vsel %vm8978_vm11, %v7812_v39, %v4840_v31  ;;  %v4866_v34 = vunpack.i.h.bf16 %v4864_v24  ;;  %v4865_v37 = vunpack.i.l.bf16 %v4864_v24 }
 0x4e3   : > { %v3176_v19 = vsel %vm1193_vm12, %v3067_v20, %v8979_v45  ;;  %v8980_v5 = vunpack.i.h.bf16 %v7777_v57  ;;  %vm8981_vm6 = vcmask 924672   ;;  %v4856_v16 = vunpack.i.h.bf16 %v4854_v61 }
 0x4e4   : > { %3992 = vmatprep.subr.bf16.mxu1 %v3991_v53  ;;  %v3993_v14 = vpack.c.bf16 %v3176_v19, %v3174_v0  ;;  %v8101_v43 = vunpack.i.l.bf16 %v4854_v61  ;;  %v8982_v39 = vunpack.i.l.bf16 %v7777_v57  ;;  %vm8983_vm1 = vmmov %vm8981_vm6  ;;  %v8984_v40 = vmov %v8977_v6  ;;  %v4874_v19 = vpop.permute.xlu1 %4873 }
 0x4e5   : > { %v2689_v49 = vsel %vm8981_vm6, %v8980_v5, %v4851_v41  ;;  %v3081_v60 = vsel %vm1193_vm12, %v8984_v40, %v3080_v58  ;;  %vm8985_vm0 = vcmask 1045504   ;;  %v8986_v46 = vmov %v8979_v45  ;;  %v4884_v45 = vpop.permute.xlu0 %4883 }
 0x4e6   : > { %v2690_v55 = vsel %vm8983_vm1, %v8982_v39, %v4850_v32  ;;  %v3093_v29 = vsel %vm8985_vm0, %v3089_v59, %v3092_v8  ;;  %v3079_v38 = vsel %vm1193_vm12, %v8986_v46, %v3078_v44  ;;  %v8987_v22 = vunpack.i.l.bf16 %v7850_v17  ;;  %3994 = vmatpush1.bf16.msra.mxu1 %v3993_v14  ;;  %vm8989_vm11 = vmmov %vm8985_vm0 }
 0x4e7   : > { %vm8988_vm2 = vcmask 916480   ;;  %v2724_v57 = vsel %vm2722_vm9, %v8101_v43, %v4856_v16  ;;  %v3179_v33 = vsel %vm8989_vm11, %v3081_v60, %v3089_v59  ;;  %v8990_v58 = vunpack.i.h.bf16 %v7816_v23  ;;  %vm8991_vm6 = vmmov %vm8985_vm0 }
 0x4e8   : > { %v2703_v24 = vsel %vm2701_vm5, %v4850_v32, %v8987_v22  ;;  %v2713_v61 = vsel %vm8988_vm2, %v4865_v37, %v4866_v34  ;;  %v3995_v6 = vpack.c.bf16 %v3093_v29, %v3179_v33  ;;  %v3091_v9 = vsel %vm8991_vm6, %v3088_v50, %v3090_v25  ;;  %vm8992_vm1 = vmmov %vm8985_vm0  ;;  %v4879_v22 = vpop.permute.xlu1 %4878 }
 0x4e9   : > { %v2735_v8 = vsel %vm2733_vm7, %v2724_v57, %v8990_v58  ;;  %v3178_v44 = vsel %vm8992_vm1, %v3079_v38, %v3088_v50  ;;  %vm2962_vm0 = vcmask 777216   ;;  %v8993_v32 = vrot.slane %v7722_v4, 6  ;;  %v4889_v38 = vpop.permute.xlu0 %4888 }
 0x4ea   : > { %v3997_v20 = vpack.c.bf16 %v3091_v9, %v3178_v44  ;;  %v4871_v0 = vunpack.i.h.bf16 %v4869_v63  ;;  %v4870_v53 = vunpack.i.l.bf16 %v4869_v63  ;;  %v3100_v59 = vrot.slane %v2713_v61, 6  ;;  %3996 = vmatprep.subr.bf16.mxu1 %v3995_v6 }
 0x4eb   : > { %v3180_v26 = vsel %vm1177_vm3, %v2690_v55, %v8993_v32  ;;  %v3112_v34 = vrot.slane %v2735_v8, 4  ;;  %v8994_v23 = vunpack.i.h.bf16 %v7850_v17  ;;  %v8995_v25 = vrot.slane %v7525_v10, 6 }
 0x4ec   : > { %3998 = vmatpush1.bf16.msra.mxu1 %v3997_v20  ;;  %v2746_v5 = vsel %vm2744_vm4, %v4870_v53, %v4871_v0  ;;  %v4886_v16 = vunpack.i.h.bf16 %v4884_v45  ;;  %v4885_v39 = vunpack.i.l.bf16 %v4884_v45  ;;  %v4001_v63 = vpack.c.bf16 %v3180_v26, %v2689_v49 }
 0x4ed   : > { %v2702_v37 = vsel %vm2701_vm5, %v4851_v41, %v8994_v23  ;;  %v3181_v50 = vsel %vm1177_vm3, %v2703_v24, %v8995_v25  ;;  %v3222_v55 = vrot.slane %v8101_v43, 2  ;;  %v8996_v40 = vunpack.i.h.bf16 %v7848_v13  ;;  %v4894_v23 = vpop.permute.xlu0 %4893 }
 0x4ee   : > { %v3999_v14 = vpack.c.bf16 %v3181_v50, %v2702_v37  ;;  %v4861_v17 = vunpack.i.h.bf16 %v8103_v28  ;;  %v4860_v10 = vunpack.i.l.bf16 %v8103_v28  ;;  %vm8997_vm7 = vcmask 818176  }
 0x4ef   : > { %v2757_v60 = vsel %vm2755_vm13, %v2746_v5, %v8996_v40  ;;  %v2811_v29 = vsel %vm8997_vm7, %v4885_v39, %v4886_v16  ;;  %v4876_v46 = vunpack.i.h.bf16 %v4874_v19  ;;  %vm8998_vm4 = vcmask 949248   ;;  %vm9003_vm13 = vmmov %vm8992_vm1 }
 0x4f0   : > { %v3124_v41 = vrot.slane %v2757_v60, 2  ;;  %4000 = vmatprep.subr.bf16.mxu1 %v3999_v14  ;;  %v2817_v49 = vsel %vm8998_vm4, %v2811_v29, %v7823_v12  ;;  %v4875_v24 = vunpack.i.l.bf16 %v4874_v19  ;;  %v8999_v61 = vmov %v8993_v32  ;;  %vm9019_vm7 = vmmov %vm9003_vm13 }
 0x4f1   : > { %v3101_v13 = vsel %vm1177_vm3, %v8999_v61, %v3100_v59  ;;  %v9000_v57 = vrot.slane %v7867_v7, 4  ;;  %4002 = vmatpush1.bf16.msra.mxu1 %v4001_v63  ;;  %v3148_v58 = vrot.slane %v2817_v49, 4  ;;  %v9002_v9 = vrot.slane %v7889_v36, 2  ;;  %v4899_v29 = vpop.permute.xlu0 %4898 }
 0x4f2   : > { %v4891_v12 = vunpack.i.h.bf16 %v4889_v38  ;;  %v2790_v32 = vsel %vm2788_vm15, %v4875_v24, %v4876_v46  ;;  %v9004_v4 = vpack.c.bf16 %v7901_v27, %v7911_v54  ;;  %v8162_v20 = vunpack.i.l.bf16 %v4889_v38  ;;  %vm9007_vm15 = vmmov %vm8992_vm1  ;;  %v4904_v27 = vpop.permute.xlu1 %4903  ;;  %v9017_v24 = vld [vmem:[#allocation6_spill] sm:$0xff] }
 0x4f3   : > { %v3113_v33 = vsel %vm1193_vm12, %v9000_v57, %v3112_v34  ;;  %v9001_v8 = vmov %v9000_v57  ;;  %v4881_v0 = vunpack.i.h.bf16 %v4879_v22  ;;  %v8166_v7 = vrot.slane %v4861_v17, 6 }
 0x4f4   : > { %v3182_v6 = vsel %vm1193_vm12, %v3101_v13, %v9001_v8  ;;  %v3184_v44 = vsel %vm9003_vm13, %v3113_v33, %v9002_v9  ;;  %4004 = vmatprep.subr.bf16.mxu1 %v9004_v4  ;;  %v9005_v53 = vunpack.i.h.bf16 %v7873_v15  ;;  %v4880_v19 = vunpack.i.l.bf16 %v4879_v22 }
 0x4f5   : > { %v4005_v26 = vpack.c.bf16 %v3184_v44, %v3182_v6  ;;  %v9006_v59 = vmov %v9002_v9  ;;  %vm9008_vm5 = vcmask 752640   ;;  %vm2973_vm2 = vcmask 637952  }
 0x4f6   : > { %v2801_v45 = vsel %vm2799_vm10, %v2790_v32, %v9005_v53  ;;  %v3125_v34 = vsel %vm9007_vm15, %v9006_v59, %v3124_v41  ;;  %v2828_v37 = vsel %vm9008_vm5, %v8162_v20, %v4891_v12  ;;  %v9009_v50 = vrot.slane %v7846_v30, 4  ;;  %v4909_v46 = vpop.permute.xlu1 %4908  ;;  %vm9026_vm15 = vmmov %vm9019_vm7 }
 0x4f7   : > { %v3136_v54 = vrot.slane %v2801_v45, 6  ;;  %v4009_v25 = vpack.c.bf16 %v7925_v48, %v3125_v34  ;;  %v8184_v36 = vsel %vm2962_vm0, %v8018_v62, %v4860_v10  ;;  %4006 = vmatpush1.bf16.msra.mxu1 %v4005_v26  ;;  %v9010_v5 = vunpack.i.h.bf16 %v7896_v47  ;;  %v9027_v26 = vld [vmem:[#allocation11_spill] sm:$0xff] }
 0x4f8   : > { %v3149_v15 = vsel %vm1193_vm12, %v9009_v50, %v3148_v58  ;;  %vm9011_vm10 = vcmask 883712   ;;  %vm9012_vm11 = vcmask 834560   ;;  %v4896_v39 = vunpack.i.h.bf16 %v4894_v23  ;;  %4008 = vmatprep.subr.bf16.mxu1 %v7946_v1  ;;  %v9021_v58 = vld [vmem:[#allocation2_spill] sm:$0xff] }
 0x4f9   : > { %v2839_v14 = vsel %vm9011_vm10, %v2828_v37, %v9010_v5  ;;  %v2768_v16 = vsel %vm9012_vm11, %v4880_v19, %v4881_v0  ;;  %vm2984_vm6 = vcmask 769024   ;;  %v9013_v63 = vunpack.i.h.bf16 %v7875_v35  ;;  %v9028_v0 = vld [vmem:[#allocation10_spill] sm:$0xff]  ;;  %v9036_v5 = vld [vmem:[#allocation8_spill] sm:$0xff] }
 0x4fa   : > { %v3160_v48 = vrot.slane %v2839_v14, 2  ;;  %vm9014_vm1 = vcmask 965632   ;;  %v4906_v60 = vunpack.i.h.bf16 %v4904_v27  ;;  %v4905_v41 = vunpack.i.l.bf16 %v4904_v27  ;;  %v4919_v27 = vpop.permute.xlu0 %4918 }
 0x4fb   : > { %v2779_v40 = vsel %vm9014_vm1, %v2768_v16, %v9013_v63  ;;  %v4895_v62 = vunpack.i.l.bf16 %v4894_v23  ;;  %v9015_v47 = vrot.slane %v7905_v3, 6  ;;  %v9018_v61 = vrot.slane %v9017_v24, 2  ;;  %4010 = vmatpush1.bf16.msra.mxu1 %v4009_v25  ;;  %v9034_v25 = vld [vmem:[#allocation4_spill] sm:$0xff] }
 0x4fc   : > { %vm9020_vm4 = vcmask 736256   ;;  %v4901_v1 = vunpack.i.h.bf16 %v4899_v29  ;;  %v4900_v57 = vunpack.i.l.bf16 %v4899_v29  ;;  %v4911_v33 = vunpack.i.h.bf16 %v4909_v46 }
 0x4fd   : > { %v3137_v38 = vsel %vm1177_vm3, %v9015_v47, %v3136_v54  ;;  %v9016_v22 = vmov %v9015_v47  ;;  %v3190_v35 = vsel %vm9019_vm7, %v3149_v15, %v9018_v61  ;;  %v2872_v13 = vsel %vm9020_vm4, %v4905_v41, %v4906_v60  ;;  %v8221_v54 = vpop.permute.xlu1 %4913  ;;  %v9042_v47 = vld [vmem:[#allocation14_spill] sm:$0xff] }
 0x4fe   : > { %v3186_v49 = vsel %vm1177_vm3, %v2779_v40, %v9016_v22  ;;  %v9022_v8 = vunpack.i.h.bf16 %v9021_v58  ;;  %vm9023_vm13 = vcmask 867328   ;;  %v4910_v9 = vunpack.i.l.bf16 %v4909_v46  ;;  %v9041_v46 = vld [vmem:[#allocation3_spill] sm:$0xff] }
 0x4ff   : > { %v9024_v44 = vmov %v9009_v50  ;;  %v9025_v12 = vmov %v9018_v61  ;;  %v9029_v53 = vpack.c.bf16 %v9027_v26, %v9028_v0  ;;  %vm9030_vm5 = vcmask 744448   ;;  %v9052_v0 = vld [vmem:[#allocation15_spill] sm:$0xff] }
 0x500   : > { %v2883_v6 = vsel %vm9023_vm13, %v2872_v13, %v9022_v8  ;;  %v3188_v3 = vsel %vm1193_vm12, %v3137_v38, %v9024_v44  ;;  %v3161_v32 = vsel %vm9026_vm15, %v9025_v12, %v3160_v48  ;;  %v2850_v45 = vsel %vm9030_vm5, %v4900_v57, %v4901_v1  ;;  %v4924_v1 = vpop.permute.xlu0 %4923  ;;  %vm9054_vm5 = vmmov %vm9019_vm7 }
 0x501   : > { %v3196_v4 = vrot.slane %v2883_v6, 6  ;;  %4012 = vmatprep.subr.bf16.mxu1 %v9029_v53  ;;  %v4013_v19 = vpack.c.bf16 %v3188_v3, %v3186_v49  ;;  %v4017_v59 = vpack.c.bf16 %v3161_v32, %v3190_v35  ;;  %v9031_v34 = vunpack.i.l.bf16 %v7898_v18  ;;  %v9045_v49 = vld [vmem:[#allocation9_spill] sm:$0xff]  ;;  %v4929_v57 = vpop.permute.xlu1 %4928  ;;  %v9049_v32 = vld [vmem:[#allocation7_spill] sm:$0xff] }
 0x502   : > { %vm9032_vm10 = vcmask 875520   ;;  %vm9033_vm11 = vcmask 728064   ;;  %vm2995_vm1 = vcmask 629760   ;;  %v3267_v37 = vsel %vm1193_vm12, %v8004_v42, %v7978_v11  ;;  %v9039_v42 = vld [vmem:[#allocation13_spill] sm:$0xff] }
 0x503   : > { %v2861_v23 = vsel %vm9032_vm10, %v2850_v45, %v9031_v34  ;;  %v2894_v30 = vsel %vm9033_vm11, %v4910_v9, %v4911_v33  ;;  %v9035_v50 = vrot.slane %v9034_v25, 2  ;;  %v9037_v14 = vunpack.i.h.bf16 %v9036_v5  ;;  %4014 = vmatpush1.bf16.msra.mxu1 %v4013_v19  ;;  %vm9056_vm10 = vmmov %vm9054_vm5 }
 0x504   : > { %vm9038_vm4 = vcmask 859136   ;;  %v4921_v16 = vunpack.i.h.bf16 %v4919_v27  ;;  %v4920_v48 = vunpack.i.l.bf16 %v4919_v27  ;;  %v4916_v63 = vunpack.i.h.bf16 %v8221_v54 }
 0x505   : > { %v3269_v15 = vsel %vm9019_vm7, %v8015_v52, %v9035_v50  ;;  %v2905_v18 = vsel %vm9038_vm4, %v2894_v30, %v9037_v14  ;;  %v3231_v40 = vrot.slane %v4860_v10, 6  ;;  %v4915_v11 = vunpack.i.l.bf16 %v8221_v54  ;;  %v4934_v30 = vpop.permute.xlu0 %4933  ;;  %v4939_v27 = vpop.permute.xlu1 %4938 }
 0x506   : > { %v3208_v60 = vrot.slane %v2905_v18, 4  ;;  %v9040_v41 = vrot.slane %v9039_v42, 6  ;;  %v3230_v52 = vrot.slane %v8184_v36, 6  ;;  %v9043_v38 = vpack.c.bf16 %v9041_v46, %v9042_v47 }
 0x507   : > { %vm9044_vm13 = vcmask 719872   ;;  %v2974_v35 = vsel %vm2973_vm2, %v4895_v62, %v4896_v39  ;;  %v4023_v36 = vpack.c.bf16 %v3269_v15, %v3267_v37  ;;  %v9047_v33 = vrot.slane %v7976_v2, 4 }
 0x508   : > { %v3264_v29 = vsel %vm1177_vm3, %v2861_v23, %v9040_v41  ;;  %4016 = vmatprep.subr.bf16.mxu1 %v9043_v38  ;;  %v2915_v22 = vsel %vm9044_vm13, %v4920_v48, %v4921_v16  ;;  %v9046_v10 = vmov %v9040_v41  ;;  %vm3006_vm15 = vcmask 760832  }
 0x509   : > { %v4021_v24 = vpack.c.bf16 %v3264_v29, %v9045_v49  ;;  %v3197_v61 = vsel %vm1177_vm3, %v9046_v10, %v3196_v4  ;;  %v2921_v13 = vsel %vm2722_vm9, %v2915_v22, %v8101_v43  ;;  %v3209_v58 = vsel %vm1193_vm12, %v9047_v33, %v3208_v60  ;;  %4018 = vmatpush1.bf16.msra.mxu1 %v4017_v59  ;;  %vm9051_vm9 = vmmov %vm9019_vm7  ;;  %v4944_v42 = vpop.permute.xlu1 %4943 }
 0x50a   : > { %v3220_v8 = vrot.slane %v2921_v13, 2  ;;  %v3246_v6 = vrot.slane %v4916_v63, 4  ;;  %v2985_v9 = vsel %vm2984_vm6, %v2974_v35, %v4915_v11  ;;  %v3243_v44 = vrot.slane %v4915_v11, 4  ;;  %4020 = vmatprep.subr.bf16.mxu1 %v9052_v0  ;;  %v4949_v11 = vpop.permute.xlu0 %4948  ;;  %v9064_v0 = vld [vmem:[#allocation5_spill] sm:$0xff] }
 0x50b   : > { %v4931_v3 = vunpack.i.h.bf16 %v4929_v57  ;;  %v4930_v12 = vunpack.i.l.bf16 %v4929_v57  ;;  %v9048_v39 = vmov %v9047_v33  ;;  %v9050_v4 = vrot.slane %v9049_v32, 2 }
 0x50c   : > { %v3266_v62 = vsel %vm1193_vm12, %v3197_v61, %v9048_v39  ;;  %v4926_v53 = vunpack.i.h.bf16 %v4924_v1  ;;  %v4925_v45 = vunpack.i.l.bf16 %v4924_v1  ;;  %v9055_v2 = vmov %v9035_v50 }
 0x50d   : > { %v3268_v26 = vsel %vm9051_vm9, %v3209_v58, %v9050_v4  ;;  %v9053_v34 = vmov %v9050_v4  ;;  %v2953_v59 = vsel %vm2951_vm14, %v4930_v12, %v4931_v3  ;;  %v3223_v54 = vsel %vm9056_vm10, %v9055_v2, %v3222_v55  ;;  %4022 = vmatpush1.bf16.msra.mxu1 %v4021_v24  ;;  %v4954_v1 = vpop.permute.xlu1 %4953  ;;  %v3527_v2 = vld [vmem:[%s8483_s6] sm:$0xff] }
 0x50e   : > { %v4025_v19 = vpack.c.bf16 %v3268_v26, %v3266_v62  ;;  %v3221_v23 = vsel %vm9054_vm5, %v9053_v34, %v3220_v8  ;;  %v3235_v50 = vsel %vm1177_vm3, %v3231_v40, %v8166_v7  ;;  %v2964_v15 = vsel %vm2962_vm0, %v2953_v59, %v4861_v17  ;;  %4024 = vmatprep.subr.bf16.mxu1 %v4023_v36  ;;  %v4959_v13 = vpop.permute.xlu0 %4958  ;;  %v3279_v59 = vld [vmem:[%s8480_s3 + $0x18] sm:$0xff] }
 0x50f   : > { %v4029_v37 = vpack.c.bf16 %v8093_v51, %v3221_v23  ;;  %v4936_v5 = vunpack.i.h.bf16 %v4934_v30  ;;  %v4935_v14 = vunpack.i.l.bf16 %v4934_v30  ;;  %v4941_v18 = vunpack.i.h.bf16 %v4939_v27  ;;  %v3276_v23 = vld [vmem:[%s8480_s3] sm:$0xff]  ;;  %v3281_v30 = vld [vmem:[%s8480_s3 + $0x28] sm:$0xf] }
 0x510   : > { %v3242_v16 = vrot.slane %v2985_v9, 4  ;;  %v3232_v48 = vrot.slane %v2964_v15, 6  ;;  %v4940_v43 = vunpack.i.l.bf16 %v4939_v27  ;;  %v3273_v25 = vsel %vm1193_vm12, %v3235_v50, %v3243_v44  ;;  %v3280_v27 = vld [vmem:[%s8480_s3 + $0x20] sm:$0xf] }
 0x511   : > { %v2996_v55 = vsel %vm2995_vm1, %v4925_v45, %v4926_v53  ;;  %vm9057_vm14 = vcmask 654336   ;;  %v4027_v7 = vpack.c.bf16 %v4840_v31, %v3223_v54  ;;  %v3271_v28 = vsel %vm1177_vm3, %v4841_v21, %v3231_v40  ;;  %4026 = vmatpush1.bf16.msra.mxu1 %v4025_v19  ;;  %v3528_v54 = vld [vmem:[%s8483_s6 + $0x8] sm:$0xff] }
 0x512   : > { %v2932_v51 = vsel %vm9057_vm14, %v4935_v14, %v4936_v5  ;;  %vm9058_vm0 = vcmask 785408   ;;  %v2975_v60 = vsel %vm2973_vm2, %v4940_v43, %v4941_v18  ;;  %v4031_v41 = vpack.c.bf16 %v3273_v25, %v3271_v28  ;;  %vm9059_vm2 = vmmov %vm9054_vm5  ;;  %v3530_v5 = vld [vmem:[%s8483_s6 + $0x18] sm:$0xff]  ;;  %v3531_v18 = vld [vmem:[%s8483_s6 + $0x20] sm:$0xff] }
 0x513   : > { %v2942_v17 = vsel %vm9058_vm0, %v2932_v51, %v4841_v21  ;;  %v3233_v29 = vsel %vm1177_vm3, %v3230_v52, %v3232_v48  ;;  %v2986_v46 = vsel %vm2984_vm6, %v2975_v60, %v4916_v63  ;;  %v4951_v47 = vunpack.i.h.bf16 %v4949_v11  ;;  %4028 = vmatprep.subr.bf16.mxu1 %v4027_v7  ;;  %vm9060_vm6 = vmmov %vm9059_vm2  ;;  %v3533_v43 = vld [vmem:[%s8483_s6 + $0x30] sm:$0xff]  ;;  %v3534_v25 = vld [vmem:[%s8483_s6 + $0x38] sm:$0xff] }
 0x514   : > { %v4950_v38 = vunpack.i.l.bf16 %v4949_v11  ;;  %v4946_v31 = vunpack.i.h.bf16 %v4944_v42  ;;  %v3244_v22 = vrot.slane %v2986_v46, 4  ;;  %v4945_v49 = vunpack.i.l.bf16 %v4944_v42  ;;  %v3535_v51 = vld [vmem:[%s8483_s6 + $0x40] sm:$0xff]  ;;  %v3536_v7 = vld [vmem:[%s8483_s6 + $0x48] sm:$0xff]  ;;  %v3537_v46 = vld [vmem:[%s8483_s6 + $0x50] sm:$0xff] }
 0x515   : > { %v3270_v40 = vsel %vm1177_vm3, %v2942_v17, %v3230_v52  ;;  %v3272_v56 = vsel %vm1193_vm12, %v3233_v29, %v3242_v16  ;;  %v3258_v21 = vrot.slane %v4951_v47, 2  ;;  %v3247_v61 = vsel %vm1193_vm12, %v3243_v44, %v3246_v6  ;;  %4030 = vmatpush1.bf16.msra.mxu1 %v4029_v37  ;;  %v3529_v37 = vld [vmem:[%s8483_s6 + $0x10] sm:$0xff]  ;;  %v3288_v17 = vpop.permute.xlu1 %3287 }
 0x516   : > { %v3007_v24 = vsel %vm3006_vm15, %v2996_v55, %v4950_v38  ;;  %v3255_v10 = vrot.slane %v4950_v38, 2  ;;  %v2997_v63 = vsel %vm2995_vm1, %v4945_v49, %v4946_v31  ;;  %v4033_v57 = vpack.c.bf16 %v3272_v56, %v3270_v40  ;;  %4032 = vmatprep.subr.bf16.mxu1 %v4031_v41  ;;  %vm9061_vm1 = vmmov %vm9059_vm2  ;;  %v3540_v49 = vld [vmem:[%s8483_s6 + $0x68] sm:$0xff]  ;;  %v3293_v40 = vpop.permute.xlu0 %3292 }
 0x517   : > { %v3254_v35 = vrot.slane %v3007_v24, 2  ;;  %v3245_v36 = vsel %vm1193_vm12, %v3242_v16, %v3244_v22  ;;  %v3008_v33 = vsel %vm3006_vm15, %v2997_v63, %v4951_v47  ;;  %v4961_v52 = vunpack.i.h.bf16 %v4959_v13  ;;  %vm9062_vm7 = vmmov %vm9061_vm1  ;;  %v3532_v16 = vld [vmem:[%s8483_s6 + $0x28] sm:$0xff]  ;;  %v3538_v47 = vld [vmem:[%s8483_s6 + $0x58] sm:$0xff] }
 0x518   : > { %v4960_v58 = vunpack.i.l.bf16 %v4959_v13  ;;  %v4956_v8 = vunpack.i.h.bf16 %v4954_v1  ;;  %v3256_v9 = vrot.slane %v3008_v33, 2  ;;  %v4955_v3 = vunpack.i.l.bf16 %v4954_v1  ;;  %v3539_v22 = vld [vmem:[%s8483_s6 + $0x60] sm:$0xff]  ;;  %v3542_v63 = vld [vmem:[%s8483_s6 + $0x78] sm:$0xff] }
 0x519   : > { %v3259_v12 = vsel %vm9059_vm2, %v3255_v10, %v3258_v21  ;;  %v3275_v6 = vsel %vm9060_vm6, %v3247_v61, %v3255_v10  ;;  %vm3017_vm11 = vcmask 621568   ;;  %v3274_v39 = vsel %vm9061_vm1, %v3245_v36, %v3254_v35  ;;  %4034 = vmatpush1.bf16.msra.mxu1 %v4033_v57  ;;  %v3543_v13 = vld [vmem:[%s8483_s6 + $0x80] sm:$0xff]  ;;  %v3544_v57 = vld [vmem:[%s8483_s6 + $0x88] sm:$0xff] }
 0x51a   : > { %v4035_v44 = vpack.c.bf16 %v3259_v12, %v3275_v6  ;;  %v3257_v62 = vsel %vm9062_vm7, %v3254_v35, %v3256_v9  ;;  %v3019_v32 = vsel %vm3017_vm11, %v4960_v58, %v4961_v52  ;;  %v3018_v4 = vsel %vm3017_vm11, %v4955_v3, %v4956_v8  ;;  %v3541_v35 = vld [vmem:[%s8483_s6 + $0x70] sm:$0xff]  ;;  %v3298_v52 = vpop.permute.xlu1 %3297 }
 0x51b   : > { %v4037_v26 = vpack.c.bf16 %v3257_v62, %v3274_v39  ;;  %vm9063_vm12 = vmmov 1   ;;  %v4039_v53 = vpack.c.bf16 %v8162_v20, %v9064_v0  ;;  %vm9065_vm13 = vcmask 752640  }
 0x51c   : > { %4036 = vmatprep.subr.bf16.mxu1 %v4035_v44  ;;  %vm4040_vm4 = vmpackc.low %vm1177_vm3, %vm9063_vm12  ;;  %v3025_v45 = vsel %vm9065_vm13, %v3019_v32, %v8162_v20  ;;  %vm9067_vm3 = vcmask 998400   ;;  %v3278_v20 = vld [vmem:[%s8480_s3 + $0x10] sm:$0xff]  ;;  %v5060_v50 = vmov 0.0|0.0   ;;  %v4046_v15 = vpack.c.bf16 %v3528_v54, %v3527_v2 }
 0x51d   : > { %vm9066_vm15 = vmmov %vm9065_vm13  ;;  %4038 = vmatpush1.bf16.msra.mxu1 %v4037_v26  ;;  %v4049_v14 = vpack.c.bf16 %v3530_v5, %v3529_v37  ;;  %v4052_v48 = vpack.c.bf16 %v3532_v16, %v3531_v18  ;;  %v4055_v55 = vpack.c.bf16 %v3534_v25, %v3533_v43  ;;  %v4058_v28 = vpack.c.bf16 %v3536_v7, %v3535_v51 }
 0x51e   : > { %v3024_v19 = vsel %vm9066_vm15, %v3018_v4, %v9064_v0  ;;  %4041 = vmatprep.subr.msk.bf16.mxu1 %vm4040_vm4, %v4039_v53  ;;  %vm9068_vm9 = vmmov %vm9067_vm3  ;;  %v4061_v31 = vpack.c.bf16 %v3538_v47, %v3537_v46  ;;  %v4064_v21 = vpack.c.bf16 %v3540_v49, %v3539_v22  ;;  %v4067_v1 = vpack.c.bf16 %v3542_v63, %v3541_v35 }
 0x51f   : > { %v4042_v34 = vpack.c.bf16 %v3025_v45, %v3024_v19  ;;  %v4070_v33 = vpack.c.bf16 %v3544_v57, %v3543_v13  ;;  %vm9072_vm5 = vcmask 121856   ;;  %vm9073_vm10 = vcmask 31744  }
 0x520   : > { %vm9074_vm14 = vcmask 130048   ;;  %vm9075_vm0 = vcmask 1039360   ;;  %vm9076_vm2 = vcmask 949248   ;;  %vm9077_vm6 = vcmask 941056   ;;  %vm9081_vm12 = vmmov %vm9072_vm5 }
 0x521   : > { %4044 = vmatpush1.bf16.msk.msra.mxu1 %vm4040_vm4, %v4042_v34  ;;  %vm9078_vm11 = vmmov %vm9077_vm6 }
 0x522   : > { %4045 = vmatprep.subr.bf16.mxu1 %v5060_v50  ;;  %vm9079_vm1 = vmmov %vm9075_vm0 }
 0x523   : > { %vm9080_vm7 = vmmov %vm9076_vm2 }
 0x524   : > { %3380 = vmatmul.mubr.f32.vlgmr.msra.gmra.mrb[4].mxu1 %v3276_v23  ;;  %vm9082_vm4 = vmmov %vm9073_vm10 }
 0x525   : > { %3719 = vmatprep.mubr.msk.f32.mxu1 %vm9067_vm3, %v3279_v59  ;;  %4047 = vmatpush1.bf16.msra.mxu1 %v4046_v15  ;;  %vm9083_vm13 = vmmov %vm9074_vm14 }
 0x526   : > { %4048 = vmatprep.subr.bf16.mxu1 %v5060_v50  ;;  %vm9084_vm15 = vmmov %vm9072_vm5 }
 0x527   : > { %vm9085_vm3 = vmmov %vm9082_vm4 }
 0x528   : > { %3386 = vmatmul.mubr.f32.gmra.mrb[6].mxu1 %v3278_v20 }
 0x529   : > { %3720 = vmatprep.mubr.msk.f32.mxu1 %vm9068_vm9, %v3281_v30  ;;  %4050 = vmatpush1.bf16.msra.mxu1 %v4049_v14  ;;  %vm9086_vm9 = vmmov %vm9075_vm0 }
 0x52a   : > { %4051 = vmatprep.subr.bf16.mxu1 %v5060_v50 }
 0x52c   : > { %3392 = vmatmul.mubr.f32.gmra.mrb[8].mxu1 %v3280_v27 }
 0x52d   : > { %4053 = vmatpush1.bf16.msra.mxu1 %v4052_v48 }
 0x52e   : > { %4054 = vmatprep.subr.bf16.mxu1 %v5060_v50 }
 0x531   : > { %4056 = vmatpush1.bf16.msra.mxu1 %v4055_v55 }
 0x532   : > { %4057 = vmatprep.subr.bf16.mxu1 %v5060_v50 }
 0x535   : > { %4059 = vmatpush1.bf16.msra.mxu1 %v4058_v28 }
 0x536   : > { %4060 = vmatprep.subr.bf16.mxu1 %v5060_v50 }
 0x539   : > { %4062 = vmatpush1.bf16.msra.mxu1 %v4061_v31 }
 0x53a   : > { %4063 = vmatprep.subr.bf16.mxu1 %v5060_v50 }
 0x53d   : > { %4065 = vmatpush1.bf16.msra.mxu1 %v4064_v21 }
 0x53e   : > { %4066 = vmatprep.subr.bf16.mxu1 %v5060_v50 }
 0x541   : > { %4068 = vmatpush1.bf16.msra.mxu1 %v4067_v1 }
 0x542   : > { %4069 = vmatprep.subr.bf16.mxu1 %v5060_v50 }
 0x545   : > { %4071 = vmatpush1.bf16.msra.mxu1 %v4070_v33 }
 0x5f7   : > { %v3381_v60 = vpop.f32.mrb[4].mxu1 }
 0x5f8   : > { %v8358_v11 = vadd.f32 %v3381_v60, %v3288_v17  ;;  %v3383_v42 = vpop.f32.mrb[5].mxu1 }
 0x5f9   : > { %v8360_v41 = vadd.f32 %v3383_v42, %v3288_v17 }
 0x5fa   : > { %3425 = vrot.lane.b32.xlu1 %v8358_v11, %s9069_s27 }
 0x5fb   : > { %v3387_v29 = vpop.f32.mrb[6].mxu1  ;;  %3406 = vrot.lane.b32.xlu0 %v8360_v41, %s8653_s8 }
 0x5fc   : > { %v3389_v38 = vpop.f32.mrb[7].mxu1  ;;  %v8382_v24 = vadd.f32 %v3387_v29, %v3293_v40 }
 0x5fd   : > { %v8404_v36 = vadd.f32 %v3389_v38, %v3293_v40 }
 0x5fe   : > { %3464 = vrot.lane.b32.xlu1 %v8358_v11, %s9070_s20  ;;  %v4967_v61 = vpack.i.bf16 %v8382_v24, %v8358_v11 }
 0x5ff   : > { %v3393_v56 = vpop.f32.mrb[8].mxu1  ;;  %3445 = vrot.lane.b32.xlu0 %v8360_v41, %s5015_s17 }
 0x600   : > { %v3395_v10 = vpop.f32.mrb[9].mxu1  ;;  %v8417_v58 = vadd.f32 %v3393_v56, %v3298_v52 }
 0x601   : > { %v8423_v8 = vadd.f32 %v3395_v10, %v3298_v52 }
 0x602   : > { %3497 = vrot.lane.b32.xlu1 %v8358_v11, %s9071_s12 }
 0x603   : > { %3478 = vrot.lane.b32.xlu0 %v8360_v41, %s5018_s21 }
 0x606   : > { %4968 = vrot.lane.b32.xlu1 %v4967_v61, %s5015_s17 }
 0x607   : > { %4963 = vrot.lane.b32.xlu0 %v4967_v61, %s8653_s8 }
 0x60a   : > { %3410 = vrot.lane.b32.xlu1 %v8404_v36, %s8653_s8 }
 0x60b   : > { %4973 = vrot.lane.b32.xlu0 %v4967_v61, %s5018_s21 }
 0x60e   : > { %3449 = vrot.lane.b32.xlu1 %v8404_v36, %s5015_s17 }
 0x60f   : > { %3427 = vrot.lane.b32.xlu0 %v8382_v24, %s9069_s27 }
 0x612   : > { %3482 = vrot.lane.b32.xlu1 %v8404_v36, %s5018_s21 }
 0x613   : > { %3466 = vrot.lane.b32.xlu0 %v8382_v24, %s9070_s20 }
 0x616   : > { %3412 = vrot.lane.b32.xlu1 %v8417_v58, %s8653_s8 }
 0x617   : > { %3499 = vrot.lane.b32.xlu0 %v8382_v24, %s9071_s12 }
 0x61a   : > { %3414 = vrot.lane.b32.xlu1 %v8423_v8, %s8653_s8  ;;  %s4085_s8 = smul.u32 24, %s9093_s25 }
 0x61b   : > { %3429 = vrot.lane.b32.xlu0 %v8417_v58, %s9069_s27 }
 0x61c   : > { %s275_s27 = scalar_lea.vmem %s8484_s7, %s4085_s8 }
 0x61e   : > { %3453 = vrot.lane.b32.xlu1 %v8423_v8, %s5015_s17 }
 0x61f   : > { %3468 = vrot.lane.b32.xlu0 %v8417_v58, %s9070_s20 }
 0x622   : > { %3486 = vrot.lane.b32.xlu1 %v8423_v8, %s5018_s21 }
 0x623   : > { %3501 = vrot.lane.b32.xlu0 %v8417_v58, %s9071_s12 }
 0x626   : > { %3484 = vrot.lane.b32.xlu1 %v8417_v58, %s5018_s21 }
 0x627   : > { %3451 = vrot.lane.b32.xlu0 %v8417_v58, %s5015_s17 }
 0x66c   : > { %v3426_v9 = vpop.permute.xlu1 %3425 }
 0x66d   : > { %v3407_v3 = vpop.permute.xlu0 %3406 }
 0x66e   : > { %v3434_v44 = vsel %vm9072_vm5, %v3407_v3, %v3426_v9  ;;  %vm9087_vm5 = vmmov %vm9077_vm6 }
 0x66f   : > { %v3438_v26 = vmax.f32 %v8360_v41, %v3434_v44 }
 0x670   : > { %v3465_v12 = vpop.permute.xlu1 %3464 }
 0x671   : > { %v3446_v6 = vpop.permute.xlu0 %3445 }
 0x672   : > { %v3473_v32 = vsel %vm9073_vm10, %v3446_v6, %v3465_v12  ;;  %vm9088_vm10 = vmmov %vm9076_vm2 }
 0x674   : > { %v3498_v39 = vpop.permute.xlu1 %3497 }
 0x675   : > { %v3479_v62 = vpop.permute.xlu0 %3478 }
 0x676   : > { %v3506_v4 = vsel %vm2657_vm8, %v3479_v62, %v3498_v39 }
 0x677   : > { %v3510_v0 = vmax.f32 %v3473_v32, %v3506_v4 }
 0x678   : > { %v4969_v53 = vpop.permute.xlu1 %4968 }
 0x679   : > { %v3516_v45 = vmax.f32 %v3438_v26, %v3510_v0  ;;  %v4964_v19 = vpop.permute.xlu0 %4963  ;;  %v4970_v59 = vunpack.i.l.bf16 %v4969_v53  ;;  %v4971_v25 = vunpack.i.h.bf16 %v4969_v53 }
 0x67a   : > { %v4965_v34 = vunpack.i.l.bf16 %v4964_v19  ;;  %v4966_v18 = vunpack.i.h.bf16 %v4964_v19 }
 0x67b   : > { %v3522_v23 = vmax.f32 %v3516_v45, 0.0  ;;  %v3455_v54 = vsel %vm9076_vm2, %v4970_v59, %v3446_v6  ;;  %vm3636_vm2 = vcmask 125952  }
 0x67c   : > { %v3411_v20 = vpop.permute.xlu1 %3410  ;;  %v3416_v27 = vsel %vm9075_vm0, %v4965_v34, %v3407_v3 }
 0x67d   : > { %v4974_v30 = vpop.permute.xlu0 %4973  ;;  %3721 = vmatprep.mubr.msk.f32.mxu1 %vm9074_vm14, %v3522_v23  ;;  %v3437_v15 = vmax.f32 %v8358_v11, %v3416_v27  ;;  %v3417_v28 = vsel %vm9079_vm1, %v4966_v18, %v3411_v20  ;;  %vm9089_vm14 = vmmov %vm9083_vm13 }
 0x67e   : > { %v4975_v2 = vunpack.i.l.bf16 %v4974_v30  ;;  %v4976_v16 = vunpack.i.h.bf16 %v4974_v30  ;;  %v3439_v29 = vmax.f32 %v8382_v24, %v3417_v28 }
 0x680   : > { %v3488_v37 = vsel %vm9077_vm6, %v4975_v2, %v3479_v62  ;;  %v3450_v50 = vpop.permute.xlu1 %3449 }
 0x681   : > { %v3509_v5 = vmax.f32 %v3455_v54, %v3488_v37  ;;  %v3428_v14 = vpop.permute.xlu0 %3427  ;;  %v3456_v17 = vsel %vm9080_vm7, %v4971_v25, %v3450_v50 }
 0x682   : > { %v3435_v60 = vsel %vm9081_vm12, %v3411_v20, %v3428_v14 }
 0x683   : > { %v3515_v48 = vmax.f32 %v3437_v15, %v3509_v5  ;;  %v3440_v38 = vmax.f32 %v8404_v36, %v3435_v60 }
 0x684   : > { %v3483_v43 = vpop.permute.xlu1 %3482 }
 0x685   : > { %v3521_v55 = vmax.f32 %v3515_v48, 0.0  ;;  %v3489_v51 = vsel %vm9078_vm11, %v4976_v16, %v3483_v43  ;;  %v3467_v7 = vpop.permute.xlu0 %3466 }
 0x686   : > { %v3511_v42 = vmax.f32 %v3456_v17, %v3489_v51  ;;  %v3474_v46 = vsel %vm9082_vm4, %v3450_v50, %v3467_v7 }
 0x687   : > { %3619 = vmatmul.mubr.f32.vlgmr.msra.gmra.mrb[10].mxu1 %v3521_v55 }
 0x688   : > { %v3413_v11 = vpop.permute.xlu1 %3412  ;;  %v3517_v49 = vmax.f32 %v3439_v29, %v3511_v42 }
 0x689   : > { %v3500_v41 = vpop.permute.xlu0 %3499 }
 0x68a   : > { %v3507_v47 = vsel %vm2657_vm8, %v3483_v43, %v3500_v41  ;;  %v3523_v61 = vmax.f32 %v3517_v49, 0.0 }
 0x68b   : > { %v3512_v31 = vmax.f32 %v3474_v46, %v3507_v47 }
 0x68c   : > { %v3415_v22 = vpop.permute.xlu1 %3414 }
 0x68d   : > { %v3518_v40 = vmax.f32 %v3440_v38, %v3512_v31  ;;  %v3430_v56 = vpop.permute.xlu0 %3429  ;;  %v3418_v52 = vsel %vm9086_vm9, %v3413_v11, %v3415_v22 }
 0x68e   : > { %v3436_v24 = vsel %vm9084_vm15, %v3415_v22, %v3430_v56  ;;  %v3441_v39 = vmax.f32 %v8417_v58, %v3418_v52 }
 0x68f   : > { %v3524_v21 = vmax.f32 %v3518_v40, 0.0  ;;  %v3442_v36 = vmax.f32 %v8423_v8, %v3436_v24 }
 0x690   : > { %v3454_v10 = vpop.permute.xlu1 %3453 }
 0x691   : > { %v3469_v35 = vpop.permute.xlu0 %3468  ;;  %3722 = vmatprep.mubr.msk.f32.mxu1 %vm9083_vm13, %v3524_v21 }
 0x692   : > { %3624 = vmatmul.mubr.f32.gmra.mrb[12].mxu1 %v3523_v61  ;;  %v3475_v1 = vsel %vm9085_vm3, %v3454_v10, %v3469_v35 }
 0x694   : > { %v3487_v63 = vpop.permute.xlu1 %3486 }
 0x695   : > { %v3502_v13 = vpop.permute.xlu0 %3501 }
 0x696   : > { %v3508_v57 = vsel %vm2657_vm8, %v3487_v63, %v3502_v13  ;;  %vm9090_vm8 = vmmov %vm9083_vm13 }
 0x697   : > { %v3514_v33 = vmax.f32 %v3475_v1, %v3508_v57  ;;  %vm9091_vm0 = vmmov %vm9090_vm8 }
 0x698   : > { %v3485_v9 = vpop.permute.xlu1 %3484 }
 0x699   : > { %v3520_v3 = vmax.f32 %v3442_v36, %v3514_v33  ;;  %v3490_v12 = vsel %vm9087_vm5, %v3485_v9, %v3487_v63  ;;  %v3452_v6 = vpop.permute.xlu0 %3451 }
 0x69a   : > { %v3457_v44 = vsel %vm9088_vm10, %v3452_v6, %v3454_v10 }
 0x69b   : > { %v3526_v62 = vmax.f32 %v3520_v3, 0.0  ;;  %v3513_v32 = vmax.f32 %v3457_v44, %v3490_v12 }
 0x69d   : > { %3723 = vmatprep.mubr.msk.f32.mxu1 %vm9089_vm14, %v3526_v62  ;;  %v3519_v4 = vmax.f32 %v3441_v39, %v3513_v32 }
 0x69f   : > { %v3525_v26 = vmax.f32 %v3519_v4, 0.0 }
 0x6a1   : > { %3629 = vmatmul.mubr.f32.gmra.mrb[14].mxu1 %v3525_v26 }
 0x75a   : > { %v3620_v8 = vpop.f32.mrb[10].mxu1 }
 0x75b   : > { %3634 = vst.msk [vmem:[%s275_s27] sm:$0xff] %vm9090_vm8, %v3620_v8  ;;  %v3622_v0 = vpop.f32.mrb[11].mxu1 }
 0x765   : > { %v3625_v53 = vpop.f32.mrb[12].mxu1 }
 0x766   : > { %3635 = vst.msk [vmem:[%s275_s27 + $0x8] sm:$0xff] %vm9091_vm0, %v3625_v53  ;;  %v3627_v58 = vpop.f32.mrb[13].mxu1 }
 0x774   : > { %v3630_v45 = vpop.f32.mrb[14].mxu1 }
 0x775   : > { %3637 = vst.msk [vmem:[%s275_s27 + $0x10] sm:$0xf] %vm3636_vm2, %v3630_v45  ;;  %v3632_v19 = vpop.f32.mrb[15].mxu1 }
 0x776 PF: > { %s17_s24 = sadd.s32 1, %s4983_s24  }
 0x777   : > { %p14_p4 = scmp.ge.s32.totalorder %s17_s24, 4  }
 0x779   :  { %16 = sbr.rel (!%p14_p4) target bundleno = 1 (0x1), region = 78 }

</bundles_post_ra>
